<compile_context>
chip_gen: v7x
topology: tpu7x:2x2x1
jax: 0.10.0
libtpu: 0.0.40
codegen_flags: <defaults>
</compile_context>

<pallas_src>
import jax
import jax.numpy as jnp
from jax.experimental import pallas as pl
from jax.experimental.pallas import tpu as pltpu  # noqa: F401  (TPU backend)

# ----------------------------- model config ---------------------------------
HIDDEN = 32          # bert.config.hidden_size (small synthetic config)
N_HEADS = 4
HEAD_DIM = HIDDEN // N_HEADS
N_LAYERS = 2
INTERMEDIATE = 64
VOCAB = 100
MAX_POS = 64
NUM_LABELS_T1 = 3
NUM_LABELS_T2 = 2
NUM_LABELS_TOTAL = NUM_LABELS_T1 + NUM_LABELS_T2
HEAD_PAD = 128       # lane-dense padded width for the fused classifier output
LN_EPS = 1e-12

BATCH = 2
SEQ = 8
TOKENS = BATCH * SEQ


# --------------------------- in-kernel helpers --------------------------------
def _mxu(x, w):
    # bf16 operands into the MXU, f32 accumulation; elementwise math stays f32.
    return jnp.dot(x.astype(jnp.bfloat16), w.astype(jnp.bfloat16),
                   preferred_element_type=jnp.float32)


def _layernorm(x, g, b):
    mean = jnp.mean(x, axis=-1, keepdims=True)
    var = jnp.mean((x - mean) ** 2, axis=-1, keepdims=True)
    return (x - mean) * jax.lax.rsqrt(var + LN_EPS) * g + b


def _gelu(x):
    # tanh-approx GELU (HF BERT default is the erf form; difference ~1e-3).
    return 0.5 * x * (1.0 + jnp.tanh(0.7978845608028654 * (x + 0.044715 * x * x * x)))


# ----------------------------- Pallas kernels ---------------------------------
def _encoder_kernel(x_ref, bias_ref, emb_g_ref, emb_b_ref,
                    wqkv_ref, bqkv_ref, wo_ref, bo_ref,
                    ln1_g_ref, ln1_b_ref, w1_ref, b1_ref, w2_ref, b2_ref,
                    ln2_g_ref, ln2_b_ref, o_ref):
    """Whole BERT encoder in one kernel. x: [B*S, H]; bias: [B, S, S]."""
    h = _layernorm(x_ref[...].astype(jnp.float32), emb_g_ref[...], emb_b_ref[...])
    bias = bias_ref[...]                          # additive attention bias (B, S, S)
    scale = 1.0 / (HEAD_DIM ** 0.5)

    for l in range(N_LAYERS):                     # unrolled; weights resident in VMEM
        # ---- fused QKV projection ------------------------------------------
        qkv = _mxu(h, wqkv_ref[l]) + bqkv_ref[l]  # (B*S, 3H)
        wo = wo_ref[l]                            # (H, H)

        # ---- per-head attention + output projection (accumulated) ----------
        attn = jnp.zeros((TOKENS, HIDDEN), jnp.float32)
        for hd in range(N_HEADS):
            lo = hd * HEAD_DIM
            q = qkv[:, lo:lo + HEAD_DIM].reshape(BATCH, SEQ, HEAD_DIM)
            k = qkv[:, HIDDEN + lo:HIDDEN + lo + HEAD_DIM].reshape(BATCH, SEQ, HEAD_DIM)
            v = qkv[:, 2 * HIDDEN + lo:2 * HIDDEN + lo + HEAD_DIM].reshape(BATCH, SEQ, HEAD_DIM)
            s = jnp.einsum('bqd,bkd->bqk',
                           q.astype(jnp.bfloat16), k.astype(jnp.bfloat16),
                           preferred_element_type=jnp.float32) * scale + bias
            m = jnp.max(s, axis=-1, keepdims=True)
            p = jnp.exp(s - m)
            p = p / jnp.sum(p, axis=-1, keepdims=True)
            ctx = jnp.einsum('bqk,bkd->bqd',
                             p.astype(jnp.bfloat16), v.astype(jnp.bfloat16),
                             preferred_element_type=jnp.float32)
            ctx2 = ctx.reshape(TOKENS, HEAD_DIM)
            # concat-over-heads @ Wo  ==  sum_h (ctx_h @ Wo[h*dH:(h+1)*dH, :])
            attn = attn + _mxu(ctx2, wo[lo:lo + HEAD_DIM, :])
        attn = attn + bo_ref[l]

        # ---- fused residual-add + LayerNorm ---------------------------------
        h = _layernorm(attn + h, ln1_g_ref[l], ln1_b_ref[l])

        # ---- FFN + fused residual-add + LayerNorm ---------------------------
        ff = _gelu(_mxu(h, w1_ref[l]) + b1_ref[l])
        ff = _mxu(ff, w2_ref[l]) + b2_ref[l]
        h = _layernorm(ff + h, ln2_g_ref[l], ln2_b_ref[l])

    o_ref[...] = h.astype(o_ref.dtype)


def _pooler_heads_kernel(cls_ref, pw_ref, pb_ref, cw_ref, cb_ref, o_ref):
    """BERT pooler (tanh) + both classification heads (concatenated, 128-lane padded)."""
    cls = cls_ref[...].astype(jnp.float32)
    pooled = jnp.tanh(_mxu(cls, pw_ref[...]) + pb_ref[...])
    # nn.Dropout(p=0.5) in eval mode is the identity (inference semantics).
    o_ref[...] = (_mxu(pooled, cw_ref[...]) + cb_ref[...]).astype(o_ref.dtype)


# ----------------------------- pallas_call wrappers ----------------------------
def pallas_encoder(x2, attn_bias, p):
    # Single grid point; every array is a whole-block VMEM resident (tiny model).
    return pl.pallas_call(
        _encoder_kernel,
        out_shape=jax.ShapeDtypeStruct((TOKENS, HIDDEN), jnp.float32),
    )(x2, attn_bias,
      p["emb_ln_g"], p["emb_ln_b"],
      p["wqkv"], p["bqkv"], p["wo"], p["bo"],
      p["ln1_g"], p["ln1_b"],
      p["w1"], p["b1"], p["w2"], p["b2"],
      p["ln2_g"], p["ln2_b"])


def pallas_pooler_heads(cls, pw, pb, cw, cb):
    return pl.pallas_call(
        _pooler_heads_kernel,
        out_shape=jax.ShapeDtypeStruct((BATCH, HEAD_PAD), jnp.float32),
    )(cls, pw, pb, cw, cb)


# ----------------------------- parameters -------------------------------------
def _dense(key, fan_in, fan_out):
    kw, _ = jax.random.split(key)
    return (0.02 * jax.random.normal(kw, (fan_in, fan_out), jnp.float32),
            jnp.zeros((fan_out,), jnp.float32))


def init_params(key):
    keys = jax.random.split(key, 8 + N_LAYERS)
    p = {
        "word_emb": 0.02 * jax.random.normal(keys[0], (VOCAB, HIDDEN), jnp.float32),
        "pos_emb": 0.02 * jax.random.normal(keys[1], (MAX_POS, HIDDEN), jnp.float32),
        "type_emb": 0.02 * jax.random.normal(keys[2], (2, HIDDEN), jnp.float32),
        "emb_ln_g": jnp.ones((HIDDEN,), jnp.float32),
        "emb_ln_b": jnp.zeros((HIDDEN,), jnp.float32),
        "layers": [],
    }
    for li in range(N_LAYERS):
        lk = jax.random.split(keys[3 + li], 6)
        wq, bq = _dense(lk[0], HIDDEN, HIDDEN)
        wk, bk = _dense(lk[1], HIDDEN, HIDDEN)
        wv, bv = _dense(lk[2], HIDDEN, HIDDEN)
        wo, bo = _dense(lk[3], HIDDEN, HIDDEN)
        w1, b1 = _dense(lk[4], HIDDEN, INTERMEDIATE)
        w2, b2 = _dense(lk[5], INTERMEDIATE, HIDDEN)
        p["layers"].append(dict(
            wq=wq, bq=bq, wk=wk, bk=bk, wv=wv, bv=bv, wo=wo, bo=bo,
            ln1_g=jnp.ones((HIDDEN,), jnp.float32), ln1_b=jnp.zeros((HIDDEN,), jnp.float32),
            w1=w1, b1=b1, w2=w2, b2=b2,
            ln2_g=jnp.ones((HIDDEN,), jnp.float32), ln2_b=jnp.zeros((HIDDEN,), jnp.float32),
        ))
    p["pooler_w"], p["pooler_b"] = _dense(keys[3 + N_LAYERS], HIDDEN, HIDDEN)
    p["cls1_w"], p["cls1_b"] = _dense(keys[4 + N_LAYERS], HIDDEN, NUM_LABELS_T1)
    p["cls2_w"], p["cls2_b"] = _dense(keys[5 + N_LAYERS], HIDDEN, NUM_LABELS_T2)
    return p


def pack_params(p):
    """Stack per-layer weights into [N_LAYERS, ...] arrays; fuse QKV and the two heads."""
    layers = p["layers"]

    def stk(fn):
        return jnp.stack([fn(l) for l in layers], axis=0)

    packed = {
        "word_emb": p["word_emb"], "pos_emb": p["pos_emb"], "type_emb": p["type_emb"],
        "emb_ln_g": p["emb_ln_g"].reshape(1, HIDDEN),
        "emb_ln_b": p["emb_ln_b"].reshape(1, HIDDEN),
        # fused QKV: [L, H, 3H] / [L, 1, 3H]
        "wqkv": stk(lambda l: jnp.concatenate([l["wq"], l["wk"], l["wv"]], axis=1)),
        "bqkv": stk(lambda l: jnp.concatenate([l["bq"], l["bk"], l["bv"]],
                                              axis=0).reshape(1, 3 * HIDDEN)),
        "wo": stk(lambda l: l["wo"]),
        "bo": stk(lambda l: l["bo"].reshape(1, HIDDEN)),
        "ln1_g": stk(lambda l: l["ln1_g"].reshape(1, HIDDEN)),
        "ln1_b": stk(lambda l: l["ln1_b"].reshape(1, HIDDEN)),
        "w1": stk(lambda l: l["w1"]),
        "b1": stk(lambda l: l["b1"].reshape(1, INTERMEDIATE)),
        "w2": stk(lambda l: l["w2"]),
        "b2": stk(lambda l: l["b2"].reshape(1, HIDDEN)),
        "ln2_g": stk(lambda l: l["ln2_g"].reshape(1, HIDDEN)),
        "ln2_b": stk(lambda l: l["ln2_b"].reshape(1, HIDDEN)),
        "pooler_w": p["pooler_w"],
        "pooler_b": p["pooler_b"].reshape(1, HIDDEN),
    }
    # Both classification heads concatenated and padded to 128 lanes (lane-dense store).
    cw = jnp.zeros((HIDDEN, HEAD_PAD), jnp.float32)
    cw = cw.at[:, :NUM_LABELS_T1].set(p["cls1_w"])
    cw = cw.at[:, NUM_LABELS_T1:NUM_LABELS_TOTAL].set(p["cls2_w"])
    cb = jnp.zeros((1, HEAD_PAD), jnp.float32)
    cb = cb.at[0, :NUM_LABELS_T1].set(p["cls1_b"])
    cb = cb.at[0, NUM_LABELS_T1:NUM_LABELS_TOTAL].set(p["cls2_b"])
    packed["cls_w"] = cw
    packed["cls_b"] = cb
    return packed


# ----------------------------- forward pass ------------------------------------
@jax.jit
def multi_output_bert_forward(packed, input_ids, attention_mask):
    B, S = input_ids.shape
    # TODO(synk): embedding lookup (gather) stays in plain JAX (data-dependent indexing).
    h = (packed["word_emb"][input_ids]
         + packed["pos_emb"][:S][None, :, :]
         + packed["type_emb"][0][None, None, :])                   # [B, S, H]
    x2 = h.reshape(B * S, HIDDEN)

    # Hoisted mask -> additive bias, broadcast once per forward pass: [B, S, S].
    attn_bias = jnp.broadcast_to(
        ((1.0 - attention_mask.astype(jnp.float32)) * -10000.0)[:, None, :],
        (B, S, S))

    h2 = pallas_encoder(x2, attn_bias, packed)                     # [B*S, H]

    cls = h2.reshape(B, S, HIDDEN)[:, 0, :]                        # [B, H] CLS token
    logits = pallas_pooler_heads(cls, packed["pooler_w"], packed["pooler_b"],
                                 packed["cls_w"], packed["cls_b"])  # [B, 128]
    logits_task1 = logits[:, :NUM_LABELS_T1]
    logits_task2 = logits[:, NUM_LABELS_T1:NUM_LABELS_TOTAL]
    return logits_task1, logits_task2


# ----------------------------- driver -------------------------------------------
if __name__ == "__main__":
    root = jax.random.PRNGKey(0)
    k_params, k_ids = jax.random.split(root)
    params = init_params(k_params)
    packed = pack_params(params)

    input_ids = jax.random.randint(k_ids, (BATCH, SEQ), 0, VOCAB, dtype=jnp.int32)
    attention_mask = jnp.ones((BATCH, SEQ), dtype=jnp.float32)

    logits1, logits2 = multi_output_bert_forward(packed, input_ids, attention_mask)
    jax.block_until_ready((logits1, logits2))

    assert logits1.shape == (BATCH, NUM_LABELS_T1)
    assert logits2.shape == (BATCH, NUM_LABELS_T2)
    assert jnp.all(jnp.isfinite(logits1)) and jnp.all(jnp.isfinite(logits2))
    print("KERNEL_OK")
</pallas_src>

<mosaic_0001>
module attributes {stable_mosaic.version = 11 : i64} {
  func.func @_pooler_heads_kernel(%arg0: memref<2x32xf32, #tpu.memory_space<vmem>>, %arg1: memref<32x32xf32, #tpu.memory_space<vmem>>, %arg2: memref<1x32xf32, #tpu.memory_space<vmem>>, %arg3: memref<32x128xf32, #tpu.memory_space<vmem>>, %arg4: memref<1x128xf32, #tpu.memory_space<vmem>>, %arg5: memref<2x128xf32, #tpu.memory_space<vmem>>) attributes {dimension_semantics = [], scalar_prefetch = 0 : i64, scratch_operands = 0 : i64, tpu.core_type = #tpu.core_type<tc>} {
    %c0 = arith.constant 0 : index
    %c0_0 = arith.constant 0 : index
    %0 = vector.load %arg0[%c0, %c0_0] : memref<2x32xf32, #tpu.memory_space<vmem>>, vector<2x32xf32>
    %c0_1 = arith.constant 0 : index
    %c0_2 = arith.constant 0 : index
    %1 = vector.load %arg1[%c0_1, %c0_2] : memref<32x32xf32, #tpu.memory_space<vmem>>, vector<32x32xf32>
    %2 = arith.truncf %0 : vector<2x32xf32> to vector<2x32xbf16>
    %3 = arith.truncf %1 : vector<32x32xf32> to vector<32x32xbf16>
    %cst = arith.constant dense<0.000000e+00> : vector<2x32xf32>
    %4 = tpu.matmul %2, %3, %cst {dimension_numbers = #tpu.dot_dimension_numbers<[1], [0], [0], [1], [0, 0, 1, 1], [], []>} : vector<2x32xbf16>, vector<32x32xbf16>, vector<2x32xf32> -> vector<2x32xf32>
    %c0_3 = arith.constant 0 : index
    %c0_4 = arith.constant 0 : index
    %5 = vector.load %arg2[%c0_3, %c0_4] : memref<1x32xf32, #tpu.memory_space<vmem>>, vector<1x32xf32>
    %6 = vector.broadcast %5 : vector<1x32xf32> to vector<2x32xf32>
    %7 = arith.addf %4, %6 : vector<2x32xf32>
    %8 = math.tanh %7 : vector<2x32xf32>
    %c0_5 = arith.constant 0 : index
    %c0_6 = arith.constant 0 : index
    %9 = vector.load %arg3[%c0_5, %c0_6] : memref<32x128xf32, #tpu.memory_space<vmem>>, vector<32x128xf32>
    %10 = arith.truncf %8 : vector<2x32xf32> to vector<2x32xbf16>
    %11 = arith.truncf %9 : vector<32x128xf32> to vector<32x128xbf16>
    %cst_7 = arith.constant dense<0.000000e+00> : vector<2x128xf32>
    %12 = tpu.matmul %10, %11, %cst_7 {dimension_numbers = #tpu.dot_dimension_numbers<[1], [0], [0], [1], [0, 0, 1, 1], [], []>} : vector<2x32xbf16>, vector<32x128xbf16>, vector<2x128xf32> -> vector<2x128xf32>
    %c0_8 = arith.constant 0 : index
    %c0_9 = arith.constant 0 : index
    %13 = vector.load %arg4[%c0_8, %c0_9] : memref<1x128xf32, #tpu.memory_space<vmem>>, vector<1x128xf32>
    %14 = vector.broadcast %13 : vector<1x128xf32> to vector<2x128xf32>
    %15 = arith.addf %12, %14 : vector<2x128xf32>
    %c0_10 = arith.constant 0 : index
    %c0_11 = arith.constant 0 : index
    %16 = vector.load %arg5[%c0_10, %c0_11] : memref<2x128xf32, #tpu.memory_space<vmem>>, vector<2x128xf32>
    tpu.vector_store %arg5[%c0_10, %c0_11], %15 {strides = array<i32>} : memref<2x128xf32, #tpu.memory_space<vmem>>, vector<2x128xf32>,
    return
  }
}

module attributes {stable_mosaic.version = 11 : i64} {
  func.func @_encoder_kernel(%arg0: memref<16x32xf32, #tpu.memory_space<vmem>>, %arg1: memref<2x8x8xf32, #tpu.memory_space<vmem>>, %arg2: memref<1x32xf32, #tpu.memory_space<vmem>>, %arg3: memref<1x32xf32, #tpu.memory_space<vmem>>, %arg4: memref<2x32x96xf32, #tpu.memory_space<vmem>>, %arg5: memref<2x1x96xf32, #tpu.memory_space<vmem>>, %arg6: memref<2x32x32xf32, #tpu.memory_space<vmem>>, %arg7: memref<2x1x32xf32, #tpu.memory_space<vmem>>, %arg8: memref<2x1x32xf32, #tpu.memory_space<vmem>>, %arg9: memref<2x1x32xf32, #tpu.memory_space<vmem>>, %arg10: memref<2x32x64xf32, #tpu.memory_space<vmem>>, %arg11: memref<2x1x64xf32, #tpu.memory_space<vmem>>, %arg12: memref<2x64x32xf32, #tpu.memory_space<vmem>>, %arg13: memref<2x1x32xf32, #tpu.memory_space<vmem>>, %arg14: memref<2x1x32xf32, #tpu.memory_space<vmem>>, %arg15: memref<2x1x32xf32, #tpu.memory_space<vmem>>, %arg16: memref<16x32xf32, #tpu.memory_space<vmem>>) attributes {dimension_semantics = [], scalar_prefetch = 0 : i64, scratch_operands = 0 : i64, tpu.core_type = #tpu.core_type<tc>} {
    %c0 = arith.constant 0 : index
    %c0_0 = arith.constant 0 : index
    %0 = vector.load %arg0[%c0, %c0_0] : memref<16x32xf32, #tpu.memory_space<vmem>>, vector<16x32xf32>
    %c0_1 = arith.constant 0 : index
    %c0_2 = arith.constant 0 : index
    %1 = vector.load %arg2[%c0_1, %c0_2] : memref<1x32xf32, #tpu.memory_space<vmem>>, vector<1x32xf32>
    %c0_3 = arith.constant 0 : index
    %c0_4 = arith.constant 0 : index
    %2 = vector.load %arg3[%c0_3, %c0_4] : memref<1x32xf32, #tpu.memory_space<vmem>>, vector<1x32xf32>
    %cst = arith.constant dense<0.000000e+00> : vector<16xf32>
    %3 = vector.multi_reduction <add>, %0, %cst [1] : vector<16x32xf32> to vector<16xf32>
    %4 = vector.shape_cast %3 : vector<16xf32> to vector<16x1xf32>
    %cst_5 = arith.constant 3.200000e+01 : f32
    %5 = vector.broadcast %cst_5 : f32 to vector<16x1xf32>
    %6 = arith.divf %4, %5 : vector<16x1xf32>
    %7 = vector.broadcast %6 : vector<16x1xf32> to vector<16x32xf32>
    %8 = arith.subf %0, %7 : vector<16x32xf32>
    %9 = arith.mulf %8, %8 : vector<16x32xf32>
    %cst_6 = arith.constant dense<0.000000e+00> : vector<16xf32>
    %10 = vector.multi_reduction <add>, %9, %cst_6 [1] : vector<16x32xf32> to vector<16xf32>
    %11 = vector.shape_cast %10 : vector<16xf32> to vector<16x1xf32>
    %cst_7 = arith.constant 3.200000e+01 : f32
    %12 = vector.broadcast %cst_7 : f32 to vector<16x1xf32>
    %13 = arith.divf %11, %12 : vector<16x1xf32>
    %14 = vector.broadcast %6 : vector<16x1xf32> to vector<16x32xf32>
    %15 = arith.subf %0, %14 : vector<16x32xf32>
    %cst_8 = arith.constant 9.99999996E-13 : f32
    %16 = vector.broadcast %cst_8 : f32 to vector<16x1xf32>
    %17 = arith.addf %13, %16 : vector<16x1xf32>
    %18 = math.rsqrt %17 : vector<16x1xf32>
    %19 = vector.broadcast %18 : vector<16x1xf32> to vector<16x32xf32>
    %20 = arith.mulf %15, %19 : vector<16x32xf32>
    %21 = vector.broadcast %1 : vector<1x32xf32> to vector<16x32xf32>
    %22 = arith.mulf %20, %21 : vector<16x32xf32>
    %23 = vector.broadcast %2 : vector<1x32xf32> to vector<16x32xf32>
    %24 = arith.addf %22, %23 : vector<16x32xf32>
    %c0_9 = arith.constant 0 : index
    %c0_10 = arith.constant 0 : index
    %c0_11 = arith.constant 0 : index
    %25 = vector.load %arg1[%c0_9, %c0_10, %c0_11] : memref<2x8x8xf32, #tpu.memory_space<vmem>>, vector<2x8x8xf32>
    %c0_12 = arith.constant 0 : index
    %c0_13 = arith.constant 0 : index
    %c0_14 = arith.constant 0 : index
    %26 = vector.load %arg4[%c0_12, %c0_13, %c0_14] : memref<2x32x96xf32, #tpu.memory_space<vmem>>, vector<1x32x96xf32>
    %27 = vector.shape_cast %26 : vector<1x32x96xf32> to vector<32x96xf32>
    %28 = arith.truncf %24 : vector<16x32xf32> to vector<16x32xbf16>
    %29 = arith.truncf %27 : vector<32x96xf32> to vector<32x96xbf16>
    %cst_15 = arith.constant dense<0.000000e+00> : vector<16x96xf32>
    %30 = tpu.matmul %28, %29, %cst_15 {dimension_numbers = #tpu.dot_dimension_numbers<[1], [0], [0], [1], [0, 0, 1, 1], [], []>} : vector<16x32xbf16>, vector<32x96xbf16>, vector<16x96xf32> -> vector<16x96xf32>
    %c0_16 = arith.constant 0 : index
    %c0_17 = arith.constant 0 : index
    %c0_18 = arith.constant 0 : index
    %31 = vector.load %arg5[%c0_16, %c0_17, %c0_18] : memref<2x1x96xf32, #tpu.memory_space<vmem>>, vector<1x1x96xf32>
    %32 = vector.shape_cast %31 : vector<1x1x96xf32> to vector<1x96xf32>
    %33 = vector.broadcast %32 : vector<1x96xf32> to vector<16x96xf32>
    %34 = arith.addf %30, %33 : vector<16x96xf32>
    %c0_19 = arith.constant 0 : index
    %c0_20 = arith.constant 0 : index
    %c0_21 = arith.constant 0 : index
    %35 = vector.load %arg6[%c0_19, %c0_20, %c0_21] : memref<2x32x32xf32, #tpu.memory_space<vmem>>, vector<1x32x32xf32>
    %36 = vector.shape_cast %35 : vector<1x32x32xf32> to vector<32x32xf32>
    %cst_22 = arith.constant 0.000000e+00 : f32
    %37 = vector.broadcast %cst_22 : f32 to vector<16x32xf32>
    %38 = vector.extract_strided_slice %34 {offsets = [0, 0], sizes = [16, 8], strides = [1, 1]} : vector<16x96xf32> to vector<16x8xf32>
    %39 = vector.shape_cast %38 : vector<16x8xf32> to vector<2x8x8xf32>
    %40 = vector.extract_strided_slice %34 {offsets = [0, 32], sizes = [16, 8], strides = [1, 1]} : vector<16x96xf32> to vector<16x8xf32>
    %41 = vector.shape_cast %40 : vector<16x8xf32> to vector<2x8x8xf32>
    %42 = vector.extract_strided_slice %34 {offsets = [0, 64], sizes = [16, 8], strides = [1, 1]} : vector<16x96xf32> to vector<16x8xf32>
    %43 = vector.shape_cast %42 : vector<16x8xf32> to vector<2x8x8xf32>
    %44 = arith.truncf %39 : vector<2x8x8xf32> to vector<2x8x8xbf16>
    %45 = arith.truncf %41 : vector<2x8x8xf32> to vector<2x8x8xbf16>
    "tpu.trace_start"() <{level = 10 : i32, message = "bqd,bkd->bqk"}> : () -> ()
    %cst_23 = arith.constant dense<0.000000e+00> : vector<2x8x8xf32>
    %46 = tpu.matmul %44, %45, %cst_23 {dimension_numbers = #tpu.dot_dimension_numbers<[2], [2], [1], [1], [0, 0, 0, 1, 1, 1], [0], [0]>} : vector<2x8x8xbf16>, vector<2x8x8xbf16>, vector<2x8x8xf32> -> vector<2x8x8xf32>
    "tpu.trace_stop"() : () -> ()
    %cst_24 = arith.constant 0.353553385 : f32
    %47 = vector.broadcast %cst_24 : f32 to vector<2x8x8xf32>
    %48 = arith.mulf %46, %47 : vector<2x8x8xf32>
    %49 = arith.addf %48, %25 : vector<2x8x8xf32>
    %cst_25 = arith.constant dense<0xFF800000> : vector<2x8xf32>
    %50 = vector.multi_reduction <maximumf>, %49, %cst_25 [2] : vector<2x8x8xf32> to vector<2x8xf32>
    %51 = vector.shape_cast %50 : vector<2x8xf32> to vector<2x8x1xf32>
    %52 = vector.broadcast %51 : vector<2x8x1xf32> to vector<2x8x8xf32>
    %53 = arith.subf %49, %52 : vector<2x8x8xf32>
    %54 = math.exp %53 : vector<2x8x8xf32>
    %cst_26 = arith.constant dense<0.000000e+00> : vector<2x8xf32>
    %55 = vector.multi_reduction <add>, %54, %cst_26 [2] : vector<2x8x8xf32> to vector<2x8xf32>
    %56 = vector.shape_cast %55 : vector<2x8xf32> to vector<2x8x1xf32>
    %57 = vector.broadcast %56 : vector<2x8x1xf32> to vector<2x8x8xf32>
    %58 = arith.divf %54, %57 : vector<2x8x8xf32>
    %59 = arith.truncf %58 : vector<2x8x8xf32> to vector<2x8x8xbf16>
    %60 = arith.truncf %43 : vector<2x8x8xf32> to vector<2x8x8xbf16>
    "tpu.trace_start"() <{level = 10 : i32, message = "bqk,bkd->bqd"}> : () -> ()
    %cst_27 = arith.constant dense<0.000000e+00> : vector<2x8x8xf32>
    %61 = tpu.matmul %59, %60, %cst_27 {dimension_numbers = #tpu.dot_dimension_numbers<[2], [1], [1], [2], [0, 0, 0, 1, 1, 2], [0], [0]>} : vector<2x8x8xbf16>, vector<2x8x8xbf16>, vector<2x8x8xf32> -> vector<2x8x8xf32>
    "tpu.trace_stop"() : () -> ()
    %62 = vector.shape_cast %61 : vector<2x8x8xf32> to vector<16x8xf32>
    %63 = vector.extract_strided_slice %36 {offsets = [0, 0], sizes = [8, 32], strides = [1, 1]} : vector<32x32xf32> to vector<8x32xf32>
    %64 = arith.truncf %62 : vector<16x8xf32> to vector<16x8xbf16>
    %65 = arith.truncf %63 : vector<8x32xf32> to vector<8x32xbf16>
    %cst_28 = arith.constant dense<0.000000e+00> : vector<16x32xf32>
    %66 = tpu.matmul %64, %65, %cst_28 {dimension_numbers = #tpu.dot_dimension_numbers<[1], [0], [0], [1], [0, 0, 1, 1], [], []>} : vector<16x8xbf16>, vector<8x32xbf16>, vector<16x32xf32> -> vector<16x32xf32>
    %67 = arith.addf %37, %66 : vector<16x32xf32>
    %68 = vector.extract_strided_slice %34 {offsets = [0, 8], sizes = [16, 8], strides = [1, 1]} : vector<16x96xf32> to vector<16x8xf32>
    %69 = vector.shape_cast %68 : vector<16x8xf32> to vector<2x8x8xf32>
    %70 = vector.extract_strided_slice %34 {offsets = [0, 40], sizes = [16, 8], strides = [1, 1]} : vector<16x96xf32> to vector<16x8xf32>
    %71 = vector.shape_cast %70 : vector<16x8xf32> to vector<2x8x8xf32>
    %72 = vector.extract_strided_slice %34 {offsets = [0, 72], sizes = [16, 8], strides = [1, 1]} : vector<16x96xf32> to vector<16x8xf32>
    %73 = vector.shape_cast %72 : vector<16x8xf32> to vector<2x8x8xf32>
    %74 = arith.truncf %69 : vector<2x8x8xf32> to vector<2x8x8xbf16>
    %75 = arith.truncf %71 : vector<2x8x8xf32> to vector<2x8x8xbf16>
    "tpu.trace_start"() <{level = 10 : i32, message = "bqd,bkd->bqk"}> : () -> ()
    %cst_29 = arith.constant dense<0.000000e+00> : vector<2x8x8xf32>
    %76 = tpu.matmul %74, %75, %cst_29 {dimension_numbers = #tpu.dot_dimension_numbers<[2], [2], [1], [1], [0, 0, 0, 1, 1, 1], [0], [0]>} : vector<2x8x8xbf16>, vector<2x8x8xbf16>, vector<2x8x8xf32> -> vector<2x8x8xf32>
    "tpu.trace_stop"() : () -> ()
    %cst_30 = arith.constant 0.353553385 : f32
    %77 = vector.broadcast %cst_30 : f32 to vector<2x8x8xf32>
    %78 = arith.mulf %76, %77 : vector<2x8x8xf32>
    %79 = arith.addf %78, %25 : vector<2x8x8xf32>
    %cst_31 = arith.constant dense<0xFF800000> : vector<2x8xf32>
    %80 = vector.multi_reduction <maximumf>, %79, %cst_31 [2] : vector<2x8x8xf32> to vector<2x8xf32>
    %81 = vector.shape_cast %80 : vector<2x8xf32> to vector<2x8x1xf32>
    %82 = vector.broadcast %81 : vector<2x8x1xf32> to vector<2x8x8xf32>
    %83 = arith.subf %79, %82 : vector<2x8x8xf32>
    %84 = math.exp %83 : vector<2x8x8xf32>
    %cst_32 = arith.constant dense<0.000000e+00> : vector<2x8xf32>
    %85 = vector.multi_reduction <add>, %84, %cst_32 [2] : vector<2x8x8xf32> to vector<2x8xf32>
    %86 = vector.shape_cast %85 : vector<2x8xf32> to vector<2x8x1xf32>
    %87 = vector.broadcast %86 : vector<2x8x1xf32> to vector<2x8x8xf32>
    %88 = arith.divf %84, %87 : vector<2x8x8xf32>
    %89 = arith.truncf %88 : vector<2x8x8xf32> to vector<2x8x8xbf16>
    %90 = arith.truncf %73 : vector<2x8x8xf32> to vector<2x8x8xbf16>
    "tpu.trace_start"() <{level = 10 : i32, message = "bqk,bkd->bqd"}> : () -> ()
    %cst_33 = arith.constant dense<0.000000e+00> : vector<2x8x8xf32>
    %91 = tpu.matmul %89, %90, %cst_33 {dimension_numbers = #tpu.dot_dimension_numbers<[2], [1], [1], [2], [0, 0, 0, 1, 1, 2], [0], [0]>} : vector<2x8x8xbf16>, vector<2x8x8xbf16>, vector<2x8x8xf32> -> vector<2x8x8xf32>
    "tpu.trace_stop"() : () -> ()
    %92 = vector.shape_cast %91 : vector<2x8x8xf32> to vector<16x8xf32>
    %93 = vector.extract_strided_slice %36 {offsets = [8, 0], sizes = [8, 32], strides = [1, 1]} : vector<32x32xf32> to vector<8x32xf32>
    %94 = arith.truncf %92 : vector<16x8xf32> to vector<16x8xbf16>
    %95 = arith.truncf %93 : vector<8x32xf32> to vector<8x32xbf16>
    %cst_34 = arith.constant dense<0.000000e+00> : vector<16x32xf32>
    %96 = tpu.matmul %94, %95, %cst_34 {dimension_numbers = #tpu.dot_dimension_numbers<[1], [0], [0], [1], [0, 0, 1, 1], [], []>} : vector<16x8xbf16>, vector<8x32xbf16>, vector<16x32xf32> -> vector<16x32xf32>
    %97 = arith.addf %67, %96 : vector<16x32xf32>
    %98 = vector.extract_strided_slice %34 {offsets = [0, 16], sizes = [16, 8], strides = [1, 1]} : vector<16x96xf32> to vector<16x8xf32>
    %99 = vector.shape_cast %98 : vector<16x8xf32> to vector<2x8x8xf32>
    %100 = vector.extract_strided_slice %34 {offsets = [0, 48], sizes = [16, 8], strides = [1, 1]} : vector<16x96xf32> to vector<16x8xf32>
    %101 = vector.shape_cast %100 : vector<16x8xf32> to vector<2x8x8xf32>
    %102 = vector.extract_strided_slice %34 {offsets = [0, 80], sizes = [16, 8], strides = [1, 1]} : vector<16x96xf32> to vector<16x8xf32>
    %103 = vector.shape_cast %102 : vector<16x8xf32> to vector<2x8x8xf32>
    %104 = arith.truncf %99 : vector<2x8x8xf32> to vector<2x8x8xbf16>
    %105 = arith.truncf %101 : vector<2x8x8xf32> to vector<2x8x8xbf16>
    "tpu.trace_start"() <{level = 10 : i32, message = "bqd,bkd->bqk"}> : () -> ()
    %cst_35 = arith.constant dense<0.000000e+00> : vector<2x8x8xf32>
    %106 = tpu.matmul %104, %105, %cst_35 {dimension_numbers = #tpu.dot_dimension_numbers<[2], [2], [1], [1], [0, 0, 0, 1, 1, 1], [0], [0]>} : vector<2x8x8xbf16>, vector<2x8x8xbf16>, vector<2x8x8xf32> -> vector<2x8x8xf32>
    "tpu.trace_stop"() : () -> ()
    %cst_36 = arith.constant 0.353553385 : f32
    %107 = vector.broadcast %cst_36 : f32 to vector<2x8x8xf32>
    %108 = arith.mulf %106, %107 : vector<2x8x8xf32>
    %109 = arith.addf %108, %25 : vector<2x8x8xf32>
    %cst_37 = arith.constant dense<0xFF800000> : vector<2x8xf32>
    %110 = vector.multi_reduction <maximumf>, %109, %cst_37 [2] : vector<2x8x8xf32> to vector<2x8xf32>
    %111 = vector.shape_cast %110 : vector<2x8xf32> to vector<2x8x1xf32>
    %112 = vector.broadcast %111 : vector<2x8x1xf32> to vector<2x8x8xf32>
    %113 = arith.subf %109, %112 : vector<2x8x8xf32>
    %114 = math.exp %113 : vector<2x8x8xf32>
    %cst_38 = arith.constant dense<0.000000e+00> : vector<2x8xf32>
    %115 = vector.multi_reduction <add>, %114, %cst_38 [2] : vector<2x8x8xf32> to vector<2x8xf32>
    %116 = vector.shape_cast %115 : vector<2x8xf32> to vector<2x8x1xf32>
    %117 = vector.broadcast %116 : vector<2x8x1xf32> to vector<2x8x8xf32>
    %118 = arith.divf %114, %117 : vector<2x8x8xf32>
    %119 = arith.truncf %118 : vector<2x8x8xf32> to vector<2x8x8xbf16>
    %120 = arith.truncf %103 : vector<2x8x8xf32> to vector<2x8x8xbf16>
    "tpu.trace_start"() <{level = 10 : i32, message = "bqk,bkd->bqd"}> : () -> ()
    %cst_39 = arith.constant dense<0.000000e+00> : vector<2x8x8xf32>
    %121 = tpu.matmul %119, %120, %cst_39 {dimension_numbers = #tpu.dot_dimension_numbers<[2], [1], [1], [2], [0, 0, 0, 1, 1, 2], [0], [0]>} : vector<2x8x8xbf16>, vector<2x8x8xbf16>, vector<2x8x8xf32> -> vector<2x8x8xf32>
    "tpu.trace_stop"() : () -> ()
    %122 = vector.shape_cast %121 : vector<2x8x8xf32> to vector<16x8xf32>
    %123 = vector.extract_strided_slice %36 {offsets = [16, 0], sizes = [8, 32], strides = [1, 1]} : vector<32x32xf32> to vector<8x32xf32>
    %124 = arith.truncf %122 : vector<16x8xf32> to vector<16x8xbf16>
    %125 = arith.truncf %123 : vector<8x32xf32> to vector<8x32xbf16>
    %cst_40 = arith.constant dense<0.000000e+00> : vector<16x32xf32>
    %126 = tpu.matmul %124, %125, %cst_40 {dimension_numbers = #tpu.dot_dimension_numbers<[1], [0], [0], [1], [0, 0, 1, 1], [], []>} : vector<16x8xbf16>, vector<8x32xbf16>, vector<16x32xf32> -> vector<16x32xf32>
    %127 = arith.addf %97, %126 : vector<16x32xf32>
    %128 = vector.extract_strided_slice %34 {offsets = [0, 24], sizes = [16, 8], strides = [1, 1]} : vector<16x96xf32> to vector<16x8xf32>
    %129 = vector.shape_cast %128 : vector<16x8xf32> to vector<2x8x8xf32>
    %130 = vector.extract_strided_slice %34 {offsets = [0, 56], sizes = [16, 8], strides = [1, 1]} : vector<16x96xf32> to vector<16x8xf32>
    %131 = vector.shape_cast %130 : vector<16x8xf32> to vector<2x8x8xf32>
    %132 = vector.extract_strided_slice %34 {offsets = [0, 88], sizes = [16, 8], strides = [1, 1]} : vector<16x96xf32> to vector<16x8xf32>
    %133 = vector.shape_cast %132 : vector<16x8xf32> to vector<2x8x8xf32>
    %134 = arith.truncf %129 : vector<2x8x8xf32> to vector<2x8x8xbf16>
    %135 = arith.truncf %131 : vector<2x8x8xf32> to vector<2x8x8xbf16>
    "tpu.trace_start"() <{level = 10 : i32, message = "bqd,bkd->bqk"}> : () -> ()
    %cst_41 = arith.constant dense<0.000000e+00> : vector<2x8x8xf32>
    %136 = tpu.matmul %134, %135, %cst_41 {dimension_numbers = #tpu.dot_dimension_numbers<[2], [2], [1], [1], [0, 0, 0, 1, 1, 1], [0], [0]>} : vector<2x8x8xbf16>, vector<2x8x8xbf16>, vector<2x8x8xf32> -> vector<2x8x8xf32>
    "tpu.trace_stop"() : () -> ()
    %cst_42 = arith.constant 0.353553385 : f32
    %137 = vector.broadcast %cst_42 : f32 to vector<2x8x8xf32>
    %138 = arith.mulf %136, %137 : vector<2x8x8xf32>
    %139 = arith.addf %138, %25 : vector<2x8x8xf32>
    %cst_43 = arith.constant dense<0xFF800000> : vector<2x8xf32>
    %140 = vector.multi_reduction <maximumf>, %139, %cst_43 [2] : vector<2x8x8xf32> to vector<2x8xf32>
    %141 = vector.shape_cast %140 : vector<2x8xf32> to vector<2x8x1xf32>
    %142 = vector.broadcast %141 : vector<2x8x1xf32> to vector<2x8x8xf32>
    %143 = arith.subf %139, %142 : vector<2x8x8xf32>
    %144 = math.exp %143 : vector<2x8x8xf32>
    %cst_44 = arith.constant dense<0.000000e+00> : vector<2x8xf32>
    %145 = vector.multi_reduction <add>, %144, %cst_44 [2] : vector<2x8x8xf32> to vector<2x8xf32>
    %146 = vector.shape_cast %145 : vector<2x8xf32> to vector<2x8x1xf32>
    %147 = vector.broadcast %146 : vector<2x8x1xf32> to vector<2x8x8xf32>
    %148 = arith.divf %144, %147 : vector<2x8x8xf32>
    %149 = arith.truncf %148 : vector<2x8x8xf32> to vector<2x8x8xbf16>
    %150 = arith.truncf %133 : vector<2x8x8xf32> to vector<2x8x8xbf16>
    "tpu.trace_start"() <{level = 10 : i32, message = "bqk,bkd->bqd"}> : () -> ()
    %cst_45 = arith.constant dense<0.000000e+00> : vector<2x8x8xf32>
    %151 = tpu.matmul %149, %150, %cst_45 {dimension_numbers = #tpu.dot_dimension_numbers<[2], [1], [1], [2], [0, 0, 0, 1, 1, 2], [0], [0]>} : vector<2x8x8xbf16>, vector<2x8x8xbf16>, vector<2x8x8xf32> -> vector<2x8x8xf32>
    "tpu.trace_stop"() : () -> ()
    %152 = vector.shape_cast %151 : vector<2x8x8xf32> to vector<16x8xf32>
    %153 = vector.extract_strided_slice %36 {offsets = [24, 0], sizes = [8, 32], strides = [1, 1]} : vector<32x32xf32> to vector<8x32xf32>
    %154 = arith.truncf %152 : vector<16x8xf32> to vector<16x8xbf16>
    %155 = arith.truncf %153 : vector<8x32xf32> to vector<8x32xbf16>
    %cst_46 = arith.constant dense<0.000000e+00> : vector<16x32xf32>
    %156 = tpu.matmul %154, %155, %cst_46 {dimension_numbers = #tpu.dot_dimension_numbers<[1], [0], [0], [1], [0, 0, 1, 1], [], []>} : vector<16x8xbf16>, vector<8x32xbf16>, vector<16x32xf32> -> vector<16x32xf32>
    %157 = arith.addf %127, %156 : vector<16x32xf32>
    %c0_47 = arith.constant 0 : index
    %c0_48 = arith.constant 0 : index
    %c0_49 = arith.constant 0 : index
    %158 = vector.load %arg7[%c0_47, %c0_48, %c0_49] : memref<2x1x32xf32, #tpu.memory_space<vmem>>, vector<1x1x32xf32>
    %159 = vector.shape_cast %158 : vector<1x1x32xf32> to vector<1x32xf32>
    %160 = vector.broadcast %159 : vector<1x32xf32> to vector<16x32xf32>
    %161 = arith.addf %157, %160 : vector<16x32xf32>
    %162 = arith.addf %161, %24 : vector<16x32xf32>
    %c0_50 = arith.constant 0 : index
    %c0_51 = arith.constant 0 : index
    %c0_52 = arith.constant 0 : index
    %163 = vector.load %arg8[%c0_50, %c0_51, %c0_52] : memref<2x1x32xf32, #tpu.memory_space<vmem>>, vector<1x1x32xf32>
    %164 = vector.shape_cast %163 : vector<1x1x32xf32> to vector<1x32xf32>
    %c0_53 = arith.constant 0 : index
    %c0_54 = arith.constant 0 : index
    %c0_55 = arith.constant 0 : index
    %165 = vector.load %arg9[%c0_53, %c0_54, %c0_55] : memref<2x1x32xf32, #tpu.memory_space<vmem>>, vector<1x1x32xf32>
    %166 = vector.shape_cast %165 : vector<1x1x32xf32> to vector<1x32xf32>
    %cst_56 = arith.constant dense<0.000000e+00> : vector<16xf32>
    %167 = vector.multi_reduction <add>, %162, %cst_56 [1] : vector<16x32xf32> to vector<16xf32>
    %168 = vector.shape_cast %167 : vector<16xf32> to vector<16x1xf32>
    %cst_57 = arith.constant 3.200000e+01 : f32
    %169 = vector.broadcast %cst_57 : f32 to vector<16x1xf32>
    %170 = arith.divf %168, %169 : vector<16x1xf32>
    %171 = vector.broadcast %170 : vector<16x1xf32> to vector<16x32xf32>
    %172 = arith.subf %162, %171 : vector<16x32xf32>
    %173 = arith.mulf %172, %172 : vector<16x32xf32>
    %cst_58 = arith.constant dense<0.000000e+00> : vector<16xf32>
    %174 = vector.multi_reduction <add>, %173, %cst_58 [1] : vector<16x32xf32> to vector<16xf32>
    %175 = vector.shape_cast %174 : vector<16xf32> to vector<16x1xf32>
    %cst_59 = arith.constant 3.200000e+01 : f32
    %176 = vector.broadcast %cst_59 : f32 to vector<16x1xf32>
    %177 = arith.divf %175, %176 : vector<16x1xf32>
    %178 = vector.broadcast %170 : vector<16x1xf32> to vector<16x32xf32>
    %179 = arith.subf %162, %178 : vector<16x32xf32>
    %cst_60 = arith.constant 9.99999996E-13 : f32
    %180 = vector.broadcast %cst_60 : f32 to vector<16x1xf32>
    %181 = arith.addf %177, %180 : vector<16x1xf32>
    %182 = math.rsqrt %181 : vector<16x1xf32>
    %183 = vector.broadcast %182 : vector<16x1xf32> to vector<16x32xf32>
    %184 = arith.mulf %179, %183 : vector<16x32xf32>
    %185 = vector.broadcast %164 : vector<1x32xf32> to vector<16x32xf32>
    %186 = arith.mulf %184, %185 : vector<16x32xf32>
    %187 = vector.broadcast %166 : vector<1x32xf32> to vector<16x32xf32>
    %188 = arith.addf %186, %187 : vector<16x32xf32>
    %c0_61 = arith.constant 0 : index
    %c0_62 = arith.constant 0 : index
    %c0_63 = arith.constant 0 : index
    %189 = vector.load %arg10[%c0_61, %c0_62, %c0_63] : memref<2x32x64xf32, #tpu.memory_space<vmem>>, vector<1x32x64xf32>
    %190 = vector.shape_cast %189 : vector<1x32x64xf32> to vector<32x64xf32>
    %191 = arith.truncf %188 : vector<16x32xf32> to vector<16x32xbf16>
    %192 = arith.truncf %190 : vector<32x64xf32> to vector<32x64xbf16>
    %cst_64 = arith.constant dense<0.000000e+00> : vector<16x64xf32>
    %193 = tpu.matmul %191, %192, %cst_64 {dimension_numbers = #tpu.dot_dimension_numbers<[1], [0], [0], [1], [0, 0, 1, 1], [], []>} : vector<16x32xbf16>, vector<32x64xbf16>, vector<16x64xf32> -> vector<16x64xf32>
    %c0_65 = arith.constant 0 : index
    %c0_66 = arith.constant 0 : index
    %c0_67 = arith.constant 0 : index
    %194 = vector.load %arg11[%c0_65, %c0_66, %c0_67] : memref<2x1x64xf32, #tpu.memory_space<vmem>>, vector<1x1x64xf32>
    %195 = vector.shape_cast %194 : vector<1x1x64xf32> to vector<1x64xf32>
    %196 = vector.broadcast %195 : vector<1x64xf32> to vector<16x64xf32>
    %197 = arith.addf %193, %196 : vector<16x64xf32>
    %cst_68 = arith.constant 5.000000e-01 : f32
    %198 = vector.broadcast %cst_68 : f32 to vector<16x64xf32>
    %199 = arith.mulf %198, %197 : vector<16x64xf32>
    %cst_69 = arith.constant 4.471500e-02 : f32
    %200 = vector.broadcast %cst_69 : f32 to vector<16x64xf32>
    %201 = arith.mulf %200, %197 : vector<16x64xf32>
    %202 = arith.mulf %201, %197 : vector<16x64xf32>
    %203 = arith.mulf %202, %197 : vector<16x64xf32>
    %204 = arith.addf %197, %203 : vector<16x64xf32>
    %cst_70 = arith.constant 0.797884583 : f32
    %205 = vector.broadcast %cst_70 : f32 to vector<16x64xf32>
    %206 = arith.mulf %205, %204 : vector<16x64xf32>
    %207 = math.tanh %206 : vector<16x64xf32>
    %cst_71 = arith.constant 1.000000e+00 : f32
    %208 = vector.broadcast %cst_71 : f32 to vector<16x64xf32>
    %209 = arith.addf %208, %207 : vector<16x64xf32>
    %210 = arith.mulf %199, %209 : vector<16x64xf32>
    %c0_72 = arith.constant 0 : index
    %c0_73 = arith.constant 0 : index
    %c0_74 = arith.constant 0 : index
    %211 = vector.load %arg12[%c0_72, %c0_73, %c0_74] : memref<2x64x32xf32, #tpu.memory_space<vmem>>, vector<1x64x32xf32>
    %212 = vector.shape_cast %211 : vector<1x64x32xf32> to vector<64x32xf32>
    %213 = arith.truncf %210 : vector<16x64xf32> to vector<16x64xbf16>
    %214 = arith.truncf %212 : vector<64x32xf32> to vector<64x32xbf16>
    %cst_75 = arith.constant dense<0.000000e+00> : vector<16x32xf32>
    %215 = tpu.matmul %213, %214, %cst_75 {dimension_numbers = #tpu.dot_dimension_numbers<[1], [0], [0], [1], [0, 0, 1, 1], [], []>} : vector<16x64xbf16>, vector<64x32xbf16>, vector<16x32xf32> -> vector<16x32xf32>
    %c0_76 = arith.constant 0 : index
    %c0_77 = arith.constant 0 : index
    %c0_78 = arith.constant 0 : index
    %216 = vector.load %arg13[%c0_76, %c0_77, %c0_78] : memref<2x1x32xf32, #tpu.memory_space<vmem>>, vector<1x1x32xf32>
    %217 = vector.shape_cast %216 : vector<1x1x32xf32> to vector<1x32xf32>
    %218 = vector.broadcast %217 : vector<1x32xf32> to vector<16x32xf32>
    %219 = arith.addf %215, %218 : vector<16x32xf32>
    %220 = arith.addf %219, %188 : vector<16x32xf32>
    %c0_79 = arith.constant 0 : index
    %c0_80 = arith.constant 0 : index
    %c0_81 = arith.constant 0 : index
    %221 = vector.load %arg14[%c0_79, %c0_80, %c0_81] : memref<2x1x32xf32, #tpu.memory_space<vmem>>, vector<1x1x32xf32>
    %222 = vector.shape_cast %221 : vector<1x1x32xf32> to vector<1x32xf32>
    %c0_82 = arith.constant 0 : index
    %c0_83 = arith.constant 0 : index
    %c0_84 = arith.constant 0 : index
    %223 = vector.load %arg15[%c0_82, %c0_83, %c0_84] : memref<2x1x32xf32, #tpu.memory_space<vmem>>, vector<1x1x32xf32>
    %224 = vector.shape_cast %223 : vector<1x1x32xf32> to vector<1x32xf32>
    %cst_85 = arith.constant dense<0.000000e+00> : vector<16xf32>
    %225 = vector.multi_reduction <add>, %220, %cst_85 [1] : vector<16x32xf32> to vector<16xf32>
    %226 = vector.shape_cast %225 : vector<16xf32> to vector<16x1xf32>
    %cst_86 = arith.constant 3.200000e+01 : f32
    %227 = vector.broadcast %cst_86 : f32 to vector<16x1xf32>
    %228 = arith.divf %226, %227 : vector<16x1xf32>
    %229 = vector.broadcast %228 : vector<16x1xf32> to vector<16x32xf32>
    %230 = arith.subf %220, %229 : vector<16x32xf32>
    %231 = arith.mulf %230, %230 : vector<16x32xf32>
    %cst_87 = arith.constant dense<0.000000e+00> : vector<16xf32>
    %232 = vector.multi_reduction <add>, %231, %cst_87 [1] : vector<16x32xf32> to vector<16xf32>
    %233 = vector.shape_cast %232 : vector<16xf32> to vector<16x1xf32>
    %cst_88 = arith.constant 3.200000e+01 : f32
    %234 = vector.broadcast %cst_88 : f32 to vector<16x1xf32>
    %235 = arith.divf %233, %234 : vector<16x1xf32>
    %236 = vector.broadcast %228 : vector<16x1xf32> to vector<16x32xf32>
    %237 = arith.subf %220, %236 : vector<16x32xf32>
    %cst_89 = arith.constant 9.99999996E-13 : f32
    %238 = vector.broadcast %cst_89 : f32 to vector<16x1xf32>
    %239 = arith.addf %235, %238 : vector<16x1xf32>
    %240 = math.rsqrt %239 : vector<16x1xf32>
    %241 = vector.broadcast %240 : vector<16x1xf32> to vector<16x32xf32>
    %242 = arith.mulf %237, %241 : vector<16x32xf32>
    %243 = vector.broadcast %222 : vector<1x32xf32> to vector<16x32xf32>
    %244 = arith.mulf %242, %243 : vector<16x32xf32>
    %245 = vector.broadcast %224 : vector<1x32xf32> to vector<16x32xf32>
    %246 = arith.addf %244, %245 : vector<16x32xf32>
    %c1 = arith.constant 1 : index
    %c0_90 = arith.constant 0 : index
    %c0_91 = arith.constant 0 : index
    %247 = vector.load %arg4[%c1, %c0_90, %c0_91] : memref<2x32x96xf32, #tpu.memory_space<vmem>>, vector<1x32x96xf32>
    %248 = vector.shape_cast %247 : vector<1x32x96xf32> to vector<32x96xf32>
    %249 = arith.truncf %246 : vector<16x32xf32> to vector<16x32xbf16>
    %250 = arith.truncf %248 : vector<32x96xf32> to vector<32x96xbf16>
    %cst_92 = arith.constant dense<0.000000e+00> : vector<16x96xf32>
    %251 = tpu.matmul %249, %250, %cst_92 {dimension_numbers = #tpu.dot_dimension_numbers<[1], [0], [0], [1], [0, 0, 1, 1], [], []>} : vector<16x32xbf16>, vector<32x96xbf16>, vector<16x96xf32> -> vector<16x96xf32>
    %c1_93 = arith.constant 1 : index
    %c0_94 = arith.constant 0 : index
    %c0_95 = arith.constant 0 : index
    %252 = vector.load %arg5[%c1_93, %c0_94, %c0_95] : memref<2x1x96xf32, #tpu.memory_space<vmem>>, vector<1x1x96xf32>
    %253 = vector.shape_cast %252 : vector<1x1x96xf32> to vector<1x96xf32>
    %254 = vector.broadcast %253 : vector<1x96xf32> to vector<16x96xf32>
    %255 = arith.addf %251, %254 : vector<16x96xf32>
    %c1_96 = arith.constant 1 : index
    %c0_97 = arith.constant 0 : index
    %c0_98 = arith.constant 0 : index
    %256 = vector.load %arg6[%c1_96, %c0_97, %c0_98] : memref<2x32x32xf32, #tpu.memory_space<vmem>>, vector<1x32x32xf32>
    %257 = vector.shape_cast %256 : vector<1x32x32xf32> to vector<32x32xf32>
    %cst_99 = arith.constant 0.000000e+00 : f32
    %258 = vector.broadcast %cst_99 : f32 to vector<16x32xf32>
    %259 = vector.extract_strided_slice %255 {offsets = [0, 0], sizes = [16, 8], strides = [1, 1]} : vector<16x96xf32> to vector<16x8xf32>
    %260 = vector.shape_cast %259 : vector<16x8xf32> to vector<2x8x8xf32>
    %261 = vector.extract_strided_slice %255 {offsets = [0, 32], sizes = [16, 8], strides = [1, 1]} : vector<16x96xf32> to vector<16x8xf32>
    %262 = vector.shape_cast %261 : vector<16x8xf32> to vector<2x8x8xf32>
    %263 = vector.extract_strided_slice %255 {offsets = [0, 64], sizes = [16, 8], strides = [1, 1]} : vector<16x96xf32> to vector<16x8xf32>
    %264 = vector.shape_cast %263 : vector<16x8xf32> to vector<2x8x8xf32>
    %265 = arith.truncf %260 : vector<2x8x8xf32> to vector<2x8x8xbf16>
    %266 = arith.truncf %262 : vector<2x8x8xf32> to vector<2x8x8xbf16>
    "tpu.trace_start"() <{level = 10 : i32, message = "bqd,bkd->bqk"}> : () -> ()
    %cst_100 = arith.constant dense<0.000000e+00> : vector<2x8x8xf32>
    %267 = tpu.matmul %265, %266, %cst_100 {dimension_numbers = #tpu.dot_dimension_numbers<[2], [2], [1], [1], [0, 0, 0, 1, 1, 1], [0], [0]>} : vector<2x8x8xbf16>, vector<2x8x8xbf16>, vector<2x8x8xf32> -> vector<2x8x8xf32>
    "tpu.trace_stop"() : () -> ()
    %cst_101 = arith.constant 0.353553385 : f32
    %268 = vector.broadcast %cst_101 : f32 to vector<2x8x8xf32>
    %269 = arith.mulf %267, %268 : vector<2x8x8xf32>
    %270 = arith.addf %269, %25 : vector<2x8x8xf32>
    %cst_102 = arith.constant dense<0xFF800000> : vector<2x8xf32>
    %271 = vector.multi_reduction <maximumf>, %270, %cst_102 [2] : vector<2x8x8xf32> to vector<2x8xf32>
    %272 = vector.shape_cast %271 : vector<2x8xf32> to vector<2x8x1xf32>
    %273 = vector.broadcast %272 : vector<2x8x1xf32> to vector<2x8x8xf32>
    %274 = arith.subf %270, %273 : vector<2x8x8xf32>
    %275 = math.exp %274 : vector<2x8x8xf32>
    %cst_103 = arith.constant dense<0.000000e+00> : vector<2x8xf32>
    %276 = vector.multi_reduction <add>, %275, %cst_103 [2] : vector<2x8x8xf32> to vector<2x8xf32>
    %277 = vector.shape_cast %276 : vector<2x8xf32> to vector<2x8x1xf32>
    %278 = vector.broadcast %277 : vector<2x8x1xf32> to vector<2x8x8xf32>
    %279 = arith.divf %275, %278 : vector<2x8x8xf32>
    %280 = arith.truncf %279 : vector<2x8x8xf32> to vector<2x8x8xbf16>
    %281 = arith.truncf %264 : vector<2x8x8xf32> to vector<2x8x8xbf16>
    "tpu.trace_start"() <{level = 10 : i32, message = "bqk,bkd->bqd"}> : () -> ()
    %cst_104 = arith.constant dense<0.000000e+00> : vector<2x8x8xf32>
    %282 = tpu.matmul %280, %281, %cst_104 {dimension_numbers = #tpu.dot_dimension_numbers<[2], [1], [1], [2], [0, 0, 0, 1, 1, 2], [0], [0]>} : vector<2x8x8xbf16>, vector<2x8x8xbf16>, vector<2x8x8xf32> -> vector<2x8x8xf32>
    "tpu.trace_stop"() : () -> ()
    %283 = vector.shape_cast %282 : vector<2x8x8xf32> to vector<16x8xf32>
    %284 = vector.extract_strided_slice %257 {offsets = [0, 0], sizes = [8, 32], strides = [1, 1]} : vector<32x32xf32> to vector<8x32xf32>
    %285 = arith.truncf %283 : vector<16x8xf32> to vector<16x8xbf16>
    %286 = arith.truncf %284 : vector<8x32xf32> to vector<8x32xbf16>
    %cst_105 = arith.constant dense<0.000000e+00> : vector<16x32xf32>
    %287 = tpu.matmul %285, %286, %cst_105 {dimension_numbers = #tpu.dot_dimension_numbers<[1], [0], [0], [1], [0, 0, 1, 1], [], []>} : vector<16x8xbf16>, vector<8x32xbf16>, vector<16x32xf32> -> vector<16x32xf32>
    %288 = arith.addf %258, %287 : vector<16x32xf32>
    %289 = vector.extract_strided_slice %255 {offsets = [0, 8], sizes = [16, 8], strides = [1, 1]} : vector<16x96xf32> to vector<16x8xf32>
    %290 = vector.shape_cast %289 : vector<16x8xf32> to vector<2x8x8xf32>
    %291 = vector.extract_strided_slice %255 {offsets = [0, 40], sizes = [16, 8], strides = [1, 1]} : vector<16x96xf32> to vector<16x8xf32>
    %292 = vector.shape_cast %291 : vector<16x8xf32> to vector<2x8x8xf32>
    %293 = vector.extract_strided_slice %255 {offsets = [0, 72], sizes = [16, 8], strides = [1, 1]} : vector<16x96xf32> to vector<16x8xf32>
    %294 = vector.shape_cast %293 : vector<16x8xf32> to vector<2x8x8xf32>
    %295 = arith.truncf %290 : vector<2x8x8xf32> to vector<2x8x8xbf16>
    %296 = arith.truncf %292 : vector<2x8x8xf32> to vector<2x8x8xbf16>
    "tpu.trace_start"() <{level = 10 : i32, message = "bqd,bkd->bqk"}> : () -> ()
    %cst_106 = arith.constant dense<0.000000e+00> : vector<2x8x8xf32>
    %297 = tpu.matmul %295, %296, %cst_106 {dimension_numbers = #tpu.dot_dimension_numbers<[2], [2], [1], [1], [0, 0, 0, 1, 1, 1], [0], [0]>} : vector<2x8x8xbf16>, vector<2x8x8xbf16>, vector<2x8x8xf32> -> vector<2x8x8xf32>
    "tpu.trace_stop"() : () -> ()
    %cst_107 = arith.constant 0.353553385 : f32
    %298 = vector.broadcast %cst_107 : f32 to vector<2x8x8xf32>
    %299 = arith.mulf %297, %298 : vector<2x8x8xf32>
    %300 = arith.addf %299, %25 : vector<2x8x8xf32>
    %cst_108 = arith.constant dense<0xFF800000> : vector<2x8xf32>
    %301 = vector.multi_reduction <maximumf>, %300, %cst_108 [2] : vector<2x8x8xf32> to vector<2x8xf32>
    %302 = vector.shape_cast %301 : vector<2x8xf32> to vector<2x8x1xf32>
    %303 = vector.broadcast %302 : vector<2x8x1xf32> to vector<2x8x8xf32>
    %304 = arith.subf %300, %303 : vector<2x8x8xf32>
    %305 = math.exp %304 : vector<2x8x8xf32>
    %cst_109 = arith.constant dense<0.000000e+00> : vector<2x8xf32>
    %306 = vector.multi_reduction <add>, %305, %cst_109 [2] : vector<2x8x8xf32> to vector<2x8xf32>
    %307 = vector.shape_cast %306 : vector<2x8xf32> to vector<2x8x1xf32>
    %308 = vector.broadcast %307 : vector<2x8x1xf32> to vector<2x8x8xf32>
    %309 = arith.divf %305, %308 : vector<2x8x8xf32>
    %310 = arith.truncf %309 : vector<2x8x8xf32> to vector<2x8x8xbf16>
    %311 = arith.truncf %294 : vector<2x8x8xf32> to vector<2x8x8xbf16>
    "tpu.trace_start"() <{level = 10 : i32, message = "bqk,bkd->bqd"}> : () -> ()
    %cst_110 = arith.constant dense<0.000000e+00> : vector<2x8x8xf32>
    %312 = tpu.matmul %310, %311, %cst_110 {dimension_numbers = #tpu.dot_dimension_numbers<[2], [1], [1], [2], [0, 0, 0, 1, 1, 2], [0], [0]>} : vector<2x8x8xbf16>, vector<2x8x8xbf16>, vector<2x8x8xf32> -> vector<2x8x8xf32>
    "tpu.trace_stop"() : () -> ()
    %313 = vector.shape_cast %312 : vector<2x8x8xf32> to vector<16x8xf32>
    %314 = vector.extract_strided_slice %257 {offsets = [8, 0], sizes = [8, 32], strides = [1, 1]} : vector<32x32xf32> to vector<8x32xf32>
    %315 = arith.truncf %313 : vector<16x8xf32> to vector<16x8xbf16>
    %316 = arith.truncf %314 : vector<8x32xf32> to vector<8x32xbf16>
    %cst_111 = arith.constant dense<0.000000e+00> : vector<16x32xf32>
    %317 = tpu.matmul %315, %316, %cst_111 {dimension_numbers = #tpu.dot_dimension_numbers<[1], [0], [0], [1], [0, 0, 1, 1], [], []>} : vector<16x8xbf16>, vector<8x32xbf16>, vector<16x32xf32> -> vector<16x32xf32>
    %318 = arith.addf %288, %317 : vector<16x32xf32>
    %319 = vector.extract_strided_slice %255 {offsets = [0, 16], sizes = [16, 8], strides = [1, 1]} : vector<16x96xf32> to vector<16x8xf32>
    %320 = vector.shape_cast %319 : vector<16x8xf32> to vector<2x8x8xf32>
    %321 = vector.extract_strided_slice %255 {offsets = [0, 48], sizes = [16, 8], strides = [1, 1]} : vector<16x96xf32> to vector<16x8xf32>
    %322 = vector.shape_cast %321 : vector<16x8xf32> to vector<2x8x8xf32>
    %323 = vector.extract_strided_slice %255 {offsets = [0, 80], sizes = [16, 8], strides = [1, 1]} : vector<16x96xf32> to vector<16x8xf32>
    %324 = vector.shape_cast %323 : vector<16x8xf32> to vector<2x8x8xf32>
    %325 = arith.truncf %320 : vector<2x8x8xf32> to vector<2x8x8xbf16>
    %326 = arith.truncf %322 : vector<2x8x8xf32> to vector<2x8x8xbf16>
    "tpu.trace_start"() <{level = 10 : i32, message = "bqd,bkd->bqk"}> : () -> ()
    %cst_112 = arith.constant dense<0.000000e+00> : vector<2x8x8xf32>
    %327 = tpu.matmul %325, %326, %cst_112 {dimension_numbers = #tpu.dot_dimension_numbers<[2], [2], [1], [1], [0, 0, 0, 1, 1, 1], [0], [0]>} : vector<2x8x8xbf16>, vector<2x8x8xbf16>, vector<2x8x8xf32> -> vector<2x8x8xf32>
    "tpu.trace_stop"() : () -> ()
    %cst_113 = arith.constant 0.353553385 : f32
    %328 = vector.broadcast %cst_113 : f32 to vector<2x8x8xf32>
    %329 = arith.mulf %327, %328 : vector<2x8x8xf32>
    %330 = arith.addf %329, %25 : vector<2x8x8xf32>
    %cst_114 = arith.constant dense<0xFF800000> : vector<2x8xf32>
    %331 = vector.multi_reduction <maximumf>, %330, %cst_114 [2] : vector<2x8x8xf32> to vector<2x8xf32>
    %332 = vector.shape_cast %331 : vector<2x8xf32> to vector<2x8x1xf32>
    %333 = vector.broadcast %332 : vector<2x8x1xf32> to vector<2x8x8xf32>
    %334 = arith.subf %330, %333 : vector<2x8x8xf32>
    %335 = math.exp %334 : vector<2x8x8xf32>
    %cst_115 = arith.constant dense<0.000000e+00> : vector<2x8xf32>
    %336 = vector.multi_reduction <add>, %335, %cst_115 [2] : vector<2x8x8xf32> to vector<2x8xf32>
    %337 = vector.shape_cast %336 : vector<2x8xf32> to vector<2x8x1xf32>
    %338 = vector.broadcast %337 : vector<2x8x1xf32> to vector<2x8x8xf32>
    %339 = arith.divf %335, %338 : vector<2x8x8xf32>
    %340 = arith.truncf %339 : vector<2x8x8xf32> to vector<2x8x8xbf16>
    %341 = arith.truncf %324 : vector<2x8x8xf32> to vector<2x8x8xbf16>
    "tpu.trace_start"() <{level = 10 : i32, message = "bqk,bkd->bqd"}> : () -> ()
    %cst_116 = arith.constant dense<0.000000e+00> : vector<2x8x8xf32>
    %342 = tpu.matmul %340, %341, %cst_116 {dimension_numbers = #tpu.dot_dimension_numbers<[2], [1], [1], [2], [0, 0, 0, 1, 1, 2], [0], [0]>} : vector<2x8x8xbf16>, vector<2x8x8xbf16>, vector<2x8x8xf32> -> vector<2x8x8xf32>
    "tpu.trace_stop"() : () -> ()
    %343 = vector.shape_cast %342 : vector<2x8x8xf32> to vector<16x8xf32>
    %344 = vector.extract_strided_slice %257 {offsets = [16, 0], sizes = [8, 32], strides = [1, 1]} : vector<32x32xf32> to vector<8x32xf32>
    %345 = arith.truncf %343 : vector<16x8xf32> to vector<16x8xbf16>
    %346 = arith.truncf %344 : vector<8x32xf32> to vector<8x32xbf16>
    %cst_117 = arith.constant dense<0.000000e+00> : vector<16x32xf32>
    %347 = tpu.matmul %345, %346, %cst_117 {dimension_numbers = #tpu.dot_dimension_numbers<[1], [0], [0], [1], [0, 0, 1, 1], [], []>} : vector<16x8xbf16>, vector<8x32xbf16>, vector<16x32xf32> -> vector<16x32xf32>
    %348 = arith.addf %318, %347 : vector<16x32xf32>
    %349 = vector.extract_strided_slice %255 {offsets = [0, 24], sizes = [16, 8], strides = [1, 1]} : vector<16x96xf32> to vector<16x8xf32>
    %350 = vector.shape_cast %349 : vector<16x8xf32> to vector<2x8x8xf32>
    %351 = vector.extract_strided_slice %255 {offsets = [0, 56], sizes = [16, 8], strides = [1, 1]} : vector<16x96xf32> to vector<16x8xf32>
    %352 = vector.shape_cast %351 : vector<16x8xf32> to vector<2x8x8xf32>
    %353 = vector.extract_strided_slice %255 {offsets = [0, 88], sizes = [16, 8], strides = [1, 1]} : vector<16x96xf32> to vector<16x8xf32>
    %354 = vector.shape_cast %353 : vector<16x8xf32> to vector<2x8x8xf32>
    %355 = arith.truncf %350 : vector<2x8x8xf32> to vector<2x8x8xbf16>
    %356 = arith.truncf %352 : vector<2x8x8xf32> to vector<2x8x8xbf16>
    "tpu.trace_start"() <{level = 10 : i32, message = "bqd,bkd->bqk"}> : () -> ()
    %cst_118 = arith.constant dense<0.000000e+00> : vector<2x8x8xf32>
    %357 = tpu.matmul %355, %356, %cst_118 {dimension_numbers = #tpu.dot_dimension_numbers<[2], [2], [1], [1], [0, 0, 0, 1, 1, 1], [0], [0]>} : vector<2x8x8xbf16>, vector<2x8x8xbf16>, vector<2x8x8xf32> -> vector<2x8x8xf32>
    "tpu.trace_stop"() : () -> ()
    %cst_119 = arith.constant 0.353553385 : f32
    %358 = vector.broadcast %cst_119 : f32 to vector<2x8x8xf32>
    %359 = arith.mulf %357, %358 : vector<2x8x8xf32>
    %360 = arith.addf %359, %25 : vector<2x8x8xf32>
    %cst_120 = arith.constant dense<0xFF800000> : vector<2x8xf32>
    %361 = vector.multi_reduction <maximumf>, %360, %cst_120 [2] : vector<2x8x8xf32> to vector<2x8xf32>
    %362 = vector.shape_cast %361 : vector<2x8xf32> to vector<2x8x1xf32>
    %363 = vector.broadcast %362 : vector<2x8x1xf32> to vector<2x8x8xf32>
    %364 = arith.subf %360, %363 : vector<2x8x8xf32>
    %365 = math.exp %364 : vector<2x8x8xf32>
    %cst_121 = arith.constant dense<0.000000e+00> : vector<2x8xf32>
    %366 = vector.multi_reduction <add>, %365, %cst_121 [2] : vector<2x8x8xf32> to vector<2x8xf32>
    %367 = vector.shape_cast %366 : vector<2x8xf32> to vector<2x8x1xf32>
    %368 = vector.broadcast %367 : vector<2x8x1xf32> to vector<2x8x8xf32>
    %369 = arith.divf %365, %368 : vector<2x8x8xf32>
    %370 = arith.truncf %369 : vector<2x8x8xf32> to vector<2x8x8xbf16>
    %371 = arith.truncf %354 : vector<2x8x8xf32> to vector<2x8x8xbf16>
    "tpu.trace_start"() <{level = 10 : i32, message = "bqk,bkd->bqd"}> : () -> ()
    %cst_122 = arith.constant dense<0.000000e+00> : vector<2x8x8xf32>
    %372 = tpu.matmul %370, %371, %cst_122 {dimension_numbers = #tpu.dot_dimension_numbers<[2], [1], [1], [2], [0, 0, 0, 1, 1, 2], [0], [0]>} : vector<2x8x8xbf16>, vector<2x8x8xbf16>, vector<2x8x8xf32> -> vector<2x8x8xf32>
    "tpu.trace_stop"() : () -> ()
    %373 = vector.shape_cast %372 : vector<2x8x8xf32> to vector<16x8xf32>
    %374 = vector.extract_strided_slice %257 {offsets = [24, 0], sizes = [8, 32], strides = [1, 1]} : vector<32x32xf32> to vector<8x32xf32>
    %375 = arith.truncf %373 : vector<16x8xf32> to vector<16x8xbf16>
    %376 = arith.truncf %374 : vector<8x32xf32> to vector<8x32xbf16>
    %cst_123 = arith.constant dense<0.000000e+00> : vector<16x32xf32>
    %377 = tpu.matmul %375, %376, %cst_123 {dimension_numbers = #tpu.dot_dimension_numbers<[1], [0], [0], [1], [0, 0, 1, 1], [], []>} : vector<16x8xbf16>, vector<8x32xbf16>, vector<16x32xf32> -> vector<16x32xf32>
    %378 = arith.addf %348, %377 : vector<16x32xf32>
    %c1_124 = arith.constant 1 : index
    %c0_125 = arith.constant 0 : index
    %c0_126 = arith.constant 0 : index
    %379 = vector.load %arg7[%c1_124, %c0_125, %c0_126] : memref<2x1x32xf32, #tpu.memory_space<vmem>>, vector<1x1x32xf32>
    %380 = vector.shape_cast %379 : vector<1x1x32xf32> to vector<1x32xf32>
    %381 = vector.broadcast %380 : vector<1x32xf32> to vector<16x32xf32>
    %382 = arith.addf %378, %381 : vector<16x32xf32>
    %383 = arith.addf %382, %246 : vector<16x32xf32>
    %c1_127 = arith.constant 1 : index
    %c0_128 = arith.constant 0 : index
    %c0_129 = arith.constant 0 : index
    %384 = vector.load %arg8[%c1_127, %c0_128, %c0_129] : memref<2x1x32xf32, #tpu.memory_space<vmem>>, vector<1x1x32xf32>
    %385 = vector.shape_cast %384 : vector<1x1x32xf32> to vector<1x32xf32>
    %c1_130 = arith.constant 1 : index
    %c0_131 = arith.constant 0 : index
    %c0_132 = arith.constant 0 : index
    %386 = vector.load %arg9[%c1_130, %c0_131, %c0_132] : memref<2x1x32xf32, #tpu.memory_space<vmem>>, vector<1x1x32xf32>
    %387 = vector.shape_cast %386 : vector<1x1x32xf32> to vector<1x32xf32>
    %cst_133 = arith.constant dense<0.000000e+00> : vector<16xf32>
    %388 = vector.multi_reduction <add>, %383, %cst_133 [1] : vector<16x32xf32> to vector<16xf32>
    %389 = vector.shape_cast %388 : vector<16xf32> to vector<16x1xf32>
    %cst_134 = arith.constant 3.200000e+01 : f32
    %390 = vector.broadcast %cst_134 : f32 to vector<16x1xf32>
    %391 = arith.divf %389, %390 : vector<16x1xf32>
    %392 = vector.broadcast %391 : vector<16x1xf32> to vector<16x32xf32>
    %393 = arith.subf %383, %392 : vector<16x32xf32>
    %394 = arith.mulf %393, %393 : vector<16x32xf32>
    %cst_135 = arith.constant dense<0.000000e+00> : vector<16xf32>
    %395 = vector.multi_reduction <add>, %394, %cst_135 [1] : vector<16x32xf32> to vector<16xf32>
    %396 = vector.shape_cast %395 : vector<16xf32> to vector<16x1xf32>
    %cst_136 = arith.constant 3.200000e+01 : f32
    %397 = vector.broadcast %cst_136 : f32 to vector<16x1xf32>
    %398 = arith.divf %396, %397 : vector<16x1xf32>
    %399 = vector.broadcast %391 : vector<16x1xf32> to vector<16x32xf32>
    %400 = arith.subf %383, %399 : vector<16x32xf32>
    %cst_137 = arith.constant 9.99999996E-13 : f32
    %401 = vector.broadcast %cst_137 : f32 to vector<16x1xf32>
    %402 = arith.addf %398, %401 : vector<16x1xf32>
    %403 = math.rsqrt %402 : vector<16x1xf32>
    %404 = vector.broadcast %403 : vector<16x1xf32> to vector<16x32xf32>
    %405 = arith.mulf %400, %404 : vector<16x32xf32>
    %406 = vector.broadcast %385 : vector<1x32xf32> to vector<16x32xf32>
    %407 = arith.mulf %405, %406 : vector<16x32xf32>
    %408 = vector.broadcast %387 : vector<1x32xf32> to vector<16x32xf32>
    %409 = arith.addf %407, %408 : vector<16x32xf32>
    %c1_138 = arith.constant 1 : index
    %c0_139 = arith.constant 0 : index
    %c0_140 = arith.constant 0 : index
    %410 = vector.load %arg10[%c1_138, %c0_139, %c0_140] : memref<2x32x64xf32, #tpu.memory_space<vmem>>, vector<1x32x64xf32>
    %411 = vector.shape_cast %410 : vector<1x32x64xf32> to vector<32x64xf32>
    %412 = arith.truncf %409 : vector<16x32xf32> to vector<16x32xbf16>
    %413 = arith.truncf %411 : vector<32x64xf32> to vector<32x64xbf16>
    %cst_141 = arith.constant dense<0.000000e+00> : vector<16x64xf32>
    %414 = tpu.matmul %412, %413, %cst_141 {dimension_numbers = #tpu.dot_dimension_numbers<[1], [0], [0], [1], [0, 0, 1, 1], [], []>} : vector<16x32xbf16>, vector<32x64xbf16>, vector<16x64xf32> -> vector<16x64xf32>
    %c1_142 = arith.constant 1 : index
    %c0_143 = arith.constant 0 : index
    %c0_144 = arith.constant 0 : index
    %415 = vector.load %arg11[%c1_142, %c0_143, %c0_144] : memref<2x1x64xf32, #tpu.memory_space<vmem>>, vector<1x1x64xf32>
    %416 = vector.shape_cast %415 : vector<1x1x64xf32> to vector<1x64xf32>
    %417 = vector.broadcast %416 : vector<1x64xf32> to vector<16x64xf32>
    %418 = arith.addf %414, %417 : vector<16x64xf32>
    %cst_145 = arith.constant 5.000000e-01 : f32
    %419 = vector.broadcast %cst_145 : f32 to vector<16x64xf32>
    %420 = arith.mulf %419, %418 : vector<16x64xf32>
    %cst_146 = arith.constant 4.471500e-02 : f32
    %421 = vector.broadcast %cst_146 : f32 to vector<16x64xf32>
    %422 = arith.mulf %421, %418 : vector<16x64xf32>
    %423 = arith.mulf %422, %418 : vector<16x64xf32>
    %424 = arith.mulf %423, %418 : vector<16x64xf32>
    %425 = arith.addf %418, %424 : vector<16x64xf32>
    %cst_147 = arith.constant 0.797884583 : f32
    %426 = vector.broadcast %cst_147 : f32 to vector<16x64xf32>
    %427 = arith.mulf %426, %425 : vector<16x64xf32>
    %428 = math.tanh %427 : vector<16x64xf32>
    %cst_148 = arith.constant 1.000000e+00 : f32
    %429 = vector.broadcast %cst_148 : f32 to vector<16x64xf32>
    %430 = arith.addf %429, %428 : vector<16x64xf32>
    %431 = arith.mulf %420, %430 : vector<16x64xf32>
    %c1_149 = arith.constant 1 : index
    %c0_150 = arith.constant 0 : index
    %c0_151 = arith.constant 0 : index
    %432 = vector.load %arg12[%c1_149, %c0_150, %c0_151] : memref<2x64x32xf32, #tpu.memory_space<vmem>>, vector<1x64x32xf32>
    %433 = vector.shape_cast %432 : vector<1x64x32xf32> to vector<64x32xf32>
    %434 = arith.truncf %431 : vector<16x64xf32> to vector<16x64xbf16>
    %435 = arith.truncf %433 : vector<64x32xf32> to vector<64x32xbf16>
    %cst_152 = arith.constant dense<0.000000e+00> : vector<16x32xf32>
    %436 = tpu.matmul %434, %435, %cst_152 {dimension_numbers = #tpu.dot_dimension_numbers<[1], [0], [0], [1], [0, 0, 1, 1], [], []>} : vector<16x64xbf16>, vector<64x32xbf16>, vector<16x32xf32> -> vector<16x32xf32>
    %c1_153 = arith.constant 1 : index
    %c0_154 = arith.constant 0 : index
    %c0_155 = arith.constant 0 : index
    %437 = vector.load %arg13[%c1_153, %c0_154, %c0_155] : memref<2x1x32xf32, #tpu.memory_space<vmem>>, vector<1x1x32xf32>
    %438 = vector.shape_cast %437 : vector<1x1x32xf32> to vector<1x32xf32>
    %439 = vector.broadcast %438 : vector<1x32xf32> to vector<16x32xf32>
    %440 = arith.addf %436, %439 : vector<16x32xf32>
    %441 = arith.addf %440, %409 : vector<16x32xf32>
    %c1_156 = arith.constant 1 : index
    %c0_157 = arith.constant 0 : index
    %c0_158 = arith.constant 0 : index
    %442 = vector.load %arg14[%c1_156, %c0_157, %c0_158] : memref<2x1x32xf32, #tpu.memory_space<vmem>>, vector<1x1x32xf32>
    %443 = vector.shape_cast %442 : vector<1x1x32xf32> to vector<1x32xf32>
    %c1_159 = arith.constant 1 : index
    %c0_160 = arith.constant 0 : index
    %c0_161 = arith.constant 0 : index
    %444 = vector.load %arg15[%c1_159, %c0_160, %c0_161] : memref<2x1x32xf32, #tpu.memory_space<vmem>>, vector<1x1x32xf32>
    %445 = vector.shape_cast %444 : vector<1x1x32xf32> to vector<1x32xf32>
    %cst_162 = arith.constant dense<0.000000e+00> : vector<16xf32>
    %446 = vector.multi_reduction <add>, %441, %cst_162 [1] : vector<16x32xf32> to vector<16xf32>
    %447 = vector.shape_cast %446 : vector<16xf32> to vector<16x1xf32>
    %cst_163 = arith.constant 3.200000e+01 : f32
    %448 = vector.broadcast %cst_163 : f32 to vector<16x1xf32>
    %449 = arith.divf %447, %448 : vector<16x1xf32>
    %450 = vector.broadcast %449 : vector<16x1xf32> to vector<16x32xf32>
    %451 = arith.subf %441, %450 : vector<16x32xf32>
    %452 = arith.mulf %451, %451 : vector<16x32xf32>
    %cst_164 = arith.constant dense<0.000000e+00> : vector<16xf32>
    %453 = vector.multi_reduction <add>, %452, %cst_164 [1] : vector<16x32xf32> to vector<16xf32>
    %454 = vector.shape_cast %453 : vector<16xf32> to vector<16x1xf32>
    %cst_165 = arith.constant 3.200000e+01 : f32
    %455 = vector.broadcast %cst_165 : f32 to vector<16x1xf32>
    %456 = arith.divf %454, %455 : vector<16x1xf32>
    %457 = vector.broadcast %449 : vector<16x1xf32> to vector<16x32xf32>
    %458 = arith.subf %441, %457 : vector<16x32xf32>
    %cst_166 = arith.constant 9.99999996E-13 : f32
    %459 = vector.broadcast %cst_166 : f32 to vector<16x1xf32>
    %460 = arith.addf %456, %459 : vector<16x1xf32>
    %461 = math.rsqrt %460 : vector<16x1xf32>
    %462 = vector.broadcast %461 : vector<16x1xf32> to vector<16x32xf32>
    %463 = arith.mulf %458, %462 : vector<16x32xf32>
    %464 = vector.broadcast %443 : vector<1x32xf32> to vector<16x32xf32>
    %465 = arith.mulf %463, %464 : vector<16x32xf32>
    %466 = vector.broadcast %445 : vector<1x32xf32> to vector<16x32xf32>
    %467 = arith.addf %465, %466 : vector<16x32xf32>
    %c0_167 = arith.constant 0 : index
    %c0_168 = arith.constant 0 : index
    %468 = vector.load %arg16[%c0_167, %c0_168] : memref<16x32xf32, #tpu.memory_space<vmem>>, vector<16x32xf32>
    tpu.vector_store %arg16[%c0_167, %c0_168], %467 {strides = array<i32>} : memref<16x32xf32, #tpu.memory_space<vmem>>, vector<16x32xf32>,
    return
  }
}

</mosaic_0001>

<bundles_post_ra>
// kernel: multi_output_bert_forward.3
= control target key start
LH: loop header
LB: loop body
LE: loop exit
PB: predicated region body
PF: predicated region fallthrough
CT: control target
= control target key end

     0   :  { %v173_v0 = vmov 0.0   ;;  %vm174_vm0 = vmmov 0   ;;  %vm36_vm1 = vcmask 261120   ;;  %s243_s1 = inlined_call_operand.vmem [shape: f32[32,32], index: 1, kind: input, shape index: {}]   ;;  %s244_s0 = inlined_call_operand.vmem [shape: f32[2,32], index: 0, kind: input, shape index: {}]   ;;  %s245_s3 = inlined_call_operand.vmem [shape: f32[32,128], index: 3, kind: input, shape index: {}]   ;;  %s246_s2 = inlined_call_operand.vmem [shape: f32[1,32], index: 2, kind: input, shape index: {}]   ;;  %s247_s4 = inlined_call_operand.vmem [shape: f32[1,128], index: 4, kind: input, shape index: {}]   ;;  %s248_s5 = inlined_call_operand.vmem [shape: f32[2,128], index: 5, kind: output, shape index: {}]  }
   0x1   :  { %153 = vmatprep.subr.bf16.mxu0 %v173_v0  ;;  %v22_v1 = vld [vmem:[%s243_s1] sm:$0xff]  ;;  %v23_v2 = vld [vmem:[%s243_s1 + $0x8] sm:$0xff]  ;;  %v24_v3 = vld [vmem:[%s243_s1 + $0x10] sm:$0xff]  ;;  %157 = vmatprep.mubr.msk.bf16.mxu0 %vm174_vm0, %v173_v0 }
   0x2   :  { %v27_v4 = vpack.c.bf16 %v23_v2, %v22_v1  ;;  %v25_v5 = vld [vmem:[%s243_s1 + $0x18] sm:$0xff]  ;;  %161 = vmatprep.subr.bf16.mxu1 %v173_v0  ;;  %165 = vmatprep.mubr.msk.bf16.mxu1 %vm174_vm0, %v173_v0  ;;  %v21_v7 = vld [vmem:[%s244_s0] sm:$0x3]  ;;  %v82_v10 = vld [vmem:[%s245_s3 + $0x8] sm:$0xff] }
   0x3   :  { %v28_v6 = vpack.c.bf16 %v25_v5, %v24_v3  ;;  %v26_v8 = vpack.c.bf16 %v21_v7, %v21_v7  ;;  %v81_v9 = vld [vmem:[%s245_s3] sm:$0xff]  ;;  %v83_v12 = vld [vmem:[%s245_s3 + $0x10] sm:$0xff]  ;;  %v84_v13 = vld [vmem:[%s245_s3 + $0x18] sm:$0xff] }
   0x4   :  { %154 = vmatpush3.bf16.msra.mxu0 %v27_v4  ;;  %v86_v11 = vpack.c.bf16 %v82_v10, %v81_v9  ;;  %v87_v14 = vpack.c.bf16 %v84_v13, %v83_v12  ;;  %v143_v15 = vld [vmem:[%s246_s2] ss:$0 sm:$0xff] }
   0x5   :  { %155 = vmatprep.subr.bf16.mxu0 %v173_v0  ;;  %v145_v23 = vld [vmem:[%s247_s4] ss:$0 sm:$0xff] }
   0x6   :  { %162 = vmatpush3.bf16.msra.mxu1 %v86_v11 }
   0x7   :  { %163 = vmatprep.subr.bf16.mxu1 %v173_v0 }
   0x8   :  { %156 = vmatpush3.bf16.msra.mxu0 %v28_v6 }
   0xa   :  { %164 = vmatpush3.bf16.msra.mxu1 %v87_v14 }
   0xb   :  { %158 = vmatmul.mubr.msk.bf16.vlgmr.msra.gmra.mrb[0].mxu0 %vm36_vm1, %v26_v8 }
  0xde   :  { %v74_v16 = vpop.f32.mrb[0].mxu0 }
  0xdf   :  { %v75_v17 = vadd.f32 %v143_v15, %v74_v16  ;;  %v159_v18 = vpop.f32.mrb[1].mxu0 }
  0xe0   :  { %v77_v19 = vpop.f32.mrb[2].mxu0 }
  0xe1   :  { %171 = vtanh.f32 %v75_v17  ;;  %v160_v20 = vpop.f32.mrb[3].mxu0 }
  0xeb   :  { %v172_v21 = vpop.eup %171 }
  0xec   :  { %v85_v22 = vpack.c.bf16 %v172_v21, %v172_v21 }
  0xee   :  { %166 = vmatmul.mubr.msk.bf16.vlgmr.msra.gmra.mrb[0].mxu1 %vm36_vm1, %v85_v22 }
 0x1c1   :  { %v132_v24 = vpop.f32.mrb[0].mxu1 }
 0x1c2   :  { %v133_v25 = vadd.f32 %v145_v23, %v132_v24  ;;  %v167_v26 = vpop.f32.mrb[1].mxu1 }
 0x1c3   :  { %v135_v27 = vpop.f32.mrb[2].mxu1 }
 0x1c4   :  { %138 = vst [vmem:[%s248_s5] sm:$0x3] %v133_v25  ;;  %v168_v28 = vpop.f32.mrb[3].mxu1 }

// kernel: multi_output_bert_forward.2
= control target key start
LH: loop header
LB: loop body
LE: loop exit
PB: predicated region body
PF: predicated region fallthrough
CT: control target
= control target key end

     0   :  { %vm58_vm0 = vcmask 261120   ;;  %v3520_v17 = vmov 0.0   ;;  %vm3521_vm1 = vmmov 0   ;;  %vm171_vm2 = vcmask 64512   ;;  %s3523_s28 = smov 64   ;;  %s3524_s29 = smov 88   ;;  %s4291_s0 = inlined_call_operand.vmem [shape: f32[16,32], index: 0, kind: input, shape index: {}]   ;;  %s4292_s4 = inlined_call_operand.vmem [shape: f32[2,32,96], index: 4, kind: input, shape index: {}]   ;;  %s4293_s2 = inlined_call_operand.vmem [shape: f32[1,32], index: 2, kind: input, shape index: {}]   ;;  %s4294_s3 = inlined_call_operand.vmem [shape: f32[1,32], index: 3, kind: input, shape index: {}]   ;;  %s4295_s5 = inlined_call_operand.vmem [shape: f32[2,1,96], index: 5, kind: input, shape index: {}]   ;;  %s4296_s1 = inlined_call_operand.vmem [shape: f32[2,8,8], index: 1, kind: input, shape index: {}]   ;;  %s4297_s6 = inlined_call_operand.vmem [shape: f32[2,32,32], index: 6, kind: input, shape index: {}]   ;;  %s4298_s7 = inlined_call_operand.vmem [shape: f32[2,1,32], index: 7, kind: input, shape index: {}]   ;;  %s4299_s10 = inlined_call_operand.vmem [shape: f32[2,32,64], index: 10, kind: input, shape index: {}]   ;;  %s4300_s8 = inlined_call_operand.vmem [shape: f32[2,1,32], index: 8, kind: input, shape index: {}]   ;;  %s4301_s9 = inlined_call_operand.vmem [shape: f32[2,1,32], index: 9, kind: input, shape index: {}]   ;;  %s4302_s12 = inlined_call_operand.vmem [shape: f32[2,64,32], index: 12, kind: input, shape index: {}]   ;;  %s4303_s11 = inlined_call_operand.vmem [shape: f32[2,1,64], index: 11, kind: input, shape index: {}]   ;;  %s4304_s13 = inlined_call_operand.vmem [shape: f32[2,1,32], index: 13, kind: input, shape index: {}]   ;;  %s4305_s14 = inlined_call_operand.vmem [shape: f32[2,1,32], index: 14, kind: input, shape index: {}]   ;;  %s4306_s15 = inlined_call_operand.vmem [shape: f32[2,1,32], index: 15, kind: input, shape index: {}]   ;;  %s4307_s16 = inlined_call_operand.vmem [shape: f32[16,32], index: 16, kind: output, shape index: {}]  }
   0x1   :  { %4315 = sst [smem:[#allocation2_spill]] %s4291_s0  ;;  %v104_v14 = vld [vmem:[%s4292_s4] sm:$0xff]  ;;  %v105_v15 = vld [vmem:[%s4292_s4 + $0x8] sm:$0xff]  ;;  %3117 = vmatprep.subr.bf16.mxu1 %v3520_v17  ;;  %v106_v18 = vld [vmem:[%s4292_s4 + $0x10] sm:$0xff]  ;;  %3131 = vmatprep.subr.bf16.mxu0 %v3520_v17  ;;  %vm300_vm3 = vcmask 1043456   ;;  %s3525_s30 = smov 120  }
   0x2   :  { %s4316_s23 = sld [smem:[#allocation2_spill]]  ;;  %v109_v16 = vpack.c.bf16 %v105_v15, %v104_v14  ;;  %v107_v19 = vld [vmem:[%s4292_s4 + $0x18] sm:$0xff]  ;;  %3121 = vmatprep.mubr.msk.bf16.mxu1 %vm3521_vm1, %v3520_v17  ;;  %3133 = vmatprep.mubr.msk.bf16.mxu0 %vm3521_vm1, %v3520_v17  ;;  %v2923_v29 = vld [vmem:[%s4293_s2] ss:$0 sm:$0xff]  ;;  %v3694_v57 = vld [vmem:[%s4296_s1 + $0x8] sm:$0xff]  ;;  %s3526_s0 = smov 56  }
   0x3   :  { %v110_v20 = vpack.c.bf16 %v107_v19, %v106_v18  ;;  %v2924_v33 = vld [vmem:[%s4294_s3] ss:$0 sm:$0xff]  ;;  %s3522_s3 = smov 96   ;;  %s3527_s17 = smov 80   ;;  %vm1415_vm4 = vcmask 523264  }
   0x4   :  { %3118 = vmatpush3.bf16.msra.mxu1 %v109_v16  ;;  %v2925_v38 = vld [vmem:[%s4295_s5] ss:$0 sm:$0xff]  ;;  %s3528_s18 = smov 112   ;;  %s3529_s2 = smov 48  }
   0x5   :  { %3119 = vmatprep.subr.bf16.mxu1 %v3520_v17  ;;  %v3689_v52 = vld [vmem:[%s4296_s1] sm:$0xff]  ;;  %s4311_s24 = smov 104   ;;  %s4309_s27 = smov 40  }
   0x8   :  { %v54_v0 = vld [vmem:[%s4316_s23] sm:$0xff]  ;;  %v55_v1 = vld [vmem:[%s4316_s23 + $0x8] sm:$0xff]  ;;  %3120 = vmatpush3.bf16.msra.mxu1 %v110_v20  ;;  %s4313_s23 = smov 72  }
   0x9   :  { %v59_v2 = vsel %vm58_vm0, %v54_v0, 0.0  ;;  %v62_v3 = vsel %vm58_vm0, %v55_v1, 0.0  ;;  %3125 = vmatprep.subr.bf16.mxu1 %v3520_v17 }
   0xa   :  { %60 = vadd.xlane.f32.xlu0 %v59_v2 }
   0xe   :  { %63 = vadd.xlane.f32.xlu0 %v62_v3 }
  0x97   :  { %v61_v4 = vpop.xlane.xlu0 %60 }
  0x98   :  { %v66_v5 = vmul.f32 0.03125, %v61_v4 }
  0x9a   :  { %v68_v6 = vsub.f32 %v54_v0, %v66_v5 }
  0x9b   :  { %v64_v7 = vpop.xlane.xlu0 %63 }
  0x9c   :  { %v67_v8 = vmul.f32 0.03125, %v64_v7  ;;  %v70_v9 = vmul.f32 %v68_v6, %v68_v6 }
  0x9e   :  { %v69_v10 = vsub.f32 %v55_v1, %v67_v8  ;;  %v72_v11 = vsel %vm58_vm0, %v70_v9, 0.0 }
  0x9f   :  { %73 = vadd.xlane.f32.xlu1 %v72_v11 }
  0xa0   :  { %v71_v12 = vmul.f32 %v69_v10, %v69_v10 }
  0xa2   :  { %v75_v13 = vsel %vm58_vm0, %v71_v12, 0.0 }
  0xa3   :  { %76 = vadd.xlane.f32.xlu1 %v75_v13 }
 0x12c   :  { %v74_v21 = vpop.xlane.xlu1 %73 }
 0x12d   :  { %v78_v22 = vmul.f32 0.03125, %v74_v21 }
 0x12f   :  { %v80_v23 = vadd.f32 1e-12, %v78_v22 }
 0x130   :  { %v77_v24 = vpop.xlane.xlu1 %76 }
 0x131   :  { %3426 = vrsqrt.f32 %v80_v23  ;;  %v79_v25 = vmul.f32 0.03125, %v77_v24 }
 0x133   :  { %v81_v26 = vadd.f32 1e-12, %v79_v25 }
 0x135   :  { %3428 = vrsqrt.f32 %v81_v26 }
 0x13b   :  { %v3427_v27 = vpop.eup %3426 }
 0x13c   :  { %v84_v28 = vmul.f32 %v3427_v27, %v68_v6 }
 0x13e   :  { %v92_v32 = vmul.f32 %v2923_v29, %v84_v28 }
 0x13f   :  { %v3429_v30 = vpop.eup %3428 }
 0x140   :  { %v85_v31 = vmul.f32 %v3429_v30, %v69_v10  ;;  %v3654_v35 = vadd.f32 %v2924_v33, %v92_v32 }
 0x142   :  { %v93_v34 = vmul.f32 %v2923_v29, %v85_v31 }
 0x144   :  { %v3656_v36 = vadd.f32 %v2924_v33, %v93_v34 }
 0x146   :  { %v108_v37 = vpack.c.bf16 %v3656_v36, %v3654_v35 }
 0x148   :  { %3122 = vmatmul.mubr.msk.bf16.vlgmr.msra.gmra.mrb[0].mxu1 %vm58_vm0, %v108_v37 }
 0x149   :  { %3127 = vmatprep.mubr.msk.bf16.mxu1 %vm3521_vm1, %v3520_v17 }
 0x21b   :  { %v155_v39 = vpop.f32.mrb[0].mxu1 }
 0x21c   :  { %v156_v40 = vadd.f32 %v2925_v38, %v155_v39  ;;  %v3123_v41 = vpop.f32.mrb[1].mxu1 }
 0x21d   :  { %v158_v42 = vpop.f32.mrb[2].mxu1 }
 0x21e   :  { %v3666_v43 = vpack.c.bf16 %v156_v40, %v156_v40  ;;  %v159_v44 = vadd.f32 %v2925_v38, %v158_v42  ;;  %v3124_v45 = vpop.f32.mrb[3].mxu1 }
 0x220   :  { %v3668_v46 = vpack.c.bf16 %v159_v44, %v159_v44  ;;  %169 = vrot.lane.b32.xlu0 %v3666_v43, %s3522_s3 }
 0x222   :  { %219 = vrot.lane.b32.xlu1 %v3668_v46, %s3522_s3 }
 0x292   :  { %v170_v47 = vpop.permute.xlu0 %169 }
 0x293   :  { %v176_v48 = vsel %vm171_vm2, %v170_v47, 0 }
 0x294   :  { %3126 = vmatpush3.bf16.xpose.msra.mxu1 %v176_v48  ;;  %v220_v49 = vpop.permute.xlu1 %219 }
 0x295   :  { %v225_v50 = vsel %vm171_vm2, %v220_v49, 0  ;;  %3137 = vmatprep.subr.bf16.mxu1 %v3520_v17 }
 0x296   :  { %3132 = vmatpush3.bf16.xpose.msra.mxu0 %v225_v50 }
 0x297   :  { %3143 = vmatprep.subr.bf16.mxu0 %v3520_v17 }
 0x29b   :  { %3128 = vmatmul.mubr.msk.bf16.vlgmr.msra.gmra.mrb[4].mxu1 %vm171_vm2, %v3666_v43 }
 0x29c   :  { %3139 = vmatprep.mubr.msk.bf16.mxu1 %vm3521_vm1, %v3520_v17 }
 0x29d   :  { %3134 = vmatmul.mubr.msk.bf16.vlgmr.msra.gmra.mrb[0].mxu0 %vm171_vm2, %v3668_v46 }
 0x29e   :  { %3145 = vmatprep.mubr.msk.bf16.mxu0 %vm3521_vm1, %v3520_v17 }
 0x36e   :  { %v212_v51 = vpop.f32.mrb[4].mxu1 }
 0x36f   :  { %v267_v53 = vmul.f32 0.35355338, %v212_v51  ;;  %v3129_v54 = vpop.f32.mrb[5].mxu1 }
 0x370   :  { %v215_v55 = vpop.f32.mrb[6].mxu1  ;;  %v261_v56 = vpop.f32.mrb[0].mxu0 }
 0x371   :  { %v268_v58 = vmul.f32 0.35355338, %v261_v56  ;;  %v3130_v59 = vpop.f32.mrb[7].mxu1  ;;  %v3135_v60 = vpop.f32.mrb[1].mxu0  ;;  %v269_v61 = vadd.f32 %v267_v53, %v3689_v52 }
 0x372   :  { %v264_v62 = vpop.f32.mrb[2].mxu0 }
 0x373   :  { %v3136_v63 = vpop.f32.mrb[3].mxu0  ;;  %v271_v0 = vsel %vm171_vm2, %v269_v61, -inf  ;;  %v270_v1 = vadd.f32 %v268_v58, %v3694_v57 }
 0x374   :  { %272 = vmax.xlane.f32.xlu1 %v271_v0 }
 0x375   :  { %v274_v2 = vsel %vm171_vm2, %v270_v1, -inf }
 0x376   :  { %275 = vmax.xlane.f32.xlu0 %v274_v2 }
 0x385   :  { %344 = vrot.lane.b32.xlu1 %v3668_v46, %s3523_s28 }
 0x389   :  { %396 = vrot.lane.b32.xlu1 %v3666_v43, %s3524_s29 }
 0x401   :  { %v273_v3 = vpop.xlane.xlu1 %272 }
 0x402   :  { %v277_v4 = vsub.f32 %v269_v61, %v273_v3 }
 0x403   :  { %v276_v5 = vpop.xlane.xlu0 %275 }
 0x404   :  { %v279_v6 = vmul.f32 1.442695, %v277_v4  ;;  %v278_v7 = vsub.f32 %v270_v1, %v276_v5 }
 0x405   :  { %v345_v8 = vpop.permute.xlu1 %344 }
 0x406   :  { %3430 = vpow2.f32 %v279_v6  ;;  %v281_v9 = vmul.f32 1.442695, %v278_v7  ;;  %v350_v10 = vsel %vm300_vm3, %v345_v8, 0 }
 0x407   :  { %3144 = vmatpush3.bf16.msra.mxu0 %v350_v10 }
 0x408   :  { %3432 = vpow2.f32 %v281_v9  ;;  %3155 = vmatprep.subr.bf16.mxu0 %v3520_v17 }
 0x409   :  { %v397_v15 = vpop.permute.xlu1 %396 }
 0x40a   :  { %v402_v27 = vsel %vm171_vm2, %v397_v15, 0 }
 0x410   :  { %v3431_v11 = vpop.eup %3430 }
 0x411   :  { %v283_v12 = vsel %vm171_vm2, %v3431_v11, 0.0 }
 0x412   :  { %v3433_v13 = vpop.eup %3432  ;;  %284 = vadd.xlane.f32.xlu0 %v283_v12 }
 0x413   :  { %v286_v14 = vsel %vm171_vm2, %v3433_v13, 0.0 }
 0x414   :  { %287 = vadd.xlane.f32.xlu1 %v286_v14 }
 0x425   :  { %446 = vrot.lane.b32.xlu1 %v3668_v46, %s3524_s29 }
 0x428   :  { %295 = vrot.lane.b32.xlu0 %v3666_v43, %s3523_s28 }
 0x429   :  { %444 = vrot.lane.b32.xlu1 %v3668_v46, %s3525_s30 }
 0x42c   :  { %394 = vrot.lane.b32.xlu0 %v3666_v43, %s3525_s30 }
 0x49f   :  { %v285_v16 = vpop.xlane.xlu0 %284 }
 0x4a0   :  { %3434 = vrcp.f32 %v285_v16  ;;  %v162_v16 = vld [vmem:[%s4297_s6] sm:$0xff] }
 0x4a1   :  { %v288_v18 = vpop.xlane.xlu1 %287 }
 0x4a2   :  { %3436 = vrcp.f32 %v288_v18 }
 0x4a3   :  { %v296_v19 = vpop.permute.xlu0 %295 }
 0x4a4   :  { %v302_v20 = vsel %vm300_vm3, %v296_v19, 0 }
 0x4a5   :  { %3138 = vmatpush3.bf16.msra.mxu1 %v302_v20  ;;  %v447_v26 = vpop.permute.xlu1 %446  ;;  %v393_v20 = vpack.c.bf16 %v162_v16, %v162_v16 }
 0x4a6   :  { %3149 = vmatprep.subr.bf16.mxu1 %v3520_v17  ;;  %v452_v29 = vsel %vm171_vm2, %v447_v26, 0 }
 0x4a7   :  { %v395_v30 = vpop.permute.xlu0 %394 }
 0x4a9   :  { %v445_v31 = vpop.permute.xlu1 %444 }
 0x4aa   :  { %v3435_v21 = vpop.eup %3434 }
 0x4ab   :  { %v290_v22 = vmul.f32 %v3435_v21, %v3431_v11  ;;  %v163_v11 = vld [vmem:[%s4297_s6 + $0x8] sm:$0xff] }
 0x4ac   :  { %v3437_v23 = vpop.eup %3436  ;;  %v619_v14 = vpack.c.bf16 %v163_v11, %v163_v11 }
 0x4ad   :  { %v292_v24 = vmul.f32 %v3437_v23, %v3433_v13  ;;  %v293_v25 = vpack.c.bf16 %v290_v22, %v290_v22 }
 0x4ae   :  { %v624_v21 = vsel %vm300_vm3, %v619_v14, 0 }
 0x4af   :  { %3140 = vmatmul.mubr.msk.bf16.vlgmr.msra.gmra.mrb[8].mxu1 %vm171_vm2, %v293_v25  ;;  %v294_v28 = vpack.c.bf16 %v292_v24, %v292_v24  ;;  %v671_v25 = vsel %vm300_vm3, %v393_v20, 0 }
 0x4b0   :  { %3150 = vmatpush3.bf16.xpose.msra.mxu1 %v402_v27  ;;  %3151 = vmatprep.mubr.msk.bf16.mxu1 %vm3521_vm1, %v3520_v17 }
 0x4b1   :  { %3146 = vmatmul.mubr.msk.bf16.vlgmr.msra.gmra.mrb[4].mxu0 %vm171_vm2, %v294_v28  ;;  %3161 = vmatprep.subr.bf16.mxu1 %v3520_v17 }
 0x4b2   :  { %3156 = vmatpush3.bf16.xpose.msra.mxu0 %v452_v29  ;;  %3157 = vmatprep.mubr.msk.bf16.mxu0 %vm3521_vm1, %v3520_v17 }
 0x4b3   :  { %3167 = vmatprep.subr.bf16.mxu0 %v3520_v17 }
 0x4b7   :  { %3152 = vmatmul.mubr.msk.bf16.vlgmr.msra.gmra.mrb[12].mxu1 %vm171_vm2, %v395_v30 }
 0x4b8   :  { %3163 = vmatprep.mubr.msk.bf16.mxu1 %vm3521_vm1, %v3520_v17 }
 0x4b9   :  { %3158 = vmatmul.mubr.msk.bf16.vlgmr.msra.gmra.mrb[8].mxu0 %vm171_vm2, %v445_v31 }
 0x4ba   :  { %3169 = vmatprep.mubr.msk.bf16.mxu0 %vm3521_vm1, %v3520_v17 }
 0x582   :  { %v3734_v32 = vpop.f32.mrb[8].mxu1 }
 0x583   :  { %v3141_v33 = vpop.f32.mrb[9].mxu1 }
 0x584   :  { %v341_v34 = vpop.f32.mrb[10].mxu1  ;;  %v3736_v37 = vpop.f32.mrb[4].mxu0 }
 0x585   :  { %v392_v38 = vpack.c.bf16 %v3736_v37, %v3734_v32  ;;  %v3142_v39 = vpop.f32.mrb[11].mxu1  ;;  %v3147_v40 = vpop.f32.mrb[5].mxu0 }
 0x586   :  { %v389_v41 = vpop.f32.mrb[6].mxu0 }
 0x587   :  { %v3148_v42 = vpop.f32.mrb[7].mxu0 }
 0x58a   :  { %v438_v44 = vpop.f32.mrb[12].mxu1 }
 0x58b   :  { %v494_v45 = vmul.f32 0.35355338, %v438_v44  ;;  %v3153_v47 = vpop.f32.mrb[13].mxu1 }
 0x58c   :  { %v441_v48 = vpop.f32.mrb[14].mxu1  ;;  %v488_v49 = vpop.f32.mrb[8].mxu0 }
 0x58d   :  { %v495_v50 = vmul.f32 0.35355338, %v488_v49  ;;  %v3154_v51 = vpop.f32.mrb[15].mxu1  ;;  %v3159_v53 = vpop.f32.mrb[9].mxu0  ;;  %v496_v54 = vadd.f32 %v494_v45, %v3689_v52 }
 0x58e   :  { %v491_v55 = vpop.f32.mrb[10].mxu0 }
 0x58f   :  { %v3160_v56 = vpop.f32.mrb[11].mxu0  ;;  %v498_v58 = vsel %vm171_vm2, %v496_v54, -inf  ;;  %v497_v59 = vadd.f32 %v495_v50, %v3694_v57 }
 0x590   :  { %499 = vmax.xlane.f32.xlu0 %v498_v58 }
 0x591   :  { %v501_v60 = vsel %vm171_vm2, %v497_v59, -inf }
 0x592   :  { %502 = vmax.xlane.f32.xlu1 %v501_v60 }
 0x5a3   :  { %570 = vrot.lane.b32.xlu1 %v3668_v46, %s3526_s0 }
 0x5a7   :  { %716 = vrot.lane.b32.xlu1 %v3666_v43, %s3527_s17 }
 0x5ab   :  { %766 = vrot.lane.b32.xlu1 %v3668_v46, %s3527_s17 }
 0x5af   :  { %764 = vrot.lane.b32.xlu1 %v3668_v46, %s3528_s18 }
 0x61d   :  { %v500_v61 = vpop.xlane.xlu0 %499 }
 0x61e   :  { %v504_v62 = vsub.f32 %v496_v54, %v500_v61 }
 0x61f   :  { %v503_v63 = vpop.xlane.xlu1 %502 }
 0x620   :  { %v506_v0 = vmul.f32 1.442695, %v504_v62  ;;  %v505_v1 = vsub.f32 %v497_v59, %v503_v63 }
 0x622   :  { %3438 = vpow2.f32 %v506_v0  ;;  %v508_v2 = vmul.f32 1.442695, %v505_v1 }
 0x623   :  { %v571_v3 = vpop.permute.xlu1 %570 }
 0x624   :  { %3440 = vpow2.f32 %v508_v2  ;;  %v576_v4 = vsel %vm300_vm3, %v571_v3, 0 }
 0x625   :  { %3168 = vmatpush3.bf16.msra.mxu0 %v576_v4 }
 0x626   :  { %3179 = vmatprep.subr.bf16.mxu0 %v3520_v17 }
 0x627   :  { %v717_v26 = vpop.permute.xlu1 %716 }
 0x628   :  { %v722_v40 = vsel %vm171_vm2, %v717_v26, 0 }
 0x62b   :  { %v767_v27 = vpop.permute.xlu1 %766 }
 0x62c   :  { %v3439_v5 = vpop.eup %3438  ;;  %v772_v28 = vsel %vm171_vm2, %v767_v27, 0 }
 0x62d   :  { %v510_v6 = vsel %vm171_vm2, %v3439_v5, 0.0 }
 0x62e   :  { %v3441_v7 = vpop.eup %3440  ;;  %511 = vadd.xlane.f32.xlu0 %v510_v6 }
 0x62f   :  { %v513_v8 = vsel %vm171_vm2, %v3441_v7, 0.0  ;;  %v765_v29 = vpop.permute.xlu1 %764 }
 0x632   :  { %514 = vadd.xlane.f32.xlu0 %v513_v8 }
 0x648   :  { %522 = vrot.lane.b32.xlu0 %v3666_v43, %s3526_s0 }
 0x64c   :  { %714 = vrot.lane.b32.xlu0 %v3666_v43, %s3528_s18 }
 0x6bb   :  { %v512_v9 = vpop.xlane.xlu0 %511 }
 0x6bc   :  { %3442 = vrcp.f32 %v512_v9 }
 0x6bf   :  { %v515_v10 = vpop.xlane.xlu0 %514 }
 0x6c0   :  { %3444 = vrcp.f32 %v515_v10 }
 0x6c3   :  { %v523_v12 = vpop.permute.xlu0 %522 }
 0x6c4   :  { %v528_v13 = vsel %vm300_vm3, %v523_v12, 0 }
 0x6c5   :  { %3162 = vmatpush3.bf16.msra.mxu1 %v528_v13 }
 0x6c6   :  { %v3443_v15 = vpop.eup %3442  ;;  %3173 = vmatprep.subr.bf16.mxu1 %v3520_v17 }
 0x6c7   :  { %v517_v18 = vmul.f32 %v3443_v15, %v3439_v5  ;;  %v715_v45 = vpop.permute.xlu0 %714 }
 0x6c9   :  { %v520_v19 = vpack.c.bf16 %v517_v18, %v517_v18 }
 0x6ca   :  { %v3445_v22 = vpop.eup %3444 }
 0x6cb   :  { %v519_v23 = vmul.f32 %v3445_v22, %v3441_v7  ;;  %3164 = vmatmul.mubr.msk.bf16.vlgmr.msra.gmra.mrb[16].mxu1 %vm171_vm2, %v520_v19 }
 0x6cc   :  { %3174 = vmatpush3.bf16.msra.mxu1 %v624_v21  ;;  %3175 = vmatprep.mubr.msk.bf16.mxu1 %vm3521_vm1, %v3520_v17 }
 0x6cd   :  { %v521_v24 = vpack.c.bf16 %v519_v23, %v519_v23  ;;  %3185 = vmatprep.subr.bf16.mxu1 %v3520_v17 }
 0x6cf   :  { %3170 = vmatmul.mubr.msk.bf16.vlgmr.msra.gmra.mrb[12].mxu0 %vm171_vm2, %v521_v24 }
 0x6d0   :  { %3180 = vmatpush3.bf16.msra.mxu0 %v671_v25  ;;  %3181 = vmatprep.mubr.msk.bf16.mxu0 %vm3521_vm1, %v3520_v17 }
 0x6d1   :  { %3191 = vmatprep.subr.bf16.mxu0 %v3520_v17 }
 0x6d7   :  { %3182 = vmatmul.mubr.msk.bf16.vlgmr.msra.gmra.mrb[16].mxu0 %vm171_vm2, %v392_v38 }
 0x6d8   :  { %3193 = vmatprep.mubr.msk.bf16.mxu0 %vm3521_vm1, %v3520_v17 }
 0x6d9   :  { %3192 = vmatpush3.bf16.xpose.msra.mxu0 %v772_v28 }
 0x6da   :  { %3203 = vmatprep.subr.bf16.mxu0 %v3520_v17 }
 0x6e0   :  { %3194 = vmatmul.mubr.msk.bf16.vlgmr.msra.gmra.mrb[20].mxu0 %vm171_vm2, %v765_v29 }
 0x6e1   :  { %3205 = vmatprep.mubr.msk.bf16.mxu0 %vm3521_vm1, %v3520_v17 }
 0x79e   :  { %v564_v30 = vpop.f32.mrb[16].mxu1 }
 0x79f   :  { %v3165_v31 = vpop.f32.mrb[17].mxu1 }
 0x7a0   :  { %v567_v33 = vpop.f32.mrb[18].mxu1 }
 0x7a1   :  { %v3166_v32 = vpop.f32.mrb[19].mxu1 }
 0x7a2   :  { %v612_v34 = vpop.f32.mrb[12].mxu0 }
 0x7a3   :  { %v618_v37 = vpack.c.bf16 %v612_v34, %v564_v30  ;;  %v3171_v38 = vpop.f32.mrb[13].mxu0 }
 0x7a4   :  { %v615_v39 = vpop.f32.mrb[14].mxu0 }
 0x7a5   :  { %v3172_v41 = vpop.f32.mrb[15].mxu0  ;;  %3176 = vmatmul.mubr.msk.bf16.vlgmr.msra.gmra.mrb[20].mxu1 %vm171_vm2, %v618_v37  ;;  %v164_v39 = vld [vmem:[%s4297_s6 + $0x10] sm:$0xff] }
 0x7a6   :  { %3186 = vmatpush3.bf16.xpose.msra.mxu1 %v722_v40  ;;  %3187 = vmatprep.mubr.msk.bf16.mxu1 %vm3521_vm1, %v3520_v17  ;;  %v939_v40 = vpack.c.bf16 %v164_v39, %v164_v39 }
 0x7a7   :  { %3197 = vmatprep.subr.bf16.mxu1 %v3520_v17 }
 0x7a8   :  { %v944_v41 = vsel %vm300_vm3, %v939_v40, 0 }
 0x7aa   :  { %v707_v42 = vpop.f32.mrb[16].mxu0 }
 0x7ab   :  { %v3183_v44 = vpop.f32.mrb[17].mxu0 }
 0x7ac   :  { %v710_v47 = vpop.f32.mrb[18].mxu0 }
 0x7ad   :  { %v3184_v48 = vpop.f32.mrb[19].mxu0  ;;  %3188 = vmatmul.mubr.msk.bf16.vlgmr.msra.gmra.mrb[24].mxu1 %vm171_vm2, %v715_v45 }
 0x7ae   :  { %3199 = vmatprep.mubr.msk.bf16.mxu1 %vm3521_vm1, %v3520_v17 }
 0x7b3   :  { %v808_v49 = vpop.f32.mrb[20].mxu0 }
 0x7b4   :  { %v815_v50 = vmul.f32 0.35355338, %v808_v49  ;;  %v3195_v51 = vpop.f32.mrb[21].mxu0 }
 0x7b5   :  { %v811_v53 = vpop.f32.mrb[22].mxu0 }
 0x7b6   :  { %v3196_v54 = vpop.f32.mrb[23].mxu0  ;;  %v817_v55 = vadd.f32 %v815_v50, %v3694_v57 }
 0x7b8   :  { %v821_v56 = vsel %vm171_vm2, %v817_v55, -inf }
 0x7b9   :  { %822 = vmax.xlane.f32.xlu1 %v821_v56 }
 0x7ca   :  { %890 = vrot.lane.b32.xlu1 %v3668_v46, %s3529_s2 }
 0x7ce   :  { %991 = vrot.lane.b32.xlu1 %v3666_v43, %s4313_s23 }
 0x7d2   :  { %1041 = vrot.lane.b32.xlu1 %v3668_v46, %s4313_s23 }
 0x7d6   :  { %1039 = vrot.lane.b32.xlu1 %v3668_v46, %s4311_s24 }
 0x846   :  { %v823_v58 = vpop.xlane.xlu1 %822 }
 0x847   :  { %v825_v61 = vsub.f32 %v817_v55, %v823_v58 }
 0x849   :  { %v828_v62 = vmul.f32 1.442695, %v825_v61 }
 0x84a   :  { %v891_v59 = vpop.permute.xlu1 %890 }
 0x84b   :  { %v896_v60 = vsel %vm300_vm3, %v891_v59, 0  ;;  %3446 = vpow2.f32 %v828_v62 }
 0x84c   :  { %3204 = vmatpush3.bf16.msra.mxu0 %v896_v60 }
 0x84d   :  { %3215 = vmatprep.subr.bf16.mxu0 %v3520_v17 }
 0x84e   :  { %v992_v23 = vpop.permute.xlu1 %991 }
 0x84f   :  { %v997_v25 = vsel %vm171_vm2, %v992_v23, 0 }
 0x852   :  { %v1042_v51 = vpop.permute.xlu1 %1041 }
 0x853   :  { %v1047_v58 = vsel %vm171_vm2, %v1042_v51, 0 }
 0x855   :  { %v3447_v12 = vpop.eup %3446 }
 0x856   :  { %v833_v13 = vsel %vm171_vm2, %v3447_v12, 0.0 }
 0x878   :  { %v660_v63 = vpop.f32.mrb[20].mxu1 }
 0x879   :  { %v3809_v0 = vadd.f32 %v707_v42, %v660_v63  ;;  %v3177_v1 = vpop.f32.mrb[21].mxu1 }
 0x87a   :  { %v663_v2 = vpop.f32.mrb[22].mxu1 }
 0x87b   :  { %v3811_v3 = vadd.f32 %v710_v47, %v663_v2  ;;  %v3178_v4 = vpop.f32.mrb[23].mxu1 }
 0x880   :  { %v758_v5 = vpop.f32.mrb[24].mxu1 }
 0x881   :  { %v814_v6 = vmul.f32 0.35355338, %v758_v5  ;;  %v3189_v7 = vpop.f32.mrb[25].mxu1 }
 0x882   :  { %v761_v8 = vpop.f32.mrb[26].mxu1 }
 0x883   :  { %v3190_v9 = vpop.f32.mrb[27].mxu1  ;;  %v816_v10 = vadd.f32 %v814_v6, %v3689_v52 }
 0x885   :  { %v818_v11 = vsel %vm171_vm2, %v816_v10, -inf }
 0x886   :  { %819 = vmax.xlane.f32.xlu0 %v818_v11 }
 0x88a   :  { %834 = vadd.xlane.f32.xlu0 %v833_v13 }
 0x913   :  { %v820_v14 = vpop.xlane.xlu0 %819 }
 0x914   :  { %v824_v15 = vsub.f32 %v816_v10, %v820_v14 }
 0x916   :  { %v826_v16 = vmul.f32 1.442695, %v824_v15 }
 0x917   :  { %v835_v18 = vpop.xlane.xlu0 %834 }
 0x918   :  { %3448 = vpow2.f32 %v826_v16 }
 0x919   :  { %3450 = vrcp.f32 %v835_v18 }
 0x922   :  { %v3449_v19 = vpop.eup %3448 }
 0x923   :  { %v3451_v20 = vpop.eup %3450  ;;  %v830_v21 = vsel %vm171_vm2, %v3449_v19, 0.0 }
 0x924   :  { %v839_v22 = vmul.f32 %v3451_v20, %v3447_v12  ;;  %831 = vadd.xlane.f32.xlu0 %v830_v21 }
 0x926   :  { %v841_v24 = vpack.c.bf16 %v839_v22, %v839_v22 }
 0x928   :  { %3206 = vmatmul.mubr.msk.bf16.vlgmr.msra.gmra.mrb[24].mxu0 %vm171_vm2, %v841_v24 }
 0x929   :  { %3216 = vmatpush3.bf16.xpose.msra.mxu0 %v997_v25  ;;  %3217 = vmatprep.mubr.msk.bf16.mxu0 %vm3521_vm1, %v3520_v17 }
 0x92a   :  { %3227 = vmatprep.subr.bf16.mxu0 %v3520_v17 }
 0x93a   :  { %842 = vrot.lane.b32.xlu0 %v3666_v43, %s3529_s2 }
 0x93e   :  { %989 = vrot.lane.b32.xlu0 %v3666_v43, %s4311_s24 }
 0x9b1   :  { %v832_v26 = vpop.xlane.xlu0 %831 }
 0x9b2   :  { %3452 = vrcp.f32 %v832_v26 }
 0x9b5   :  { %v843_v27 = vpop.permute.xlu0 %842 }
 0x9b6   :  { %v848_v28 = vsel %vm300_vm3, %v843_v27, 0 }
 0x9b7   :  { %3198 = vmatpush3.bf16.msra.mxu1 %v848_v28 }
 0x9b8   :  { %3209 = vmatprep.subr.bf16.mxu1 %v3520_v17 }
 0x9b9   :  { %v990_v29 = vpop.permute.xlu0 %989 }
 0x9ba   :  { %3218 = vmatmul.mubr.msk.bf16.vlgmr.msra.gmra.mrb[28].mxu0 %vm171_vm2, %v990_v29  ;;  %v165_v29 = vld [vmem:[%s4297_s6 + $0x18] sm:$0xff] }
 0x9bb   :  { %3229 = vmatprep.mubr.msk.bf16.mxu0 %vm3521_vm1, %v3520_v17 }
 0x9bc   :  { %v3453_v30 = vpop.eup %3452 }
 0x9bd   :  { %v837_v31 = vmul.f32 %v3453_v30, %v3449_v19  ;;  %v1214_v30 = vpack.c.bf16 %v165_v29, %v165_v29 }
 0x9bf   :  { %v840_v33 = vpack.c.bf16 %v837_v31, %v837_v31  ;;  %v1219_v31 = vsel %vm300_vm3, %v1214_v30, 0  ;;  %v1399_v30 = vld [vmem:[%s4302_s12 + $0x20] sm:$0xff] }
 0x9c1   :  { %3200 = vmatmul.mubr.msk.bf16.vlgmr.msra.gmra.mrb[28].mxu1 %vm171_vm2, %v840_v33 }
 0x9c2   :  { %3211 = vmatprep.mubr.msk.bf16.mxu1 %vm3521_vm1, %v3520_v17  ;;  %3210 = vmatpush3.bf16.msra.mxu1 %v944_v41 }
 0x9c3   :  { %3221 = vmatprep.subr.bf16.mxu1 %v3520_v17 }
 0x9fb   :  { %v932_v32 = vpop.f32.mrb[24].mxu0 }
 0x9fc   :  { %v3207_v34 = vpop.f32.mrb[25].mxu0 }
 0x9fd   :  { %v935_v37 = vpop.f32.mrb[26].mxu0 }
 0x9fe   :  { %v3208_v38 = vpop.f32.mrb[27].mxu0 }
 0xa8d   :  { %v1033_v42 = vpop.f32.mrb[28].mxu0 }
 0xa8e   :  { %v1089_v44 = vmul.f32 0.35355338, %v1033_v42  ;;  %v3219_v45 = vpop.f32.mrb[29].mxu0 }
 0xa8f   :  { %v1036_v47 = vpop.f32.mrb[30].mxu0  ;;  %v2947_v45 = vld [vmem:[%s4298_s7] ss:$0 sm:$0xff] }
 0xa90   :  { %v3220_v48 = vpop.f32.mrb[31].mxu0  ;;  %v1091_v49 = vadd.f32 %v1089_v44, %v3689_v52  ;;  %v1040_v52 = vpop.permute.xlu1 %1039 }
 0xa92   :  { %v1093_v50 = vsel %vm171_vm2, %v1091_v49, -inf }
 0xa93   :  { %1094 = vmax.xlane.f32.xlu0 %v1093_v50 }
 0xa94   :  { %v884_v53 = vpop.f32.mrb[28].mxu1 }
 0xa95   :  { %v938_v54 = vpack.c.bf16 %v932_v32, %v884_v53  ;;  %v3201_v55 = vpop.f32.mrb[29].mxu1 }
 0xa96   :  { %v887_v56 = vpop.f32.mrb[30].mxu1 }
 0xa97   :  { %v3202_v59 = vpop.f32.mrb[31].mxu1  ;;  %3212 = vmatmul.mubr.msk.bf16.vlgmr.msra.gmra.mrb[32].mxu1 %vm171_vm2, %v938_v54 }
 0xa98   :  { %3222 = vmatpush3.bf16.xpose.msra.mxu1 %v1047_v58  ;;  %3223 = vmatprep.mubr.msk.bf16.mxu1 %vm3521_vm1, %v3520_v17 }
 0xa99   :  { %3233 = vmatprep.subr.bf16.mxu1 %v3520_v17 }
 0xa9f   :  { %3224 = vmatmul.mubr.msk.bf16.vlgmr.msra.gmra.mrb[36].mxu1 %vm171_vm2, %v1040_v52 }
 0xaa0   :  { %3235 = vmatprep.mubr.msk.bf16.mxu1 %vm3521_vm1, %v3520_v17 }
 0xb20   :  { %v1095_v60 = vpop.xlane.xlu0 %1094 }
 0xb21   :  { %v1099_v61 = vsub.f32 %v1091_v49, %v1095_v60 }
 0xb23   :  { %v1101_v62 = vmul.f32 1.442695, %v1099_v61 }
 0xb25   :  { %3454 = vpow2.f32 %v1101_v62 }
 0xb2f   :  { %v3455_v63 = vpop.eup %3454 }
 0xb30   :  { %v1105_v1 = vsel %vm171_vm2, %v3455_v63, 0.0 }
 0xb31   :  { %1106 = vadd.xlane.f32.xlu0 %v1105_v1 }
 0xb6a   :  { %v980_v2 = vpop.f32.mrb[32].mxu1 }
 0xb6b   :  { %v3851_v4 = vadd.f32 %v980_v2, %v3809_v0  ;;  %v3213_v5 = vpop.f32.mrb[33].mxu1 }
 0xb6c   :  { %v983_v6 = vpop.f32.mrb[34].mxu1 }
 0xb6d   :  { %v3854_v7 = vadd.f32 %v983_v6, %v3811_v3  ;;  %v3214_v8 = vpop.f32.mrb[35].mxu1  ;;  %v1320_v6 = vld [vmem:[%s4299_s10 + $0x8] sm:$0xff] }
 0xb6e   :  { %v1321_v8 = vld [vmem:[%s4299_s10 + $0x10] sm:$0xff] }
 0xb72   :  { %v1083_v9 = vpop.f32.mrb[36].mxu1 }
 0xb73   :  { %v1090_v10 = vmul.f32 0.35355338, %v1083_v9  ;;  %v3225_v11 = vpop.f32.mrb[37].mxu1  ;;  %v1322_v9 = vld [vmem:[%s4299_s10 + $0x18] sm:$0xff] }
 0xb74   :  { %v1086_v12 = vpop.f32.mrb[38].mxu1 }
 0xb75   :  { %v3226_v13 = vpop.f32.mrb[39].mxu1  ;;  %v1092_v14 = vadd.f32 %v1090_v10, %v3694_v57  ;;  %v1325_v10 = vpack.c.bf16 %v1322_v9, %v1321_v8 }
 0xb77   :  { %v1096_v15 = vsel %vm171_vm2, %v1092_v14, -inf }
 0xb78   :  { %1097 = vmax.xlane.f32.xlu1 %v1096_v15 }
 0xb89   :  { %1165 = vrot.lane.b32.xlu1 %v3668_v46, %s4309_s27 }
 0xbbe   :  { %v1107_v21 = vpop.xlane.xlu0 %1106 }
 0xc05   :  { %v1098_v0 = vpop.xlane.xlu1 %1097 }
 0xc06   :  { %v1100_v16 = vsub.f32 %v1092_v14, %v1098_v0 }
 0xc08   :  { %v1103_v18 = vmul.f32 1.442695, %v1100_v16 }
 0xc09   :  { %v1166_v3 = vpop.permute.xlu1 %1165 }
 0xc0a   :  { %3456 = vpow2.f32 %v1103_v18  ;;  %v1171_v19 = vsel %vm300_vm3, %v1166_v3, 0  ;;  %v2948_v18 = vld [vmem:[%s4300_s8] ss:$0 sm:$0xff] }
 0xc0b   :  { %3234 = vmatpush3.bf16.msra.mxu1 %v1171_v19  ;;  %3458 = vrcp.f32 %v1107_v21  ;;  %v2949_v21 = vld [vmem:[%s4301_s9] ss:$0 sm:$0xff] }
 0xc0c   :  { %3245 = vmatprep.subr.bf16.mxu1 %v3520_v17 }
 0xc14   :  { %v3457_v20 = vpop.eup %3456 }
 0xc15   :  { %v1108_v57 = vsel %vm171_vm2, %v3457_v20, 0.0  ;;  %v3459_v46 = vpop.eup %3458 }
 0xc16   :  { %1109 = vadd.xlane.f32.xlu0 %v1108_v57  ;;  %v1112_v23 = vmul.f32 %v3459_v46, %v3455_v63 }
 0xc18   :  { %v1115_v26 = vpack.c.bf16 %v1112_v23, %v1112_v23 }
 0xc2c   :  { %1117 = vrot.lane.b32.xlu0 %v3666_v43, %s4309_s27  ;;  %s4319_s27 = smov 40  }
 0xca3   :  { %v1110_v22 = vpop.xlane.xlu0 %1109 }
 0xca4   :  { %3460 = vrcp.f32 %v1110_v22 }
 0xca7   :  { %v1118_v24 = vpop.permute.xlu0 %1117 }
 0xca8   :  { %v1123_v25 = vsel %vm300_vm3, %v1118_v24, 0 }
 0xca9   :  { %3228 = vmatpush3.bf16.msra.mxu0 %v1123_v25  ;;  %v1395_v25 = vld [vmem:[%s4302_s12] sm:$0xff] }
 0xcaa   :  { %3239 = vmatprep.subr.bf16.mxu0 %v3520_v17 }
 0xcac   :  { %3230 = vmatmul.mubr.msk.bf16.vlgmr.msra.gmra.mrb[32].mxu0 %vm171_vm2, %v1115_v26  ;;  %v1396_v26 = vld [vmem:[%s4302_s12 + $0x8] sm:$0xff] }
 0xcad   :  { %3241 = vmatprep.mubr.msk.bf16.mxu0 %vm3521_vm1, %v3520_v17  ;;  %3240 = vmatpush3.bf16.msra.mxu0 %v1219_v31  ;;  %v1400_v31 = vld [vmem:[%s4302_s12 + $0x28] sm:$0xff] }
 0xcae   :  { %v3461_v27 = vpop.eup %3460  ;;  %3253 = vmatprep.subr.bf16.mxu0 %v3520_v17 }
 0xcaf   :  { %v1114_v43 = vmul.f32 %v3461_v27, %v3457_v20  ;;  %v1397_v27 = vld [vmem:[%s4302_s12 + $0x10] sm:$0xff] }
 0xcb1   :  { %v1116_v28 = vpack.c.bf16 %v1114_v43, %v1114_v43  ;;  %v1404_v43 = vpack.c.bf16 %v1396_v26, %v1395_v25  ;;  %v2959_v25 = vld [vmem:[%s4292_s4 + $0x38] sm:$0xff] }
 0xcb3   :  { %3236 = vmatmul.mubr.msk.bf16.vlgmr.msra.gmra.mrb[40].mxu1 %vm171_vm2, %v1116_v28  ;;  %v1398_v28 = vld [vmem:[%s4302_s12 + $0x18] sm:$0xff] }
 0xcb4   :  { %3249 = vmatprep.mubr.msk.bf16.mxu1 %vm3521_vm1, %v3520_v17  ;;  %v1405_v29 = vpack.c.bf16 %v1398_v28, %v1397_v27 }
 0xd7f   :  { %v1159_v33 = vpop.f32.mrb[32].mxu0 }
 0xd80   :  { %v3231_v32 = vpop.f32.mrb[33].mxu0 }
 0xd81   :  { %v1162_v34 = vpop.f32.mrb[34].mxu0  ;;  %v1401_v32 = vld [vmem:[%s4302_s12 + $0x30] sm:$0xff] }
 0xd82   :  { %v3232_v37 = vpop.f32.mrb[35].mxu0  ;;  %v1402_v34 = vld [vmem:[%s4302_s12 + $0x38] sm:$0xff] }
 0xd83   :  { %v1407_v37 = vpack.c.bf16 %v1402_v34, %v1401_v32  ;;  %v2954_v32 = vld [vmem:[%s4305_s14] ss:$0 sm:$0xff] }
 0xd86   :  { %v1207_v38 = vpop.f32.mrb[40].mxu1 }
 0xd87   :  { %v1213_v39 = vpack.c.bf16 %v1207_v38, %v1159_v33  ;;  %v3237_v40 = vpop.f32.mrb[41].mxu1  ;;  %v1406_v33 = vpack.c.bf16 %v1400_v31, %v1399_v30  ;;  %v2950_v38 = vld [vmem:[%s4303_s11] ss:$0 sm:$0xff] }
 0xd88   :  { %v1210_v41 = vpop.f32.mrb[42].mxu1 }
 0xd89   :  { %v3238_v42 = vpop.f32.mrb[43].mxu1  ;;  %3242 = vmatmul.mubr.msk.bf16.vlgmr.msra.gmra.mrb[36].mxu0 %vm171_vm2, %v1213_v39 }
 0xd8a   :  { %3261 = vmatprep.mubr.msk.bf16.mxu0 %vm3521_vm1, %v3520_v17  ;;  %3254 = vmatpush3.bf16.msra.mxu0 %v1404_v43 }
 0xd8b   :  { %3255 = vmatprep.subr.bf16.mxu0 %v3520_v17 }
 0xd8e   :  { %3256 = vmatpush3.bf16.msra.mxu0 %v1405_v29 }
 0xd8f   :  { %3257 = vmatprep.subr.bf16.mxu0 %v3520_v17 }
 0xd92   :  { %3258 = vmatpush3.bf16.msra.mxu0 %v1406_v33 }
 0xd93   :  { %3259 = vmatprep.subr.bf16.mxu0 %v3520_v17 }
 0xd96   :  { %3260 = vmatpush3.bf16.msra.mxu0 %v1407_v37 }
 0xd97   :  { %3279 = vmatprep.subr.bf16.mxu0 %v3520_v17 }
 0xe5c   :  { %v1255_v44 = vpop.f32.mrb[36].mxu0 }
 0xe5d   :  { %v1262_v47 = vadd.f32 %v1255_v44, %v3851_v4  ;;  %v3243_v48 = vpop.f32.mrb[37].mxu0 }
 0xe5e   :  { %v1258_v49 = vpop.f32.mrb[38].mxu0 }
 0xe5f   :  { %v1271_v50 = vadd.f32 %v2947_v45, %v1262_v47  ;;  %v1263_v51 = vadd.f32 %v1258_v49, %v3854_v7  ;;  %v3244_v53 = vpop.f32.mrb[39].mxu0 }
 0xe61   :  { %v1272_v54 = vadd.f32 %v2947_v45, %v1263_v51  ;;  %v1273_v55 = vadd.f32 %v1271_v50, %v3654_v35 }
 0xe63   :  { %v1277_v56 = vsel %vm58_vm0, %v1273_v55, 0.0  ;;  %v1274_v58 = vadd.f32 %v1272_v54, %v3656_v36  ;;  %v1319_v36 = vld [vmem:[%s4299_s10] sm:$0xff] }
 0xe64   :  { %1278 = vadd.xlane.f32.xlu1 %v1277_v56  ;;  %v1324_v7 = vpack.c.bf16 %v1320_v6, %v1319_v36 }
 0xe65   :  { %v1280_v59 = vsel %vm58_vm0, %v1274_v58, 0.0 }
 0xe66   :  { %1281 = vadd.xlane.f32.xlu0 %v1280_v59  ;;  %3246 = vmatpush3.bf16.msra.mxu1 %v1324_v7 }
 0xe67   :  { %3247 = vmatprep.subr.bf16.mxu1 %v3520_v17 }
 0xe6a   :  { %3248 = vmatpush3.bf16.msra.mxu1 %v1325_v10 }
 0xe6b   :  { %3265 = vmatprep.subr.bf16.mxu1 %v3520_v17 }
 0xef1   :  { %v1279_v52 = vpop.xlane.xlu1 %1278 }
 0xef2   :  { %v1283_v60 = vmul.f32 0.03125, %v1279_v52 }
 0xef3   :  { %v1282_v61 = vpop.xlane.xlu0 %1281 }
 0xef4   :  { %v1285_v62 = vsub.f32 %v1273_v55, %v1283_v60  ;;  %v1284_v63 = vmul.f32 0.03125, %v1282_v61 }
 0xef6   :  { %v1286_v1 = vsub.f32 %v1274_v58, %v1284_v63  ;;  %v1287_v2 = vmul.f32 %v1285_v62, %v1285_v62 }
 0xef8   :  { %v1289_v4 = vsel %vm58_vm0, %v1287_v2, 0.0  ;;  %v1288_v5 = vmul.f32 %v1286_v1, %v1286_v1 }
 0xef9   :  { %1290 = vadd.xlane.f32.xlu0 %v1289_v4 }
 0xefa   :  { %v1292_v35 = vsel %vm58_vm0, %v1288_v5, 0.0  ;;  %v2952_v5 = vld [vmem:[%s4304_s13] ss:$0 sm:$0xff] }
 0xefb   :  { %1293 = vadd.xlane.f32.xlu1 %v1292_v35 }
 0xf86   :  { %v1291_v11 = vpop.xlane.xlu0 %1290 }
 0xf87   :  { %v1295_v12 = vmul.f32 0.03125, %v1291_v11 }
 0xf88   :  { %v1294_v13 = vpop.xlane.xlu1 %1293 }
 0xf89   :  { %v1297_v14 = vadd.f32 1e-12, %v1295_v12  ;;  %v1296_v15 = vmul.f32 0.03125, %v1294_v13 }
 0xf8b   :  { %3462 = vrsqrt.f32 %v1297_v14  ;;  %v1298_v0 = vadd.f32 1e-12, %v1296_v15 }
 0xf8d   :  { %3464 = vrsqrt.f32 %v1298_v0 }
 0xf95   :  { %v3463_v16 = vpop.eup %3462 }
 0xf96   :  { %v1301_v3 = vmul.f32 %v3463_v16, %v1285_v62 }
 0xf97   :  { %v3465_v19 = vpop.eup %3464 }
 0xf98   :  { %v1309_v20 = vmul.f32 %v2948_v18, %v1301_v3  ;;  %v1302_v57 = vmul.f32 %v3465_v19, %v1286_v1 }
 0xf9a   :  { %v1310_v46 = vmul.f32 %v2948_v18, %v1302_v57  ;;  %v3912_v22 = vadd.f32 %v2949_v21, %v1309_v20 }
 0xf9c   :  { %v3914_v23 = vadd.f32 %v2949_v21, %v1310_v46  ;;  %v2956_v46 = vld [vmem:[%s4292_s4 + $0x20] sm:$0xff] }
 0xf9e   :  { %v1323_v24 = vpack.c.bf16 %v3914_v23, %v3912_v22 }
 0xfa0   :  { %3250 = vmatmul.mubr.msk.bf16.vlgmr.msra.gmra.mrb[44].mxu1 %vm58_vm0, %v1323_v24  ;;  %v2958_v24 = vld [vmem:[%s4292_s4 + $0x30] sm:$0xff] }
 0xfa1   :  { %3269 = vmatprep.mubr.msk.bf16.mxu1 %vm3521_vm1, %v3520_v17  ;;  %v1513_v26 = vpack.c.bf16 %v2959_v25, %v2958_v24 }
0x1073   :  { %v1370_v39 = vpop.f32.mrb[44].mxu1 }
0x1074   :  { %v1371_v40 = vadd.f32 %v2950_v38, %v1370_v39  ;;  %v3251_v41 = vpop.f32.mrb[45].mxu1 }
0x1075   :  { %v1373_v42 = vpop.f32.mrb[46].mxu1 }
0x1076   :  { %v1379_v44 = vmul.f32 0.044715, %v1371_v40  ;;  %v1374_v45 = vadd.f32 %v2950_v38, %v1373_v42  ;;  %v3252_v47 = vpop.f32.mrb[47].mxu1  ;;  %v1377_v61 = vmul.f32 0.5, %v1371_v40 }
0x1077   :  { %v2961_v47 = vld [vmem:[%s4295_s5 + $0x1] ss:$0 sm:$0xff] }
0x1078   :  { %v1381_v48 = vmul.f32 %v1379_v44, %v1371_v40  ;;  %v1380_v49 = vmul.f32 0.044715, %v1374_v45  ;;  %v1378_v62 = vmul.f32 0.5, %v1374_v45 }
0x107a   :  { %v1383_v50 = vmul.f32 %v1381_v48, %v1371_v40  ;;  %v1382_v51 = vmul.f32 %v1380_v49, %v1374_v45 }
0x107c   :  { %v1385_v53 = vadd.f32 %v1383_v50, %v1371_v40  ;;  %v1384_v54 = vmul.f32 %v1382_v51, %v1374_v45  ;;  %v2955_v40 = vld [vmem:[%s4306_s15] ss:$0 sm:$0xff] }
0x107e   :  { %v1387_v55 = vmul.f32 0.7978846, %v1385_v53  ;;  %v1386_v56 = vadd.f32 %v1384_v54, %v1374_v45 }
0x1080   :  { %3466 = vtanh.f32 %v1387_v55  ;;  %v1388_v58 = vmul.f32 0.7978846, %v1386_v56 }
0x1082   :  { %3468 = vtanh.f32 %v1388_v58 }
0x108a   :  { %v3467_v59 = vpop.eup %3466 }
0x108b   :  { %v1391_v52 = vadd.f32 1.0, %v3467_v59 }
0x108c   :  { %v3469_v60 = vpop.eup %3468 }
0x108d   :  { %v1392_v63 = vadd.f32 1.0, %v3469_v60  ;;  %v1393_v1 = vmul.f32 %v1391_v52, %v1377_v61 }
0x108f   :  { %v1394_v2 = vmul.f32 %v1392_v63, %v1378_v62 }
0x1091   :  { %v1403_v4 = vpack.c.bf16 %v1394_v2, %v1393_v1 }
0x1093   :  { %3262 = vmatmul.mubr.msk.bf16.vlgmr.msra.gmra.mrb[40].mxu0 %vm1415_vm4, %v1403_v4 }
0x1094   :  { %3281 = vmatprep.mubr.msk.bf16.mxu0 %vm3521_vm1, %v3520_v17 }
0x1166   :  { %v1453_v35 = vpop.f32.mrb[40].mxu0 }
0x1167   :  { %v1454_v36 = vadd.f32 %v2952_v5, %v1453_v35  ;;  %v3263_v6 = vpop.f32.mrb[41].mxu0 }
0x1168   :  { %v1456_v7 = vpop.f32.mrb[42].mxu0 }
0x1169   :  { %v1457_v8 = vadd.f32 %v2952_v5, %v1456_v7  ;;  %v3264_v9 = vpop.f32.mrb[43].mxu0  ;;  %v1460_v10 = vadd.f32 %v1454_v36, %v3912_v22  ;;  %v2957_v22 = vld [vmem:[%s4292_s4 + $0x28] sm:$0xff]  ;;  %v4019_v36 = vld [vmem:[%s4296_s1] sm:$0xff] }
0x116b   :  { %v1464_v11 = vsel %vm58_vm0, %v1460_v10, 0.0  ;;  %v1461_v12 = vadd.f32 %v1457_v8, %v3914_v23  ;;  %v1512_v23 = vpack.c.bf16 %v2957_v22, %v2956_v46 }
0x116c   :  { %1465 = vadd.xlane.f32.xlu0 %v1464_v11 }
0x116d   :  { %v1467_v13 = vsel %vm58_vm0, %v1461_v12, 0.0  ;;  %3266 = vmatpush3.bf16.msra.mxu1 %v1512_v23 }
0x116e   :  { %1468 = vadd.xlane.f32.xlu1 %v1467_v13  ;;  %3267 = vmatprep.subr.bf16.mxu1 %v3520_v17 }
0x1171   :  { %3268 = vmatpush3.bf16.msra.mxu1 %v1513_v26 }
0x1172   :  { %3273 = vmatprep.subr.bf16.mxu1 %v3520_v17 }
0x11f9   :  { %v1466_v14 = vpop.xlane.xlu0 %1465 }
0x11fa   :  { %v1470_v15 = vmul.f32 0.03125, %v1466_v14 }
0x11fb   :  { %v1469_v0 = vpop.xlane.xlu1 %1468 }
0x11fc   :  { %v1472_v16 = vsub.f32 %v1460_v10, %v1470_v15  ;;  %v1471_v18 = vmul.f32 0.03125, %v1469_v0  ;;  %v4026_v10 = vld [vmem:[%s4296_s1 + $0x8] sm:$0xff] }
0x11fe   :  { %v1473_v3 = vsub.f32 %v1461_v12, %v1471_v18  ;;  %v1474_v19 = vmul.f32 %v1472_v16, %v1472_v16 }
0x1200   :  { %v1476_v20 = vsel %vm58_vm0, %v1474_v19, 0.0  ;;  %v1475_v57 = vmul.f32 %v1473_v3, %v1473_v3 }
0x1201   :  { %1477 = vadd.xlane.f32.xlu0 %v1476_v20 }
0x1202   :  { %v1479_v21 = vsel %vm58_vm0, %v1475_v57, 0.0 }
0x1203   :  { %1480 = vadd.xlane.f32.xlu1 %v1479_v21 }
0x128e   :  { %v1478_v27 = vpop.xlane.xlu0 %1477 }
0x128f   :  { %v1482_v43 = vmul.f32 0.03125, %v1478_v27 }
0x1290   :  { %v1481_v28 = vpop.xlane.xlu1 %1480 }
0x1291   :  { %v1484_v29 = vadd.f32 1e-12, %v1482_v43  ;;  %v1483_v30 = vmul.f32 0.03125, %v1481_v28 }
0x1293   :  { %3470 = vrsqrt.f32 %v1484_v29  ;;  %v1485_v31 = vadd.f32 1e-12, %v1483_v30 }
0x1295   :  { %3472 = vrsqrt.f32 %v1485_v31 }
0x129d   :  { %v3471_v33 = vpop.eup %3470 }
0x129e   :  { %v1488_v34 = vmul.f32 %v3471_v33, %v1472_v16 }
0x129f   :  { %v3473_v37 = vpop.eup %3472 }
0x12a0   :  { %v1496_v38 = vmul.f32 %v2954_v32, %v1488_v34  ;;  %v1489_v39 = vmul.f32 %v3473_v37, %v1473_v3 }
0x12a2   :  { %v1497_v41 = vmul.f32 %v2954_v32, %v1489_v39  ;;  %v3984_v42 = vadd.f32 %v2955_v40, %v1496_v38 }
0x12a4   :  { %v3986_v44 = vadd.f32 %v2955_v40, %v1497_v41 }
0x12a6   :  { %v1511_v45 = vpack.c.bf16 %v3986_v44, %v3984_v42 }
0x12a8   :  { %3270 = vmatmul.mubr.msk.bf16.vlgmr.msra.gmra.mrb[48].mxu1 %vm58_vm0, %v1511_v45 }
0x12a9   :  { %3275 = vmatprep.mubr.msk.bf16.mxu1 %vm3521_vm1, %v3520_v17 }
0x137b   :  { %v1559_v48 = vpop.f32.mrb[48].mxu1 }
0x137c   :  { %v1560_v49 = vadd.f32 %v2961_v47, %v1559_v48  ;;  %v3271_v50 = vpop.f32.mrb[49].mxu1 }
0x137d   :  { %v1562_v51 = vpop.f32.mrb[50].mxu1 }
0x137e   :  { %v3996_v53 = vpack.c.bf16 %v1560_v49, %v1560_v49  ;;  %v1563_v54 = vadd.f32 %v2961_v47, %v1562_v51  ;;  %v3272_v55 = vpop.f32.mrb[51].mxu1 }
0x1380   :  { %v3998_v56 = vpack.c.bf16 %v1563_v54, %v1563_v54  ;;  %1574 = vrot.lane.b32.xlu0 %v3996_v53, %s3522_s3 }
0x1382   :  { %1623 = vrot.lane.b32.xlu1 %v3998_v56, %s3522_s3 }
0x13f2   :  { %v1575_v58 = vpop.permute.xlu0 %1574 }
0x13f3   :  { %v1580_v59 = vsel %vm171_vm2, %v1575_v58, 0 }
0x13f4   :  { %3274 = vmatpush3.bf16.xpose.msra.mxu1 %v1580_v59  ;;  %v1624_v52 = vpop.permute.xlu1 %1623 }
0x13f5   :  { %v1629_v60 = vsel %vm171_vm2, %v1624_v52, 0  ;;  %3285 = vmatprep.subr.bf16.mxu1 %v3520_v17 }
0x13f6   :  { %3280 = vmatpush3.bf16.xpose.msra.mxu0 %v1629_v60 }
0x13f7   :  { %3291 = vmatprep.subr.bf16.mxu0 %v3520_v17 }
0x13fb   :  { %3276 = vmatmul.mubr.msk.bf16.vlgmr.msra.gmra.mrb[52].mxu1 %vm171_vm2, %v3996_v53 }
0x13fc   :  { %3287 = vmatprep.mubr.msk.bf16.mxu1 %vm3521_vm1, %v3520_v17 }
0x13fd   :  { %3282 = vmatmul.mubr.msk.bf16.vlgmr.msra.gmra.mrb[44].mxu0 %vm171_vm2, %v3998_v56 }
0x13fe   :  { %3293 = vmatprep.mubr.msk.bf16.mxu0 %vm3521_vm1, %v3520_v17 }
0x14ce   :  { %v1616_v61 = vpop.f32.mrb[52].mxu1 }
0x14cf   :  { %v1671_v62 = vmul.f32 0.35355338, %v1616_v61  ;;  %v3277_v63 = vpop.f32.mrb[53].mxu1 }
0x14d0   :  { %v1619_v1 = vpop.f32.mrb[54].mxu1  ;;  %v1665_v2 = vpop.f32.mrb[44].mxu0 }
0x14d1   :  { %v1672_v4 = vmul.f32 0.35355338, %v1665_v2  ;;  %v3278_v5 = vpop.f32.mrb[55].mxu1  ;;  %v3283_v35 = vpop.f32.mrb[45].mxu0  ;;  %v1673_v6 = vadd.f32 %v4019_v36, %v1671_v62 }
0x14d2   :  { %v1668_v7 = vpop.f32.mrb[46].mxu0 }
0x14d3   :  { %v3284_v8 = vpop.f32.mrb[47].mxu0  ;;  %v1675_v9 = vsel %vm171_vm2, %v1673_v6, -inf  ;;  %v1674_v11 = vadd.f32 %v4026_v10, %v1672_v4 }
0x14d4   :  { %1676 = vmax.xlane.f32.xlu1 %v1675_v9 }
0x14d5   :  { %v1678_v12 = vsel %vm171_vm2, %v1674_v11, -inf }
0x14d6   :  { %1679 = vmax.xlane.f32.xlu0 %v1678_v12 }
0x14e5   :  { %1747 = vrot.lane.b32.xlu1 %v3998_v56, %s3523_s28 }
0x14e9   :  { %1799 = vrot.lane.b32.xlu1 %v3996_v53, %s3524_s29 }
0x1561   :  { %v1677_v13 = vpop.xlane.xlu1 %1676 }
0x1562   :  { %v1681_v14 = vsub.f32 %v1673_v6, %v1677_v13 }
0x1563   :  { %v1680_v15 = vpop.xlane.xlu0 %1679 }
0x1564   :  { %v1683_v0 = vmul.f32 1.442695, %v1681_v14  ;;  %v1682_v16 = vsub.f32 %v1674_v11, %v1680_v15 }
0x1565   :  { %v1748_v18 = vpop.permute.xlu1 %1747 }
0x1566   :  { %3474 = vpow2.f32 %v1683_v0  ;;  %v1685_v3 = vmul.f32 1.442695, %v1682_v16  ;;  %v1753_v19 = vsel %vm300_vm3, %v1748_v18, 0 }
0x1567   :  { %3292 = vmatpush3.bf16.msra.mxu0 %v1753_v19 }
0x1568   :  { %3476 = vpow2.f32 %v1685_v3  ;;  %3303 = vmatprep.subr.bf16.mxu0 %v3520_v17 }
0x1569   :  { %v1800_v22 = vpop.permute.xlu1 %1799 }
0x156a   :  { %v1805_v33 = vsel %vm171_vm2, %v1800_v22, 0 }
0x1570   :  { %v3475_v20 = vpop.eup %3474 }
0x1571   :  { %v1687_v57 = vsel %vm171_vm2, %v3475_v20, 0.0 }
0x1572   :  { %v3477_v21 = vpop.eup %3476  ;;  %1688 = vadd.xlane.f32.xlu0 %v1687_v57 }
0x1573   :  { %v1690_v46 = vsel %vm171_vm2, %v3477_v21, 0.0 }
0x1574   :  { %1691 = vadd.xlane.f32.xlu1 %v1690_v46 }
0x1585   :  { %1849 = vrot.lane.b32.xlu1 %v3998_v56, %s3524_s29 }
0x1588   :  { %1699 = vrot.lane.b32.xlu0 %v3996_v53, %s3523_s28 }
0x1589   :  { %1847 = vrot.lane.b32.xlu1 %v3998_v56, %s3525_s30 }
0x158c   :  { %1797 = vrot.lane.b32.xlu0 %v3996_v53, %s3525_s30 }
0x15ff   :  { %v1689_v23 = vpop.xlane.xlu0 %1688 }
0x1600   :  { %3478 = vrcp.f32 %v1689_v23  ;;  %v2963_v23 = vld [vmem:[%s4297_s6 + $0x20] sm:$0xff] }
0x1601   :  { %v1692_v24 = vpop.xlane.xlu1 %1691 }
0x1602   :  { %3480 = vrcp.f32 %v1692_v24 }
0x1603   :  { %v1700_v25 = vpop.permute.xlu0 %1699 }
0x1604   :  { %v1705_v26 = vsel %vm300_vm3, %v1700_v25, 0 }
0x1605   :  { %3286 = vmatpush3.bf16.msra.mxu1 %v1705_v26  ;;  %v1850_v31 = vpop.permute.xlu1 %1849  ;;  %v1796_v26 = vpack.c.bf16 %v2963_v23, %v2963_v23 }
0x1606   :  { %3297 = vmatprep.subr.bf16.mxu1 %v3520_v17  ;;  %v1855_v34 = vsel %vm171_vm2, %v1850_v31, 0 }
0x1607   :  { %v1798_v37 = vpop.permute.xlu0 %1797 }
0x1609   :  { %v1848_v38 = vpop.permute.xlu1 %1847 }
0x160a   :  { %v3479_v27 = vpop.eup %3478 }
0x160b   :  { %v1694_v43 = vmul.f32 %v3479_v27, %v3475_v20  ;;  %v2964_v20 = vld [vmem:[%s4297_s6 + $0x28] sm:$0xff] }
0x160c   :  { %v3481_v28 = vpop.eup %3480  ;;  %v2022_v46 = vpack.c.bf16 %v2964_v20, %v2964_v20 }
0x160d   :  { %v1696_v29 = vmul.f32 %v3481_v28, %v3477_v21  ;;  %v1697_v30 = vpack.c.bf16 %v1694_v43, %v1694_v43 }
0x160e   :  { %v2027_v27 = vsel %vm300_vm3, %v2022_v46, 0 }
0x160f   :  { %3288 = vmatmul.mubr.msk.bf16.vlgmr.msra.gmra.mrb[56].mxu1 %vm171_vm2, %v1697_v30  ;;  %v1698_v32 = vpack.c.bf16 %v1696_v29, %v1696_v29  ;;  %v2074_v30 = vsel %vm300_vm3, %v1796_v26, 0 }
0x1610   :  { %3298 = vmatpush3.bf16.xpose.msra.mxu1 %v1805_v33  ;;  %3299 = vmatprep.mubr.msk.bf16.mxu1 %vm3521_vm1, %v3520_v17 }
0x1611   :  { %3294 = vmatmul.mubr.msk.bf16.vlgmr.msra.gmra.mrb[48].mxu0 %vm171_vm2, %v1698_v32  ;;  %3309 = vmatprep.subr.bf16.mxu1 %v3520_v17 }
0x1612   :  { %3304 = vmatpush3.bf16.xpose.msra.mxu0 %v1855_v34  ;;  %3305 = vmatprep.mubr.msk.bf16.mxu0 %vm3521_vm1, %v3520_v17 }
0x1613   :  { %3315 = vmatprep.subr.bf16.mxu0 %v3520_v17 }
0x1617   :  { %3300 = vmatmul.mubr.msk.bf16.vlgmr.msra.gmra.mrb[60].mxu1 %vm171_vm2, %v1798_v37 }
0x1618   :  { %3311 = vmatprep.mubr.msk.bf16.mxu1 %vm3521_vm1, %v3520_v17 }
0x1619   :  { %3306 = vmatmul.mubr.msk.bf16.vlgmr.msra.gmra.mrb[52].mxu0 %vm171_vm2, %v1848_v38 }
0x161a   :  { %3317 = vmatprep.mubr.msk.bf16.mxu0 %vm3521_vm1, %v3520_v17 }
0x16e2   :  { %v4064_v39 = vpop.f32.mrb[56].mxu1 }
0x16e3   :  { %v3289_v40 = vpop.f32.mrb[57].mxu1 }
0x16e4   :  { %v1744_v41 = vpop.f32.mrb[58].mxu1  ;;  %v4066_v45 = vpop.f32.mrb[48].mxu0 }
0x16e5   :  { %v1795_v47 = vpack.c.bf16 %v4066_v45, %v4064_v39  ;;  %v3290_v48 = vpop.f32.mrb[59].mxu1  ;;  %v3295_v49 = vpop.f32.mrb[49].mxu0 }
0x16e6   :  { %v1792_v50 = vpop.f32.mrb[50].mxu0 }
0x16e7   :  { %v3296_v51 = vpop.f32.mrb[51].mxu0 }
0x16ea   :  { %v1841_v54 = vpop.f32.mrb[60].mxu1 }
0x16eb   :  { %v1897_v55 = vmul.f32 0.35355338, %v1841_v54  ;;  %v3301_v58 = vpop.f32.mrb[61].mxu1 }
0x16ec   :  { %v1844_v59 = vpop.f32.mrb[62].mxu1  ;;  %v1891_v52 = vpop.f32.mrb[52].mxu0 }
0x16ed   :  { %v1898_v60 = vmul.f32 0.35355338, %v1891_v52  ;;  %v3302_v61 = vpop.f32.mrb[63].mxu1  ;;  %v3307_v62 = vpop.f32.mrb[53].mxu0  ;;  %v1899_v63 = vadd.f32 %v4019_v36, %v1897_v55 }
0x16ee   :  { %v1894_v1 = vpop.f32.mrb[54].mxu0 }
0x16ef   :  { %v3308_v2 = vpop.f32.mrb[55].mxu0  ;;  %v1901_v4 = vsel %vm171_vm2, %v1899_v63, -inf  ;;  %v1900_v5 = vadd.f32 %v4026_v10, %v1898_v60 }
0x16f0   :  { %1902 = vmax.xlane.f32.xlu0 %v1901_v4 }
0x16f1   :  { %v1904_v35 = vsel %vm171_vm2, %v1900_v5, -inf }
0x16f2   :  { %1905 = vmax.xlane.f32.xlu1 %v1904_v35 }
0x1703   :  { %1973 = vrot.lane.b32.xlu1 %v3998_v56, %s3526_s0 }
0x1707   :  { %2119 = vrot.lane.b32.xlu1 %v3996_v53, %s3527_s17 }
0x170b   :  { %2169 = vrot.lane.b32.xlu1 %v3998_v56, %s3527_s17  ;;  %s4318_s17 = smov 104  }
0x170f   :  { %2167 = vrot.lane.b32.xlu1 %v3998_v56, %s3528_s18 }
0x177d   :  { %v1903_v6 = vpop.xlane.xlu0 %1902 }
0x177e   :  { %v1907_v7 = vsub.f32 %v1899_v63, %v1903_v6 }
0x177f   :  { %v1906_v8 = vpop.xlane.xlu1 %1905 }
0x1780   :  { %v1909_v9 = vmul.f32 1.442695, %v1907_v7  ;;  %v1908_v11 = vsub.f32 %v1900_v5, %v1906_v8 }
0x1782   :  { %3482 = vpow2.f32 %v1909_v9  ;;  %v1911_v12 = vmul.f32 1.442695, %v1908_v11 }
0x1783   :  { %v1974_v13 = vpop.permute.xlu1 %1973 }
0x1784   :  { %3484 = vpow2.f32 %v1911_v12  ;;  %v1979_v14 = vsel %vm300_vm3, %v1974_v13, 0 }
0x1785   :  { %3316 = vmatpush3.bf16.msra.mxu0 %v1979_v14 }
0x1786   :  { %3327 = vmatprep.subr.bf16.mxu0 %v3520_v17 }
0x1787   :  { %v2120_v31 = vpop.permute.xlu1 %2119 }
0x1788   :  { %v2125_v49 = vsel %vm171_vm2, %v2120_v31, 0 }
0x178b   :  { %v2170_v33 = vpop.permute.xlu1 %2169 }
0x178c   :  { %v3483_v15 = vpop.eup %3482  ;;  %v2175_v32 = vsel %vm171_vm2, %v2170_v33, 0 }
0x178d   :  { %v1913_v0 = vsel %vm171_vm2, %v3483_v15, 0.0 }
0x178e   :  { %v3485_v16 = vpop.eup %3484  ;;  %1914 = vadd.xlane.f32.xlu0 %v1913_v0 }
0x178f   :  { %v1916_v18 = vsel %vm171_vm2, %v3485_v16, 0.0  ;;  %v2168_v34 = vpop.permute.xlu1 %2167 }
0x1792   :  { %1917 = vadd.xlane.f32.xlu0 %v1916_v18 }
0x17a8   :  { %1925 = vrot.lane.b32.xlu0 %v3996_v53, %s3526_s0  ;;  %s4317_s0 = smov 72  }
0x17ac   :  { %2117 = vrot.lane.b32.xlu0 %v3996_v53, %s3528_s18 }
0x181b   :  { %v1915_v3 = vpop.xlane.xlu0 %1914 }
0x181c   :  { %3486 = vrcp.f32 %v1915_v3 }
0x181f   :  { %v1918_v19 = vpop.xlane.xlu0 %1917 }
0x1820   :  { %3488 = vrcp.f32 %v1918_v19 }
0x1823   :  { %v1926_v57 = vpop.permute.xlu0 %1925 }
0x1824   :  { %v1931_v21 = vsel %vm300_vm3, %v1926_v57, 0 }
0x1825   :  { %3310 = vmatpush3.bf16.msra.mxu1 %v1931_v21 }
0x1826   :  { %v3487_v22 = vpop.eup %3486  ;;  %3321 = vmatprep.subr.bf16.mxu1 %v3520_v17 }
0x1827   :  { %v1920_v24 = vmul.f32 %v3487_v22, %v3483_v15  ;;  %v2118_v55 = vpop.permute.xlu0 %2117 }
0x1829   :  { %v1923_v25 = vpack.c.bf16 %v1920_v24, %v1920_v24 }
0x182a   :  { %v3489_v43 = vpop.eup %3488 }
0x182b   :  { %v1922_v28 = vmul.f32 %v3489_v43, %v3485_v16  ;;  %3312 = vmatmul.mubr.msk.bf16.vlgmr.msra.gmra.mrb[64].mxu1 %vm171_vm2, %v1923_v25 }
0x182c   :  { %3322 = vmatpush3.bf16.msra.mxu1 %v2027_v27  ;;  %3323 = vmatprep.mubr.msk.bf16.mxu1 %vm3521_vm1, %v3520_v17 }
0x182d   :  { %v1924_v29 = vpack.c.bf16 %v1922_v28, %v1922_v28  ;;  %3333 = vmatprep.subr.bf16.mxu1 %v3520_v17 }
0x182f   :  { %3318 = vmatmul.mubr.msk.bf16.vlgmr.msra.gmra.mrb[56].mxu0 %vm171_vm2, %v1924_v29 }
0x1830   :  { %3328 = vmatpush3.bf16.msra.mxu0 %v2074_v30  ;;  %3329 = vmatprep.mubr.msk.bf16.mxu0 %vm3521_vm1, %v3520_v17 }
0x1831   :  { %3339 = vmatprep.subr.bf16.mxu0 %v3520_v17 }
0x1837   :  { %3330 = vmatmul.mubr.msk.bf16.vlgmr.msra.gmra.mrb[60].mxu0 %vm171_vm2, %v1795_v47 }
0x1838   :  { %3341 = vmatprep.mubr.msk.bf16.mxu0 %vm3521_vm1, %v3520_v17 }
0x1839   :  { %3340 = vmatpush3.bf16.xpose.msra.mxu0 %v2175_v32 }
0x183a   :  { %3351 = vmatprep.subr.bf16.mxu0 %v3520_v17 }
0x1840   :  { %3342 = vmatmul.mubr.msk.bf16.vlgmr.msra.gmra.mrb[64].mxu0 %vm171_vm2, %v2168_v34 }
0x1841   :  { %3353 = vmatprep.mubr.msk.bf16.mxu0 %vm3521_vm1, %v3520_v17 }
0x18fe   :  { %v1967_v37 = vpop.f32.mrb[64].mxu1 }
0x18ff   :  { %v3313_v38 = vpop.f32.mrb[65].mxu1 }
0x1900   :  { %v1970_v40 = vpop.f32.mrb[66].mxu1 }
0x1901   :  { %v3314_v39 = vpop.f32.mrb[67].mxu1 }
0x1902   :  { %v2015_v41 = vpop.f32.mrb[56].mxu0 }
0x1903   :  { %v2021_v45 = vpack.c.bf16 %v2015_v41, %v1967_v37  ;;  %v3319_v47 = vpop.f32.mrb[57].mxu0 }
0x1904   :  { %v2018_v48 = vpop.f32.mrb[58].mxu0 }
0x1905   :  { %v3320_v50 = vpop.f32.mrb[59].mxu0  ;;  %3324 = vmatmul.mubr.msk.bf16.vlgmr.msra.gmra.mrb[68].mxu1 %vm171_vm2, %v2021_v45  ;;  %v2965_v48 = vld [vmem:[%s4297_s6 + $0x30] sm:$0xff] }
0x1906   :  { %3334 = vmatpush3.bf16.xpose.msra.mxu1 %v2125_v49  ;;  %3335 = vmatprep.mubr.msk.bf16.mxu1 %vm3521_vm1, %v3520_v17  ;;  %v2342_v49 = vpack.c.bf16 %v2965_v48, %v2965_v48 }
0x1907   :  { %3345 = vmatprep.subr.bf16.mxu1 %v3520_v17 }
0x1908   :  { %v2347_v50 = vsel %vm300_vm3, %v2342_v49, 0 }
0x190a   :  { %v2110_v51 = vpop.f32.mrb[60].mxu0 }
0x190b   :  { %v3331_v54 = vpop.f32.mrb[61].mxu0 }
0x190c   :  { %v2113_v58 = vpop.f32.mrb[62].mxu0 }
0x190d   :  { %v3332_v59 = vpop.f32.mrb[63].mxu0  ;;  %3336 = vmatmul.mubr.msk.bf16.vlgmr.msra.gmra.mrb[72].mxu1 %vm171_vm2, %v2118_v55 }
0x190e   :  { %3347 = vmatprep.mubr.msk.bf16.mxu1 %vm3521_vm1, %v3520_v17 }
0x1913   :  { %v2211_v52 = vpop.f32.mrb[64].mxu0 }
0x1914   :  { %v2218_v60 = vmul.f32 0.35355338, %v2211_v52  ;;  %v3343_v61 = vpop.f32.mrb[65].mxu0 }
0x1915   :  { %v2214_v62 = vpop.f32.mrb[66].mxu0 }
0x1916   :  { %v3344_v63 = vpop.f32.mrb[67].mxu0  ;;  %v2220_v1 = vadd.f32 %v4026_v10, %v2218_v60 }
0x1918   :  { %v2224_v2 = vsel %vm171_vm2, %v2220_v1, -inf }
0x1919   :  { %2225 = vmax.xlane.f32.xlu1 %v2224_v2 }
0x192a   :  { %2293 = vrot.lane.b32.xlu1 %v3998_v56, %s3529_s2 }
0x192e   :  { %2394 = vrot.lane.b32.xlu1 %v3996_v53, %s4317_s0 }
0x1932   :  { %2444 = vrot.lane.b32.xlu1 %v3998_v56, %s4317_s0 }
0x1936   :  { %2442 = vrot.lane.b32.xlu1 %v3998_v56, %s4318_s17 }
0x19a6   :  { %v2226_v4 = vpop.xlane.xlu1 %2225 }
0x19a7   :  { %v2228_v6 = vsub.f32 %v2220_v1, %v2226_v4 }
0x19a9   :  { %v2231_v7 = vmul.f32 1.442695, %v2228_v6 }
0x19aa   :  { %v2294_v5 = vpop.permute.xlu1 %2293 }
0x19ab   :  { %v2299_v35 = vsel %vm300_vm3, %v2294_v5, 0  ;;  %3490 = vpow2.f32 %v2231_v7 }
0x19ac   :  { %3352 = vmatpush3.bf16.msra.mxu0 %v2299_v35 }
0x19ad   :  { %3363 = vmatprep.subr.bf16.mxu0 %v3520_v17 }
0x19ae   :  { %v2395_v28 = vpop.permute.xlu1 %2394 }
0x19af   :  { %v2400_v30 = vsel %vm171_vm2, %v2395_v28, 0 }
0x19b2   :  { %v2445_v61 = vpop.permute.xlu1 %2444 }
0x19b3   :  { %v2450_v4 = vsel %vm171_vm2, %v2445_v61, 0 }
0x19b5   :  { %v3491_v57 = vpop.eup %3490 }
0x19b6   :  { %v2236_v21 = vsel %vm171_vm2, %v3491_v57, 0.0 }
0x19d8   :  { %v2063_v8 = vpop.f32.mrb[68].mxu1 }
0x19d9   :  { %v4139_v9 = vadd.f32 %v2110_v51, %v2063_v8  ;;  %v3325_v11 = vpop.f32.mrb[69].mxu1 }
0x19da   :  { %v2066_v12 = vpop.f32.mrb[70].mxu1 }
0x19db   :  { %v4141_v13 = vadd.f32 %v2113_v58, %v2066_v12  ;;  %v3326_v14 = vpop.f32.mrb[71].mxu1 }
0x19e0   :  { %v2161_v15 = vpop.f32.mrb[72].mxu1 }
0x19e1   :  { %v2217_v0 = vmul.f32 0.35355338, %v2161_v15  ;;  %v3337_v16 = vpop.f32.mrb[73].mxu1 }
0x19e2   :  { %v2164_v18 = vpop.f32.mrb[74].mxu1 }
0x19e3   :  { %v3338_v3 = vpop.f32.mrb[75].mxu1  ;;  %v2219_v19 = vadd.f32 %v4019_v36, %v2217_v0 }
0x19e5   :  { %v2221_v20 = vsel %vm171_vm2, %v2219_v19, -inf }
0x19e6   :  { %2222 = vmax.xlane.f32.xlu0 %v2221_v20 }
0x19ea   :  { %2237 = vadd.xlane.f32.xlu0 %v2236_v21 }
0x1a73   :  { %v2223_v46 = vpop.xlane.xlu0 %2222 }
0x1a74   :  { %v2227_v22 = vsub.f32 %v2219_v19, %v2223_v46 }
0x1a76   :  { %v2229_v23 = vmul.f32 1.442695, %v2227_v22 }
0x1a77   :  { %v2238_v24 = vpop.xlane.xlu0 %2237 }
0x1a78   :  { %3492 = vpow2.f32 %v2229_v23 }
0x1a79   :  { %3494 = vrcp.f32 %v2238_v24 }
0x1a82   :  { %v3493_v25 = vpop.eup %3492 }
0x1a83   :  { %v3495_v26 = vpop.eup %3494  ;;  %v2233_v27 = vsel %vm171_vm2, %v3493_v25, 0.0 }
0x1a84   :  { %v2242_v43 = vmul.f32 %v3495_v26, %v3491_v57  ;;  %2234 = vadd.xlane.f32.xlu0 %v2233_v27 }
0x1a86   :  { %v2244_v29 = vpack.c.bf16 %v2242_v43, %v2242_v43 }
0x1a88   :  { %3354 = vmatmul.mubr.msk.bf16.vlgmr.msra.gmra.mrb[68].mxu0 %vm171_vm2, %v2244_v29 }
0x1a89   :  { %3364 = vmatpush3.bf16.xpose.msra.mxu0 %v2400_v30  ;;  %3365 = vmatprep.mubr.msk.bf16.mxu0 %vm3521_vm1, %v3520_v17 }
0x1a8a   :  { %3375 = vmatprep.subr.bf16.mxu0 %v3520_v17 }
0x1a9a   :  { %2245 = vrot.lane.b32.xlu0 %v3996_v53, %s3529_s2 }
0x1a9e   :  { %2392 = vrot.lane.b32.xlu0 %v3996_v53, %s4318_s17 }
0x1b11   :  { %v2235_v31 = vpop.xlane.xlu0 %2234 }
0x1b12   :  { %3496 = vrcp.f32 %v2235_v31 }
0x1b15   :  { %v2246_v33 = vpop.permute.xlu0 %2245 }
0x1b16   :  { %v2251_v32 = vsel %vm300_vm3, %v2246_v33, 0 }
0x1b17   :  { %3346 = vmatpush3.bf16.msra.mxu1 %v2251_v32 }
0x1b18   :  { %3357 = vmatprep.subr.bf16.mxu1 %v3520_v17 }
0x1b19   :  { %v2393_v34 = vpop.permute.xlu0 %2392 }
0x1b1a   :  { %3366 = vmatmul.mubr.msk.bf16.vlgmr.msra.gmra.mrb[72].mxu0 %vm171_vm2, %v2393_v34  ;;  %v2966_v34 = vld [vmem:[%s4297_s6 + $0x38] sm:$0xff] }
0x1b1b   :  { %3377 = vmatprep.mubr.msk.bf16.mxu0 %vm3521_vm1, %v3520_v17 }
0x1b1c   :  { %v3497_v37 = vpop.eup %3496 }
0x1b1d   :  { %v2240_v38 = vmul.f32 %v3497_v37, %v3493_v25  ;;  %v2617_v37 = vpack.c.bf16 %v2966_v34, %v2966_v34 }
0x1b1f   :  { %v2243_v40 = vpack.c.bf16 %v2240_v38, %v2240_v38  ;;  %v2622_v38 = vsel %vm300_vm3, %v2617_v37, 0  ;;  %v3004_v37 = vld [vmem:[%s4302_s12 + $0x60] sm:$0xff] }
0x1b21   :  { %3348 = vmatmul.mubr.msk.bf16.vlgmr.msra.gmra.mrb[76].mxu1 %vm171_vm2, %v2243_v40 }
0x1b22   :  { %3359 = vmatprep.mubr.msk.bf16.mxu1 %vm3521_vm1, %v3520_v17  ;;  %3358 = vmatpush3.bf16.msra.mxu1 %v2347_v50 }
0x1b23   :  { %3369 = vmatprep.subr.bf16.mxu1 %v3520_v17 }
0x1b5b   :  { %v2335_v39 = vpop.f32.mrb[68].mxu0 }
0x1b5c   :  { %v3355_v41 = vpop.f32.mrb[69].mxu0 }
0x1b5d   :  { %v2338_v45 = vpop.f32.mrb[70].mxu0 }
0x1b5e   :  { %v3356_v47 = vpop.f32.mrb[71].mxu0 }
0x1bed   :  { %v2436_v51 = vpop.f32.mrb[72].mxu0 }
0x1bee   :  { %v2492_v54 = vmul.f32 0.35355338, %v2436_v51  ;;  %v3367_v55 = vpop.f32.mrb[73].mxu0 }
0x1bef   :  { %v2439_v58 = vpop.f32.mrb[74].mxu0  ;;  %v2988_v55 = vld [vmem:[%s4298_s7 + $0x1] ss:$0 sm:$0xff] }
0x1bf0   :  { %v3368_v59 = vpop.f32.mrb[75].mxu0  ;;  %v2494_v52 = vadd.f32 %v4019_v36, %v2492_v54  ;;  %v2443_v36 = vpop.permute.xlu1 %2442 }
0x1bf2   :  { %v2496_v60 = vsel %vm171_vm2, %v2494_v52, -inf }
0x1bf3   :  { %2497 = vmax.xlane.f32.xlu0 %v2496_v60 }
0x1bf4   :  { %v2287_v62 = vpop.f32.mrb[76].mxu1 }
0x1bf5   :  { %v2341_v63 = vpack.c.bf16 %v2335_v39, %v2287_v62  ;;  %v3349_v1 = vpop.f32.mrb[77].mxu1 }
0x1bf6   :  { %v2290_v2 = vpop.f32.mrb[78].mxu1 }
0x1bf7   :  { %v3350_v5 = vpop.f32.mrb[79].mxu1  ;;  %3360 = vmatmul.mubr.msk.bf16.vlgmr.msra.gmra.mrb[80].mxu1 %vm171_vm2, %v2341_v63 }
0x1bf8   :  { %3370 = vmatpush3.bf16.xpose.msra.mxu1 %v2450_v4  ;;  %3371 = vmatprep.mubr.msk.bf16.mxu1 %vm3521_vm1, %v3520_v17 }
0x1bf9   :  { %3381 = vmatprep.subr.bf16.mxu1 %v3520_v17 }
0x1bff   :  { %3372 = vmatmul.mubr.msk.bf16.vlgmr.msra.gmra.mrb[84].mxu1 %vm171_vm2, %v2443_v36 }
0x1c00   :  { %3383 = vmatprep.mubr.msk.bf16.mxu1 %vm3521_vm1, %v3520_v17 }
0x1c80   :  { %v2498_v35 = vpop.xlane.xlu0 %2497 }
0x1c81   :  { %v2502_v6 = vsub.f32 %v2494_v52, %v2498_v35 }
0x1c83   :  { %v2504_v7 = vmul.f32 1.442695, %v2502_v6 }
0x1c85   :  { %3498 = vpow2.f32 %v2504_v7 }
0x1c8f   :  { %v3499_v8 = vpop.eup %3498 }
0x1c90   :  { %v2508_v11 = vsel %vm171_vm2, %v3499_v8, 0.0 }
0x1c91   :  { %2509 = vadd.xlane.f32.xlu0 %v2508_v11 }
0x1cca   :  { %v2383_v12 = vpop.f32.mrb[80].mxu1 }
0x1ccb   :  { %v2390_v14 = vadd.f32 %v2383_v12, %v4139_v9  ;;  %v3361_v15 = vpop.f32.mrb[81].mxu1 }
0x1ccc   :  { %v2386_v0 = vpop.f32.mrb[82].mxu1 }
0x1ccd   :  { %v4182_v16 = vadd.f32 %v2386_v0, %v4141_v13  ;;  %v3362_v18 = vpop.f32.mrb[83].mxu1  ;;  %v2994_v0 = vld [vmem:[%s4299_s10 + $0x28] sm:$0xff] }
0x1cce   :  { %v2995_v18 = vld [vmem:[%s4299_s10 + $0x30] sm:$0xff] }
0x1cd2   :  { %v2486_v3 = vpop.f32.mrb[84].mxu1 }
0x1cd3   :  { %v2493_v19 = vmul.f32 0.35355338, %v2486_v3  ;;  %v3373_v20 = vpop.f32.mrb[85].mxu1  ;;  %v2996_v3 = vld [vmem:[%s4299_s10 + $0x38] sm:$0xff] }
0x1cd4   :  { %v2489_v57 = vpop.f32.mrb[86].mxu1 }
0x1cd5   :  { %v3374_v21 = vpop.f32.mrb[87].mxu1  ;;  %v2495_v46 = vadd.f32 %v4026_v10, %v2493_v19  ;;  %v2732_v19 = vpack.c.bf16 %v2996_v3, %v2995_v18 }
0x1cd7   :  { %v2499_v22 = vsel %vm171_vm2, %v2495_v46, -inf }
0x1cd8   :  { %2500 = vmax.xlane.f32.xlu1 %v2499_v22 }
0x1ce9   :  { %2568 = vrot.lane.b32.xlu1 %v3998_v56, %s4319_s27 }
0x1d1e   :  { %v2510_v10 = vpop.xlane.xlu0 %2509 }
0x1d65   :  { %v2501_v9 = vpop.xlane.xlu1 %2500 }
0x1d66   :  { %v2503_v23 = vsub.f32 %v2495_v46, %v2501_v9 }
0x1d68   :  { %v2506_v24 = vmul.f32 1.442695, %v2503_v23 }
0x1d69   :  { %v2569_v25 = vpop.permute.xlu1 %2568 }
0x1d6a   :  { %3500 = vpow2.f32 %v2506_v24  ;;  %v2574_v13 = vsel %vm300_vm3, %v2569_v25, 0  ;;  %v2991_v24 = vld [vmem:[%s4300_s8 + $0x1] ss:$0 sm:$0xff] }
0x1d6b   :  { %3382 = vmatpush3.bf16.msra.mxu1 %v2574_v13  ;;  %3502 = vrcp.f32 %v2510_v10  ;;  %v2992_v10 = vld [vmem:[%s4301_s9 + $0x1] ss:$0 sm:$0xff] }
0x1d6c   :  { %3393 = vmatprep.subr.bf16.mxu1 %v3520_v17 }
0x1d74   :  { %v3501_v26 = vpop.eup %3500 }
0x1d75   :  { %v2511_v27 = vsel %vm171_vm2, %v3501_v26, 0.0  ;;  %v3503_v56 = vpop.eup %3502 }
0x1d76   :  { %2512 = vadd.xlane.f32.xlu0 %v2511_v27  ;;  %v2515_v28 = vmul.f32 %v3503_v56, %v3499_v8 }
0x1d78   :  { %v2518_v31 = vpack.c.bf16 %v2515_v28, %v2515_v28 }
0x1d8c   :  { %2520 = vrot.lane.b32.xlu0 %v3996_v53, %s4319_s27 }
0x1e03   :  { %v2513_v43 = vpop.xlane.xlu0 %2512 }
0x1e04   :  { %3504 = vrcp.f32 %v2513_v43 }
0x1e07   :  { %v2521_v29 = vpop.permute.xlu0 %2520 }
0x1e08   :  { %v2526_v30 = vsel %vm300_vm3, %v2521_v29, 0 }
0x1e09   :  { %3376 = vmatpush3.bf16.msra.mxu0 %v2526_v30  ;;  %v3000_v30 = vld [vmem:[%s4302_s12 + $0x40] sm:$0xff] }
0x1e0a   :  { %3387 = vmatprep.subr.bf16.mxu0 %v3520_v17 }
0x1e0c   :  { %3378 = vmatmul.mubr.msk.bf16.vlgmr.msra.gmra.mrb[76].mxu0 %vm171_vm2, %v2518_v31  ;;  %v3001_v31 = vld [vmem:[%s4302_s12 + $0x48] sm:$0xff] }
0x1e0d   :  { %3389 = vmatprep.mubr.msk.bf16.mxu0 %vm3521_vm1, %v3520_v17  ;;  %3388 = vmatpush3.bf16.msra.mxu0 %v2622_v38  ;;  %v3005_v38 = vld [vmem:[%s4302_s12 + $0x68] sm:$0xff] }
0x1e0e   :  { %v3505_v33 = vpop.eup %3504  ;;  %3401 = vmatprep.subr.bf16.mxu0 %v3520_v17 }
0x1e0f   :  { %v2517_v53 = vmul.f32 %v3505_v33, %v3501_v26  ;;  %v3002_v33 = vld [vmem:[%s4302_s12 + $0x50] sm:$0xff] }
0x1e11   :  { %v2519_v32 = vpack.c.bf16 %v2517_v53, %v2517_v53  ;;  %v2813_v53 = vpack.c.bf16 %v3001_v31, %v3000_v30 }
0x1e13   :  { %3384 = vmatmul.mubr.msk.bf16.vlgmr.msra.gmra.mrb[88].mxu1 %vm171_vm2, %v2519_v32  ;;  %v3003_v32 = vld [vmem:[%s4302_s12 + $0x58] sm:$0xff] }
0x1e14   :  { %3397 = vmatprep.mubr.msk.bf16.mxu1 %vm3521_vm1, %v3520_v17  ;;  %v2814_v34 = vpack.c.bf16 %v3003_v32, %v3002_v33  ;;  %v3013_v33 = vld [vmem:[%s4305_s14 + $0x1] ss:$0 sm:$0xff] }
0x1edf   :  { %v2562_v40 = vpop.f32.mrb[76].mxu0 }
0x1ee0   :  { %v3379_v39 = vpop.f32.mrb[77].mxu0 }
0x1ee1   :  { %v2565_v41 = vpop.f32.mrb[78].mxu0  ;;  %v3006_v39 = vld [vmem:[%s4302_s12 + $0x70] sm:$0xff] }
0x1ee2   :  { %v3380_v45 = vpop.f32.mrb[79].mxu0  ;;  %v3007_v41 = vld [vmem:[%s4302_s12 + $0x78] sm:$0xff] }
0x1ee3   :  { %v2816_v45 = vpack.c.bf16 %v3007_v41, %v3006_v39 }
0x1ee6   :  { %v2610_v47 = vpop.f32.mrb[88].mxu1 }
0x1ee7   :  { %v2616_v48 = vpack.c.bf16 %v2610_v47, %v2562_v40  ;;  %v3385_v49 = vpop.f32.mrb[89].mxu1  ;;  %v2815_v40 = vpack.c.bf16 %v3005_v38, %v3004_v37  ;;  %v2998_v47 = vld [vmem:[%s4303_s11 + $0x1] ss:$0 sm:$0xff] }
0x1ee8   :  { %v2613_v50 = vpop.f32.mrb[90].mxu1 }
0x1ee9   :  { %v3386_v51 = vpop.f32.mrb[91].mxu1  ;;  %3390 = vmatmul.mubr.msk.bf16.vlgmr.msra.gmra.mrb[80].mxu0 %vm171_vm2, %v2616_v48 }
0x1eea   :  { %3409 = vmatprep.mubr.msk.bf16.mxu0 %vm3521_vm1, %v3520_v17  ;;  %3402 = vmatpush3.bf16.msra.mxu0 %v2813_v53 }
0x1eeb   :  { %3403 = vmatprep.subr.bf16.mxu0 %v3520_v17 }
0x1eee   :  { %3404 = vmatpush3.bf16.msra.mxu0 %v2814_v34  ;;  %v3014_v34 = vld [vmem:[%s4306_s15 + $0x1] ss:$0 sm:$0xff] }
0x1eef   :  { %3405 = vmatprep.subr.bf16.mxu0 %v3520_v17 }
0x1ef2   :  { %3406 = vmatpush3.bf16.msra.mxu0 %v2815_v40 }
0x1ef3   :  { %3407 = vmatprep.subr.bf16.mxu0 %v3520_v17 }
0x1ef6   :  { %3408 = vmatpush3.bf16.msra.mxu0 %v2816_v45 }
0x1fbc   :  { %v2658_v54 = vpop.f32.mrb[80].mxu0 }
0x1fbd   :  { %v2665_v58 = vadd.f32 %v2658_v54, %v2390_v14  ;;  %v3391_v59 = vpop.f32.mrb[81].mxu0 }
0x1fbe   :  { %v2661_v52 = vpop.f32.mrb[82].mxu0 }
0x1fbf   :  { %v2675_v60 = vadd.f32 %v2988_v55, %v2665_v58  ;;  %v2666_v61 = vadd.f32 %v2661_v52, %v4182_v16  ;;  %v3392_v62 = vpop.f32.mrb[83].mxu0 }
0x1fc1   :  { %v2676_v63 = vadd.f32 %v2988_v55, %v2666_v61  ;;  %v2677_v1 = vadd.f32 %v2675_v60, %v3984_v42 }
0x1fc3   :  { %v2683_v2 = vsel %vm58_vm0, %v2677_v1, 0.0  ;;  %v2678_v4 = vadd.f32 %v2676_v63, %v3986_v44  ;;  %v2993_v44 = vld [vmem:[%s4299_s10 + $0x20] sm:$0xff] }
0x1fc4   :  { %2684 = vadd.xlane.f32.xlu1 %v2683_v2  ;;  %v2731_v16 = vpack.c.bf16 %v2994_v0, %v2993_v44 }
0x1fc5   :  { %v2686_v5 = vsel %vm58_vm0, %v2678_v4, 0.0 }
0x1fc6   :  { %2687 = vadd.xlane.f32.xlu0 %v2686_v5  ;;  %3394 = vmatpush3.bf16.msra.mxu1 %v2731_v16 }
0x1fc7   :  { %3395 = vmatprep.subr.bf16.mxu1 %v3520_v17 }
0x1fca   :  { %3396 = vmatpush3.bf16.msra.mxu1 %v2732_v19 }
0x2051   :  { %v2685_v36 = vpop.xlane.xlu1 %2684 }
0x2052   :  { %v2689_v35 = vmul.f32 0.03125, %v2685_v36 }
0x2053   :  { %v2688_v6 = vpop.xlane.xlu0 %2687 }
0x2054   :  { %v2691_v7 = vsub.f32 %v2677_v1, %v2689_v35  ;;  %v2690_v8 = vmul.f32 0.03125, %v2688_v6 }
0x2056   :  { %v2692_v11 = vsub.f32 %v2678_v4, %v2690_v8  ;;  %v2693_v12 = vmul.f32 %v2691_v7, %v2691_v7 }
0x2058   :  { %v2695_v14 = vsel %vm58_vm0, %v2693_v12, 0.0  ;;  %v2694_v15 = vmul.f32 %v2692_v11, %v2692_v11 }
0x2059   :  { %2696 = vadd.xlane.f32.xlu0 %v2695_v14  ;;  %v3009_v14 = vld [vmem:[%s4304_s13 + $0x1] ss:$0 sm:$0xff] }
0x205a   :  { %v2698_v42 = vsel %vm58_vm0, %v2694_v15, 0.0 }
0x205b   :  { %2699 = vadd.xlane.f32.xlu1 %v2698_v42 }
0x20e6   :  { %v2697_v20 = vpop.xlane.xlu0 %2696 }
0x20e7   :  { %v2701_v57 = vmul.f32 0.03125, %v2697_v20 }
0x20e8   :  { %v2700_v21 = vpop.xlane.xlu1 %2699 }
0x20e9   :  { %v2703_v46 = vadd.f32 1e-12, %v2701_v57  ;;  %v2702_v22 = vmul.f32 0.03125, %v2700_v21 }
0x20eb   :  { %3506 = vrsqrt.f32 %v2703_v46  ;;  %v2704_v9 = vadd.f32 1e-12, %v2702_v22 }
0x20ed   :  { %3508 = vrsqrt.f32 %v2704_v9 }
0x20f5   :  { %v3507_v23 = vpop.eup %3506 }
0x20f6   :  { %v2707_v25 = vmul.f32 %v3507_v23, %v2691_v7 }
0x20f7   :  { %v3509_v13 = vpop.eup %3508 }
0x20f8   :  { %v2715_v26 = vmul.f32 %v2991_v24, %v2707_v25  ;;  %v2708_v27 = vmul.f32 %v3509_v13, %v2692_v11 }
0x20fa   :  { %v2716_v56 = vmul.f32 %v2991_v24, %v2708_v27  ;;  %v2723_v43 = vadd.f32 %v2992_v10, %v2715_v26 }
0x20fc   :  { %v2724_v28 = vadd.f32 %v2992_v10, %v2716_v56 }
0x20fe   :  { %v2730_v29 = vpack.c.bf16 %v2724_v28, %v2723_v43 }
0x2100   :  { %3398 = vmatmul.mubr.msk.bf16.vlgmr.msra.gmra.mrb[92].mxu1 %vm58_vm0, %v2730_v29 }
0x21d3   :  { %v2778_v48 = vpop.f32.mrb[92].mxu1 }
0x21d4   :  { %v2779_v49 = vadd.f32 %v2998_v47, %v2778_v48  ;;  %v3399_v50 = vpop.f32.mrb[93].mxu1 }
0x21d5   :  { %v2781_v51 = vpop.f32.mrb[94].mxu1 }
0x21d6   :  { %v2787_v54 = vmul.f32 0.044715, %v2779_v49  ;;  %v2782_v55 = vadd.f32 %v2998_v47, %v2781_v51  ;;  %v3400_v58 = vpop.f32.mrb[95].mxu1  ;;  %v2785_v35 = vmul.f32 0.5, %v2779_v49 }
0x21d8   :  { %v2789_v59 = vmul.f32 %v2787_v54, %v2779_v49  ;;  %v2788_v52 = vmul.f32 0.044715, %v2782_v55  ;;  %v2786_v6 = vmul.f32 0.5, %v2782_v55 }
0x21da   :  { %v2791_v60 = vmul.f32 %v2789_v59, %v2779_v49  ;;  %v2790_v61 = vmul.f32 %v2788_v52, %v2782_v55 }
0x21dc   :  { %v2793_v62 = vadd.f32 %v2791_v60, %v2779_v49  ;;  %v2792_v63 = vmul.f32 %v2790_v61, %v2782_v55 }
0x21de   :  { %v2795_v1 = vmul.f32 0.7978846, %v2793_v62  ;;  %v2794_v17 = vadd.f32 %v2792_v63, %v2782_v55 }
0x21e0   :  { %3510 = vtanh.f32 %v2795_v1  ;;  %v2796_v2 = vmul.f32 0.7978846, %v2794_v17 }
0x21e2   :  { %3512 = vtanh.f32 %v2796_v2 }
0x21ea   :  { %v3511_v4 = vpop.eup %3510 }
0x21eb   :  { %v2799_v5 = vadd.f32 1.0, %v3511_v4 }
0x21ec   :  { %v3513_v36 = vpop.eup %3512 }
0x21ed   :  { %v2800_v7 = vadd.f32 1.0, %v3513_v36  ;;  %v2801_v8 = vmul.f32 %v2799_v5, %v2785_v35 }
0x21ef   :  { %v2802_v11 = vmul.f32 %v2800_v7, %v2786_v6 }
0x21f1   :  { %v2812_v12 = vpack.c.bf16 %v2802_v11, %v2801_v8 }
0x21f3   :  { %3410 = vmatmul.mubr.msk.bf16.vlgmr.msra.gmra.mrb[84].mxu0 %vm1415_vm4, %v2812_v12 }
0x22c6   :  { %v2862_v15 = vpop.f32.mrb[84].mxu0 }
0x22c7   :  { %v2863_v42 = vadd.f32 %v3009_v14, %v2862_v15  ;;  %v3411_v44 = vpop.f32.mrb[85].mxu0 }
0x22c8   :  { %v2865_v0 = vpop.f32.mrb[86].mxu0 }
0x22c9   :  { %v2866_v16 = vadd.f32 %v3009_v14, %v2865_v0  ;;  %v3412_v18 = vpop.f32.mrb[87].mxu0  ;;  %v2869_v3 = vadd.f32 %v2863_v42, %v2723_v43 }
0x22cb   :  { %v2875_v19 = vsel %vm58_vm0, %v2869_v3, 0.0  ;;  %v2870_v20 = vadd.f32 %v2866_v16, %v2724_v28 }
0x22cc   :  { %2876 = vadd.xlane.f32.xlu0 %v2875_v19 }
0x22cd   :  { %v2878_v57 = vsel %vm58_vm0, %v2870_v20, 0.0 }
0x22ce   :  { %2879 = vadd.xlane.f32.xlu1 %v2878_v57 }
0x2359   :  { %v2877_v21 = vpop.xlane.xlu0 %2876 }
0x235a   :  { %v2881_v46 = vmul.f32 0.03125, %v2877_v21 }
0x235b   :  { %v2880_v22 = vpop.xlane.xlu1 %2879 }
0x235c   :  { %v2883_v9 = vsub.f32 %v2869_v3, %v2881_v46  ;;  %v2882_v23 = vmul.f32 0.03125, %v2880_v22 }
0x235e   :  { %v2884_v24 = vsub.f32 %v2870_v20, %v2882_v23  ;;  %v2885_v25 = vmul.f32 %v2883_v9, %v2883_v9 }
0x2360   :  { %v2887_v13 = vsel %vm58_vm0, %v2885_v25, 0.0  ;;  %v2886_v26 = vmul.f32 %v2884_v24, %v2884_v24 }
0x2361   :  { %2888 = vadd.xlane.f32.xlu0 %v2887_v13 }
0x2362   :  { %v2890_v27 = vsel %vm58_vm0, %v2886_v26, 0.0 }
0x2363   :  { %2891 = vadd.xlane.f32.xlu1 %v2890_v27 }
0x23ee   :  { %v2889_v10 = vpop.xlane.xlu0 %2888 }
0x23ef   :  { %v2893_v56 = vmul.f32 0.03125, %v2889_v10 }
0x23f0   :  { %v2892_v43 = vpop.xlane.xlu1 %2891 }
0x23f1   :  { %v2895_v28 = vadd.f32 1e-12, %v2893_v56  ;;  %v2894_v29 = vmul.f32 0.03125, %v2892_v43 }
0x23f3   :  { %3514 = vrsqrt.f32 %v2895_v28  ;;  %v2896_v30 = vadd.f32 1e-12, %v2894_v29 }
0x23f5   :  { %3516 = vrsqrt.f32 %v2896_v30 }
0x23fd   :  { %v3515_v31 = vpop.eup %3514 }
0x23fe   :  { %v2899_v53 = vmul.f32 %v3515_v31, %v2883_v9 }
0x23ff   :  { %v3517_v32 = vpop.eup %3516 }
0x2400   :  { %v2907_v37 = vmul.f32 %v3013_v33, %v2899_v53  ;;  %v2900_v38 = vmul.f32 %v3517_v32, %v2884_v24 }
0x2402   :  { %v2915_v40 = vadd.f32 %v3014_v34, %v2907_v37  ;;  %v2908_v39 = vmul.f32 %v3013_v33, %v2900_v38 }
0x2404   :  { %2917 = vst.msk [vmem:[%s4307_s16] sm:$0xff] %vm58_vm0, %v2915_v40  ;;  %v2916_v41 = vadd.f32 %v3014_v34, %v2908_v39 }
0x2406   :  { %2918 = vst.msk [vmem:[%s4307_s16 + $0x8] sm:$0xff] %vm58_vm0, %v2916_v41 }

</bundles_post_ra>
